<compile_context>
chip_gen: v7x
topology: tpu7x:2x2x1
jax: 0.10.0
libtpu: 0.0.40
codegen_flags: <defaults>
</compile_context>

<pallas_src>
import functools

import jax
import jax.numpy as jnp
from jax import lax
from jax.experimental import pallas as pl
from jax.experimental.pallas import tpu as pltpu

MAX_GRU_HIDDEN_DIM = 768


def _pad_gate_rows(w, h, hp):
    """Pad a gate-stacked [r; z; n] array of leading size 3h to 3hp (zeros)."""
    if hp == h:
        return w
    parts = [w[g * h:(g + 1) * h] for g in range(3)]
    pad_width = [(0, hp - h)] + [(0, 0)] * (w.ndim - 1)
    return jnp.concatenate([jnp.pad(p, pad_width) for p in parts], axis=0)


def _gru_recurrence_kernel(gi_ref, whh_t_ref, bhhn_ref, hseq_ref, h_scr, *,
                           hidden, tt):
    """One grid step == TT timesteps of the GRU recurrence for one batch block.

    gi_ref    : (TT, Bb, 3Hp) f32   precomputed x@W_ih.T + b_ih (+ b_hh[r,z])
    whh_t_ref : (Hp, 3Hp)     bf16  hidden-to-hidden weights, pre-transposed
    bhhn_ref  : (1, Hp)       f32   b_hh for the n-gate (scaled by r -> kept apart)
    hseq_ref  : (TT, Bb, Hp)  bf16  per-timestep hidden states (lane-dense)
    h_scr     : (Bb, Hp)      f32   hidden state carried across time blocks
    """
    @pl.when(pl.program_id(1) == 0)
    def _():
        h_scr[...] = jnp.zeros_like(h_scr)

    whh_t = whh_t_ref[...]                                   # loaded once per block
    # Hoisted broadcast: JAX does not CSE broadcast_in_dim inside the unrolled loop.
    bhh_n = jnp.broadcast_to(bhhn_ref[...], (h_scr.shape[0], hidden))

    def step(i, h):
        gi = gi_ref[i]                                                   # (Bb, 3Hp) f32
        gh = jnp.dot(h.astype(jnp.bfloat16), whh_t,
                     preferred_element_type=jnp.float32)                 # (Bb, 3Hp) f32

        i_r = gi[:, :hidden]
        i_z = gi[:, hidden:2 * hidden]
        i_n = gi[:, 2 * hidden:]
        h_r = gh[:, :hidden]
        h_z = gh[:, hidden:2 * hidden]
        h_n = gh[:, 2 * hidden:] + bhh_n

        # PyTorch nn.GRU equations (gate order [r, z, n]); f32 elementwise math.
        r = jax.nn.sigmoid(i_r + h_r)
        z = jax.nn.sigmoid(i_z + h_z)
        n = jnp.tanh(i_n + r * h_n)
        h_new = (1.0 - z) * n + z * h

        hseq_ref[i] = h_new.astype(hseq_ref.dtype)
        return h_new

    h_scr[...] = lax.fori_loop(0, tt, step, h_scr[...], unroll=min(8, tt))


def spot_model_forward(x, params, num_classes, *, time_block=32, batch_blocks=1,
                       single_buffer_weights=True):
    """x: (B, T, feat_dim) float32, batch_first (PyTorch convention)."""
    B, T, D = x.shape
    H = params["w_hh"].shape[1]
    del num_classes  # output width comes from w_fc

    # Padded sizes: lane-align the hidden dim (gate slices + output lanes),
    # sublane-align the per-core batch tile, block the time axis.
    Hp = -(-H // 128) * 128
    TT = min(time_block, T)
    Tp = -(-T // TT) * TT
    per_blk = -(-B // batch_blocks)
    Bb = max(8, -(-per_blk // 8) * 8)        # batch tile per grid/core block
    Bp = Bb * batch_blocks

    # Per-gate zero padding keeps the [r, z, n] stacking layout intact.
    w_ih = _pad_gate_rows(params["w_ih"], H, Hp)                               # (3Hp, D)
    w_hh = _pad_gate_rows(jnp.pad(params["w_hh"], ((0, 0), (0, Hp - H))), H, Hp)  # (3Hp, Hp)
    b_ih = _pad_gate_rows(params["b_ih"], H, Hp)                               # (3Hp,)
    b_hh = _pad_gate_rows(params["b_hh"], H, Hp)                               # (3Hp,)
    w_fc = jnp.pad(params["w_fc"], ((0, 0), (0, Hp - H)))                      # (C, Hp)

    # Fold b_ih and the r/z slices of b_hh into the hoisted input projection.
    bias_gates = b_ih + jnp.concatenate(
        [b_hh[:2 * Hp], jnp.zeros((Hp,), b_hh.dtype)])

    # (1) Hoisted input projection, produced already padded: pad the small x
    #     (B*T*D) instead of copying the large (T,B,3H) gate tensor afterwards.
    x_p = jnp.pad(x, ((0, Bp - B), (0, Tp - T), (0, 0)))
    gi = jnp.einsum("btd,gd->tbg", x_p, w_ih,
                    preferred_element_type=jnp.float32) + bias_gates           # (Tp,Bp,3Hp)

    # bf16 resident weight: half the VMEM footprint and MXU-native on v6e/v7x;
    # gate elementwise math and all accumulation stay f32 (v5e-safe).
    whh_t = w_hh.T.astype(jnp.bfloat16)                                         # (Hp, 3Hp)
    bhh_n = b_hh[2 * Hp:].reshape(1, Hp).astype(jnp.float32)

    weight_mode = {}
    if single_buffer_weights:
        # Constant-index blocks: single-buffer instead of double-buffering.
        weight_mode = dict(pipeline_mode=pl.Buffered(1))

    kernel = functools.partial(_gru_recurrence_kernel, hidden=Hp, tt=TT)
    hseq = pl.pallas_call(
        kernel,
        out_shape=jax.ShapeDtypeStruct((Tp, Bp, Hp), jnp.bfloat16),
        grid=(batch_blocks, Tp // TT),
        in_specs=[
            pl.BlockSpec((TT, Bb, 3 * Hp), lambda b, t: (t, b, 0)),
            pl.BlockSpec((Hp, 3 * Hp), lambda b, t: (0, 0), **weight_mode),
            pl.BlockSpec((1, Hp), lambda b, t: (0, 0), **weight_mode),
        ],
        out_specs=pl.BlockSpec((TT, Bb, Hp), lambda b, t: (t, b, 0)),
        scratch_shapes=[pltpu.VMEM((Bb, Hp), jnp.float32)],
        compiler_params=pltpu.CompilerParams(
            # Batch blocks are independent (v7x dual-TC); time is a true recurrence.
            dimension_semantics=("parallel", "arbitrary"),
            vmem_limit_bytes=48 * 1024 * 1024,   # safe on v7x's 64 MiB VMEM
        ),
    )(gi, whh_t, bhh_n)

    # (2) Hoisted FC head on the padded slab (padded hidden/batch rows are
    #     harmless); f32 accumulation; slice the small logits tensor instead of
    #     copying hseq. Transpose back to batch-first is folded into the einsum.
    logits = jnp.einsum("tbh,ch->btc", hseq, w_fc,
                        preferred_element_type=jnp.float32) + params["b_fc"]
    return logits[:B, :T]                                                       # (B, T, C)


def spot_model_reference(x, params, num_classes):
    """Pure-JAX f32 reference (lax.scan) implementing PyTorch GRU + Linear."""
    del num_classes
    H = params["w_hh"].shape[1]
    w_ih, w_hh = params["w_ih"], params["w_hh"]
    b_ih, b_hh = params["b_ih"], params["b_hh"]

    def step(h, x_t):                                        # x_t: (B, D)
        gi = x_t @ w_ih.T + b_ih
        gh = h @ w_hh.T + b_hh
        i_r, i_z, i_n = jnp.split(gi, 3, axis=-1)
        h_r, h_z, h_n = jnp.split(gh, 3, axis=-1)
        r = jax.nn.sigmoid(i_r + h_r)
        z = jax.nn.sigmoid(i_z + h_z)
        n = jnp.tanh(i_n + r * h_n)
        h_new = (1.0 - z) * n + z * h
        return h_new, h_new

    B = x.shape[0]
    h0 = jnp.zeros((B, H), jnp.float32)
    _, ys = lax.scan(step, h0, jnp.transpose(x, (1, 0, 2)))  # (T, B, H)
    ys = jnp.transpose(ys, (1, 0, 2))                        # (B, T, H)
    return ys @ params["w_fc"].T + params["b_fc"]


def init_params(key, feat_dim, num_classes):
    hidden_dim = min(feat_dim, MAX_GRU_HIDDEN_DIM)
    k = 1.0 / jnp.sqrt(hidden_dim)
    keys = jax.random.split(key, 6)
    uni = lambda kk, shape: jax.random.uniform(kk, shape, jnp.float32, -k, k)
    return {
        "w_ih": uni(keys[0], (3 * hidden_dim, feat_dim)),
        "w_hh": uni(keys[1], (3 * hidden_dim, hidden_dim)),
        "b_ih": uni(keys[2], (3 * hidden_dim,)),
        "b_hh": uni(keys[3], (3 * hidden_dim,)),
        "w_fc": uni(keys[4], (num_classes, hidden_dim)),
        "b_fc": uni(keys[5], (num_classes,)),
    }


if __name__ == "__main__":
    B, T, FEAT_DIM, NUM_CLASSES = 2, 8, 32, 8

    key = jax.random.PRNGKey(0)
    k_x, k_p = jax.random.split(key)
    x = jax.random.normal(k_x, (B, T, FEAT_DIM), jnp.float32)
    params = init_params(k_p, FEAT_DIM, NUM_CLASSES)

    def run(single_buffer_weights):
        fwd = jax.jit(functools.partial(
            spot_model_forward, num_classes=NUM_CLASSES,
            single_buffer_weights=single_buffer_weights))
        return jax.block_until_ready(fwd(x, params))

    try:
        out = run(True)
    except Exception:
        # Fall back to default double-buffered constant blocks if Buffered(1)
        # single-buffering is unavailable in this jax build.
        out = run(False)

    ref = spot_model_reference(x, params, NUM_CLASSES)
    assert out.shape == (B, T, NUM_CLASSES), out.shape
    # bf16 resident weight + bf16 hidden-state slab => loosened tolerance vs f32 ref.
    assert jnp.allclose(out, ref, atol=5e-2, rtol=5e-2), "mismatch vs JAX reference"

    print("KERNEL_OK")
</pallas_src>

<mosaic_0001>
module attributes {stable_mosaic.version = 11 : i64} {
  func.func @_gru_recurrence_kernel(%arg0: i32, %arg1: i32, %arg2: memref<8x8x384xf32, #tpu.memory_space<vmem>>, %arg3: memref<128x384xbf16, #tpu.memory_space<vmem>>, %arg4: memref<1x128xf32, #tpu.memory_space<vmem>>, %arg5: memref<8x8x128xbf16, #tpu.memory_space<vmem>>, %arg6: memref<8x128xf32, #tpu.memory_space<vmem>>) attributes {dimension_semantics = [#tpu.dimension_semantics<parallel>, #tpu.dimension_semantics<arbitrary>], iteration_bounds = array<i64: 1, 1>, scalar_prefetch = 0 : i64, scratch_operands = 1 : i64, tpu.core_type = #tpu.core_type<tc>, window_params = [{transform_indices = @transform_0, window_bounds = array<i64: 8, 8, 384>}, {pipeline_mode = #tpu.pipeline_mode<synchronous>, transform_indices = @transform_1, window_bounds = array<i64: 128, 384>}, {pipeline_mode = #tpu.pipeline_mode<synchronous>, transform_indices = @transform_2, window_bounds = array<i64: 1, 128>}, {transform_indices = @transform_3, window_bounds = array<i64: 8, 8, 128>}]} {
    %c0_i32 = arith.constant 0 : i32
    %0 = arith.cmpi eq, %arg1, %c0_i32 : i32
    %1 = arith.extui %0 : i1 to i32
    %c0_i32_0 = arith.constant 0 : i32
    %2 = arith.cmpi ne, %1, %c0_i32_0 : i32
    scf.if %2 {
      %cst_72 = arith.constant 0.000000e+00 : f32
      %305 = vector.broadcast %cst_72 : f32 to vector<8x128xf32>
      %c0_73 = arith.constant 0 : index
      %c0_74 = arith.constant 0 : index
      %306 = vector.load %arg6[%c0_73, %c0_74] : memref<8x128xf32, #tpu.memory_space<vmem>>, vector<8x128xf32>
      tpu.vector_store %arg6[%c0_73, %c0_74], %305 {strides = array<i32>} : memref<8x128xf32, #tpu.memory_space<vmem>>, vector<8x128xf32>,
    } else {
    }
    %c0 = arith.constant 0 : index
    %c0_1 = arith.constant 0 : index
    %3 = vector.load %arg3[%c0, %c0_1] : memref<128x384xbf16, #tpu.memory_space<vmem>>, vector<128x384xbf16>
    %c0_2 = arith.constant 0 : index
    %c0_3 = arith.constant 0 : index
    %4 = vector.load %arg4[%c0_2, %c0_3] : memref<1x128xf32, #tpu.memory_space<vmem>>, vector<1x128xf32>
    %5 = vector.shape_cast %4 : vector<1x128xf32> to vector<1x128xf32>
    %6 = vector.broadcast %5 : vector<1x128xf32> to vector<8x128xf32>
    %c0_4 = arith.constant 0 : index
    %c0_5 = arith.constant 0 : index
    %7 = vector.load %arg6[%c0_4, %c0_5] : memref<8x128xf32, #tpu.memory_space<vmem>>, vector<8x128xf32>
    %c0_i32_6 = arith.constant 0 : i32
    %8 = arith.index_cast %c0_i32_6 : i32 to index
    %c0_7 = arith.constant 0 : index
    %c0_8 = arith.constant 0 : index
    %9 = vector.load %arg2[%8, %c0_7, %c0_8] : memref<8x8x384xf32, #tpu.memory_space<vmem>>, vector<1x8x384xf32>
    %10 = vector.shape_cast %9 : vector<1x8x384xf32> to vector<8x384xf32>
    %11 = arith.truncf %7 : vector<8x128xf32> to vector<8x128xbf16>
    %cst = arith.constant dense<0.000000e+00> : vector<8x384xf32>
    %12 = tpu.matmul %11, %3, %cst {dimension_numbers = #tpu.dot_dimension_numbers<[1], [0], [0], [1], [0, 0, 1, 1], [], []>} : vector<8x128xbf16>, vector<128x384xbf16>, vector<8x384xf32> -> vector<8x384xf32>
    %13 = vector.extract_strided_slice %10 {offsets = [0, 0], sizes = [8, 128], strides = [1, 1]} : vector<8x384xf32> to vector<8x128xf32>
    %14 = vector.extract_strided_slice %10 {offsets = [0, 128], sizes = [8, 128], strides = [1, 1]} : vector<8x384xf32> to vector<8x128xf32>
    %15 = vector.extract_strided_slice %10 {offsets = [0, 256], sizes = [8, 128], strides = [1, 1]} : vector<8x384xf32> to vector<8x128xf32>
    %16 = vector.extract_strided_slice %12 {offsets = [0, 0], sizes = [8, 128], strides = [1, 1]} : vector<8x384xf32> to vector<8x128xf32>
    %17 = vector.extract_strided_slice %12 {offsets = [0, 128], sizes = [8, 128], strides = [1, 1]} : vector<8x384xf32> to vector<8x128xf32>
    %18 = vector.extract_strided_slice %12 {offsets = [0, 256], sizes = [8, 128], strides = [1, 1]} : vector<8x384xf32> to vector<8x128xf32>
    %19 = arith.addf %18, %6 : vector<8x128xf32>
    %20 = arith.addf %13, %16 : vector<8x128xf32>
    %21 = arith.negf %20 : vector<8x128xf32>
    %22 = math.exp %21 : vector<8x128xf32>
    %cst_9 = arith.constant 1.000000e+00 : f32
    %23 = vector.broadcast %cst_9 : f32 to vector<8x128xf32>
    %24 = arith.addf %23, %22 : vector<8x128xf32>
    %25 = arith.divf %23, %24 : vector<8x128xf32>
    %26 = arith.addf %14, %17 : vector<8x128xf32>
    %27 = arith.negf %26 : vector<8x128xf32>
    %28 = math.exp %27 : vector<8x128xf32>
    %cst_10 = arith.constant 1.000000e+00 : f32
    %29 = vector.broadcast %cst_10 : f32 to vector<8x128xf32>
    %30 = arith.addf %29, %28 : vector<8x128xf32>
    %31 = arith.divf %29, %30 : vector<8x128xf32>
    %32 = arith.mulf %25, %19 : vector<8x128xf32>
    %33 = arith.addf %15, %32 : vector<8x128xf32>
    %34 = math.tanh %33 : vector<8x128xf32>
    %cst_11 = arith.constant 1.000000e+00 : f32
    %35 = vector.broadcast %cst_11 : f32 to vector<8x128xf32>
    %36 = arith.subf %35, %31 : vector<8x128xf32>
    %37 = arith.mulf %36, %34 : vector<8x128xf32>
    %38 = arith.mulf %31, %7 : vector<8x128xf32>
    %39 = arith.addf %37, %38 : vector<8x128xf32>
    %40 = arith.truncf %39 : vector<8x128xf32> to vector<8x128xbf16>
    %41 = arith.index_cast %c0_i32_6 : i32 to index
    %c0_12 = arith.constant 0 : index
    %c0_13 = arith.constant 0 : index
    %42 = vector.load %arg5[%41, %c0_12, %c0_13] : memref<8x8x128xbf16, #tpu.memory_space<vmem>>, vector<1x8x128xbf16>
    %43 = vector.shape_cast %42 : vector<1x8x128xbf16> to vector<8x128xbf16>
    %44 = vector.shape_cast %40 : vector<8x128xbf16> to vector<1x8x128xbf16>
    tpu.vector_store %arg5[%41, %c0_12, %c0_13], %44 {strides = array<i32>} : memref<8x8x128xbf16, #tpu.memory_space<vmem>>, vector<1x8x128xbf16>,
    %c1_i32 = arith.constant 1 : i32
    %45 = arith.index_cast %c1_i32 : i32 to index
    %c0_14 = arith.constant 0 : index
    %c0_15 = arith.constant 0 : index
    %46 = vector.load %arg2[%45, %c0_14, %c0_15] : memref<8x8x384xf32, #tpu.memory_space<vmem>>, vector<1x8x384xf32>
    %47 = vector.shape_cast %46 : vector<1x8x384xf32> to vector<8x384xf32>
    %48 = arith.truncf %39 : vector<8x128xf32> to vector<8x128xbf16>
    %cst_16 = arith.constant dense<0.000000e+00> : vector<8x384xf32>
    %49 = tpu.matmul %48, %3, %cst_16 {dimension_numbers = #tpu.dot_dimension_numbers<[1], [0], [0], [1], [0, 0, 1, 1], [], []>} : vector<8x128xbf16>, vector<128x384xbf16>, vector<8x384xf32> -> vector<8x384xf32>
    %50 = vector.extract_strided_slice %47 {offsets = [0, 0], sizes = [8, 128], strides = [1, 1]} : vector<8x384xf32> to vector<8x128xf32>
    %51 = vector.extract_strided_slice %47 {offsets = [0, 128], sizes = [8, 128], strides = [1, 1]} : vector<8x384xf32> to vector<8x128xf32>
    %52 = vector.extract_strided_slice %47 {offsets = [0, 256], sizes = [8, 128], strides = [1, 1]} : vector<8x384xf32> to vector<8x128xf32>
    %53 = vector.extract_strided_slice %49 {offsets = [0, 0], sizes = [8, 128], strides = [1, 1]} : vector<8x384xf32> to vector<8x128xf32>
    %54 = vector.extract_strided_slice %49 {offsets = [0, 128], sizes = [8, 128], strides = [1, 1]} : vector<8x384xf32> to vector<8x128xf32>
    %55 = vector.extract_strided_slice %49 {offsets = [0, 256], sizes = [8, 128], strides = [1, 1]} : vector<8x384xf32> to vector<8x128xf32>
    %56 = arith.addf %55, %6 : vector<8x128xf32>
    %57 = arith.addf %50, %53 : vector<8x128xf32>
    %58 = arith.negf %57 : vector<8x128xf32>
    %59 = math.exp %58 : vector<8x128xf32>
    %cst_17 = arith.constant 1.000000e+00 : f32
    %60 = vector.broadcast %cst_17 : f32 to vector<8x128xf32>
    %61 = arith.addf %60, %59 : vector<8x128xf32>
    %62 = arith.divf %60, %61 : vector<8x128xf32>
    %63 = arith.addf %51, %54 : vector<8x128xf32>
    %64 = arith.negf %63 : vector<8x128xf32>
    %65 = math.exp %64 : vector<8x128xf32>
    %cst_18 = arith.constant 1.000000e+00 : f32
    %66 = vector.broadcast %cst_18 : f32 to vector<8x128xf32>
    %67 = arith.addf %66, %65 : vector<8x128xf32>
    %68 = arith.divf %66, %67 : vector<8x128xf32>
    %69 = arith.mulf %62, %56 : vector<8x128xf32>
    %70 = arith.addf %52, %69 : vector<8x128xf32>
    %71 = math.tanh %70 : vector<8x128xf32>
    %cst_19 = arith.constant 1.000000e+00 : f32
    %72 = vector.broadcast %cst_19 : f32 to vector<8x128xf32>
    %73 = arith.subf %72, %68 : vector<8x128xf32>
    %74 = arith.mulf %73, %71 : vector<8x128xf32>
    %75 = arith.mulf %68, %39 : vector<8x128xf32>
    %76 = arith.addf %74, %75 : vector<8x128xf32>
    %77 = arith.truncf %76 : vector<8x128xf32> to vector<8x128xbf16>
    %78 = arith.index_cast %c1_i32 : i32 to index
    %c0_20 = arith.constant 0 : index
    %c0_21 = arith.constant 0 : index
    %79 = vector.load %arg5[%78, %c0_20, %c0_21] : memref<8x8x128xbf16, #tpu.memory_space<vmem>>, vector<1x8x128xbf16>
    %80 = vector.shape_cast %79 : vector<1x8x128xbf16> to vector<8x128xbf16>
    %81 = vector.shape_cast %77 : vector<8x128xbf16> to vector<1x8x128xbf16>
    tpu.vector_store %arg5[%78, %c0_20, %c0_21], %81 {strides = array<i32>} : memref<8x8x128xbf16, #tpu.memory_space<vmem>>, vector<1x8x128xbf16>,
    %c2_i32 = arith.constant 2 : i32
    %82 = arith.index_cast %c2_i32 : i32 to index
    %c0_22 = arith.constant 0 : index
    %c0_23 = arith.constant 0 : index
    %83 = vector.load %arg2[%82, %c0_22, %c0_23] : memref<8x8x384xf32, #tpu.memory_space<vmem>>, vector<1x8x384xf32>
    %84 = vector.shape_cast %83 : vector<1x8x384xf32> to vector<8x384xf32>
    %85 = arith.truncf %76 : vector<8x128xf32> to vector<8x128xbf16>
    %cst_24 = arith.constant dense<0.000000e+00> : vector<8x384xf32>
    %86 = tpu.matmul %85, %3, %cst_24 {dimension_numbers = #tpu.dot_dimension_numbers<[1], [0], [0], [1], [0, 0, 1, 1], [], []>} : vector<8x128xbf16>, vector<128x384xbf16>, vector<8x384xf32> -> vector<8x384xf32>
    %87 = vector.extract_strided_slice %84 {offsets = [0, 0], sizes = [8, 128], strides = [1, 1]} : vector<8x384xf32> to vector<8x128xf32>
    %88 = vector.extract_strided_slice %84 {offsets = [0, 128], sizes = [8, 128], strides = [1, 1]} : vector<8x384xf32> to vector<8x128xf32>
    %89 = vector.extract_strided_slice %84 {offsets = [0, 256], sizes = [8, 128], strides = [1, 1]} : vector<8x384xf32> to vector<8x128xf32>
    %90 = vector.extract_strided_slice %86 {offsets = [0, 0], sizes = [8, 128], strides = [1, 1]} : vector<8x384xf32> to vector<8x128xf32>
    %91 = vector.extract_strided_slice %86 {offsets = [0, 128], sizes = [8, 128], strides = [1, 1]} : vector<8x384xf32> to vector<8x128xf32>
    %92 = vector.extract_strided_slice %86 {offsets = [0, 256], sizes = [8, 128], strides = [1, 1]} : vector<8x384xf32> to vector<8x128xf32>
    %93 = arith.addf %92, %6 : vector<8x128xf32>
    %94 = arith.addf %87, %90 : vector<8x128xf32>
    %95 = arith.negf %94 : vector<8x128xf32>
    %96 = math.exp %95 : vector<8x128xf32>
    %cst_25 = arith.constant 1.000000e+00 : f32
    %97 = vector.broadcast %cst_25 : f32 to vector<8x128xf32>
    %98 = arith.addf %97, %96 : vector<8x128xf32>
    %99 = arith.divf %97, %98 : vector<8x128xf32>
    %100 = arith.addf %88, %91 : vector<8x128xf32>
    %101 = arith.negf %100 : vector<8x128xf32>
    %102 = math.exp %101 : vector<8x128xf32>
    %cst_26 = arith.constant 1.000000e+00 : f32
    %103 = vector.broadcast %cst_26 : f32 to vector<8x128xf32>
    %104 = arith.addf %103, %102 : vector<8x128xf32>
    %105 = arith.divf %103, %104 : vector<8x128xf32>
    %106 = arith.mulf %99, %93 : vector<8x128xf32>
    %107 = arith.addf %89, %106 : vector<8x128xf32>
    %108 = math.tanh %107 : vector<8x128xf32>
    %cst_27 = arith.constant 1.000000e+00 : f32
    %109 = vector.broadcast %cst_27 : f32 to vector<8x128xf32>
    %110 = arith.subf %109, %105 : vector<8x128xf32>
    %111 = arith.mulf %110, %108 : vector<8x128xf32>
    %112 = arith.mulf %105, %76 : vector<8x128xf32>
    %113 = arith.addf %111, %112 : vector<8x128xf32>
    %114 = arith.truncf %113 : vector<8x128xf32> to vector<8x128xbf16>
    %115 = arith.index_cast %c2_i32 : i32 to index
    %c0_28 = arith.constant 0 : index
    %c0_29 = arith.constant 0 : index
    %116 = vector.load %arg5[%115, %c0_28, %c0_29] : memref<8x8x128xbf16, #tpu.memory_space<vmem>>, vector<1x8x128xbf16>
    %117 = vector.shape_cast %116 : vector<1x8x128xbf16> to vector<8x128xbf16>
    %118 = vector.shape_cast %114 : vector<8x128xbf16> to vector<1x8x128xbf16>
    tpu.vector_store %arg5[%115, %c0_28, %c0_29], %118 {strides = array<i32>} : memref<8x8x128xbf16, #tpu.memory_space<vmem>>, vector<1x8x128xbf16>,
    %c3_i32 = arith.constant 3 : i32
    %119 = arith.index_cast %c3_i32 : i32 to index
    %c0_30 = arith.constant 0 : index
    %c0_31 = arith.constant 0 : index
    %120 = vector.load %arg2[%119, %c0_30, %c0_31] : memref<8x8x384xf32, #tpu.memory_space<vmem>>, vector<1x8x384xf32>
    %121 = vector.shape_cast %120 : vector<1x8x384xf32> to vector<8x384xf32>
    %122 = arith.truncf %113 : vector<8x128xf32> to vector<8x128xbf16>
    %cst_32 = arith.constant dense<0.000000e+00> : vector<8x384xf32>
    %123 = tpu.matmul %122, %3, %cst_32 {dimension_numbers = #tpu.dot_dimension_numbers<[1], [0], [0], [1], [0, 0, 1, 1], [], []>} : vector<8x128xbf16>, vector<128x384xbf16>, vector<8x384xf32> -> vector<8x384xf32>
    %124 = vector.extract_strided_slice %121 {offsets = [0, 0], sizes = [8, 128], strides = [1, 1]} : vector<8x384xf32> to vector<8x128xf32>
    %125 = vector.extract_strided_slice %121 {offsets = [0, 128], sizes = [8, 128], strides = [1, 1]} : vector<8x384xf32> to vector<8x128xf32>
    %126 = vector.extract_strided_slice %121 {offsets = [0, 256], sizes = [8, 128], strides = [1, 1]} : vector<8x384xf32> to vector<8x128xf32>
    %127 = vector.extract_strided_slice %123 {offsets = [0, 0], sizes = [8, 128], strides = [1, 1]} : vector<8x384xf32> to vector<8x128xf32>
    %128 = vector.extract_strided_slice %123 {offsets = [0, 128], sizes = [8, 128], strides = [1, 1]} : vector<8x384xf32> to vector<8x128xf32>
    %129 = vector.extract_strided_slice %123 {offsets = [0, 256], sizes = [8, 128], strides = [1, 1]} : vector<8x384xf32> to vector<8x128xf32>
    %130 = arith.addf %129, %6 : vector<8x128xf32>
    %131 = arith.addf %124, %127 : vector<8x128xf32>
    %132 = arith.negf %131 : vector<8x128xf32>
    %133 = math.exp %132 : vector<8x128xf32>
    %cst_33 = arith.constant 1.000000e+00 : f32
    %134 = vector.broadcast %cst_33 : f32 to vector<8x128xf32>
    %135 = arith.addf %134, %133 : vector<8x128xf32>
    %136 = arith.divf %134, %135 : vector<8x128xf32>
    %137 = arith.addf %125, %128 : vector<8x128xf32>
    %138 = arith.negf %137 : vector<8x128xf32>
    %139 = math.exp %138 : vector<8x128xf32>
    %cst_34 = arith.constant 1.000000e+00 : f32
    %140 = vector.broadcast %cst_34 : f32 to vector<8x128xf32>
    %141 = arith.addf %140, %139 : vector<8x128xf32>
    %142 = arith.divf %140, %141 : vector<8x128xf32>
    %143 = arith.mulf %136, %130 : vector<8x128xf32>
    %144 = arith.addf %126, %143 : vector<8x128xf32>
    %145 = math.tanh %144 : vector<8x128xf32>
    %cst_35 = arith.constant 1.000000e+00 : f32
    %146 = vector.broadcast %cst_35 : f32 to vector<8x128xf32>
    %147 = arith.subf %146, %142 : vector<8x128xf32>
    %148 = arith.mulf %147, %145 : vector<8x128xf32>
    %149 = arith.mulf %142, %113 : vector<8x128xf32>
    %150 = arith.addf %148, %149 : vector<8x128xf32>
    %151 = arith.truncf %150 : vector<8x128xf32> to vector<8x128xbf16>
    %152 = arith.index_cast %c3_i32 : i32 to index
    %c0_36 = arith.constant 0 : index
    %c0_37 = arith.constant 0 : index
    %153 = vector.load %arg5[%152, %c0_36, %c0_37] : memref<8x8x128xbf16, #tpu.memory_space<vmem>>, vector<1x8x128xbf16>
    %154 = vector.shape_cast %153 : vector<1x8x128xbf16> to vector<8x128xbf16>
    %155 = vector.shape_cast %151 : vector<8x128xbf16> to vector<1x8x128xbf16>
    tpu.vector_store %arg5[%152, %c0_36, %c0_37], %155 {strides = array<i32>} : memref<8x8x128xbf16, #tpu.memory_space<vmem>>, vector<1x8x128xbf16>,
    %c4_i32 = arith.constant 4 : i32
    %156 = arith.index_cast %c4_i32 : i32 to index
    %c0_38 = arith.constant 0 : index
    %c0_39 = arith.constant 0 : index
    %157 = vector.load %arg2[%156, %c0_38, %c0_39] : memref<8x8x384xf32, #tpu.memory_space<vmem>>, vector<1x8x384xf32>
    %158 = vector.shape_cast %157 : vector<1x8x384xf32> to vector<8x384xf32>
    %159 = arith.truncf %150 : vector<8x128xf32> to vector<8x128xbf16>
    %cst_40 = arith.constant dense<0.000000e+00> : vector<8x384xf32>
    %160 = tpu.matmul %159, %3, %cst_40 {dimension_numbers = #tpu.dot_dimension_numbers<[1], [0], [0], [1], [0, 0, 1, 1], [], []>} : vector<8x128xbf16>, vector<128x384xbf16>, vector<8x384xf32> -> vector<8x384xf32>
    %161 = vector.extract_strided_slice %158 {offsets = [0, 0], sizes = [8, 128], strides = [1, 1]} : vector<8x384xf32> to vector<8x128xf32>
    %162 = vector.extract_strided_slice %158 {offsets = [0, 128], sizes = [8, 128], strides = [1, 1]} : vector<8x384xf32> to vector<8x128xf32>
    %163 = vector.extract_strided_slice %158 {offsets = [0, 256], sizes = [8, 128], strides = [1, 1]} : vector<8x384xf32> to vector<8x128xf32>
    %164 = vector.extract_strided_slice %160 {offsets = [0, 0], sizes = [8, 128], strides = [1, 1]} : vector<8x384xf32> to vector<8x128xf32>
    %165 = vector.extract_strided_slice %160 {offsets = [0, 128], sizes = [8, 128], strides = [1, 1]} : vector<8x384xf32> to vector<8x128xf32>
    %166 = vector.extract_strided_slice %160 {offsets = [0, 256], sizes = [8, 128], strides = [1, 1]} : vector<8x384xf32> to vector<8x128xf32>
    %167 = arith.addf %166, %6 : vector<8x128xf32>
    %168 = arith.addf %161, %164 : vector<8x128xf32>
    %169 = arith.negf %168 : vector<8x128xf32>
    %170 = math.exp %169 : vector<8x128xf32>
    %cst_41 = arith.constant 1.000000e+00 : f32
    %171 = vector.broadcast %cst_41 : f32 to vector<8x128xf32>
    %172 = arith.addf %171, %170 : vector<8x128xf32>
    %173 = arith.divf %171, %172 : vector<8x128xf32>
    %174 = arith.addf %162, %165 : vector<8x128xf32>
    %175 = arith.negf %174 : vector<8x128xf32>
    %176 = math.exp %175 : vector<8x128xf32>
    %cst_42 = arith.constant 1.000000e+00 : f32
    %177 = vector.broadcast %cst_42 : f32 to vector<8x128xf32>
    %178 = arith.addf %177, %176 : vector<8x128xf32>
    %179 = arith.divf %177, %178 : vector<8x128xf32>
    %180 = arith.mulf %173, %167 : vector<8x128xf32>
    %181 = arith.addf %163, %180 : vector<8x128xf32>
    %182 = math.tanh %181 : vector<8x128xf32>
    %cst_43 = arith.constant 1.000000e+00 : f32
    %183 = vector.broadcast %cst_43 : f32 to vector<8x128xf32>
    %184 = arith.subf %183, %179 : vector<8x128xf32>
    %185 = arith.mulf %184, %182 : vector<8x128xf32>
    %186 = arith.mulf %179, %150 : vector<8x128xf32>
    %187 = arith.addf %185, %186 : vector<8x128xf32>
    %188 = arith.truncf %187 : vector<8x128xf32> to vector<8x128xbf16>
    %189 = arith.index_cast %c4_i32 : i32 to index
    %c0_44 = arith.constant 0 : index
    %c0_45 = arith.constant 0 : index
    %190 = vector.load %arg5[%189, %c0_44, %c0_45] : memref<8x8x128xbf16, #tpu.memory_space<vmem>>, vector<1x8x128xbf16>
    %191 = vector.shape_cast %190 : vector<1x8x128xbf16> to vector<8x128xbf16>
    %192 = vector.shape_cast %188 : vector<8x128xbf16> to vector<1x8x128xbf16>
    tpu.vector_store %arg5[%189, %c0_44, %c0_45], %192 {strides = array<i32>} : memref<8x8x128xbf16, #tpu.memory_space<vmem>>, vector<1x8x128xbf16>,
    %c5_i32 = arith.constant 5 : i32
    %193 = arith.index_cast %c5_i32 : i32 to index
    %c0_46 = arith.constant 0 : index
    %c0_47 = arith.constant 0 : index
    %194 = vector.load %arg2[%193, %c0_46, %c0_47] : memref<8x8x384xf32, #tpu.memory_space<vmem>>, vector<1x8x384xf32>
    %195 = vector.shape_cast %194 : vector<1x8x384xf32> to vector<8x384xf32>
    %196 = arith.truncf %187 : vector<8x128xf32> to vector<8x128xbf16>
    %cst_48 = arith.constant dense<0.000000e+00> : vector<8x384xf32>
    %197 = tpu.matmul %196, %3, %cst_48 {dimension_numbers = #tpu.dot_dimension_numbers<[1], [0], [0], [1], [0, 0, 1, 1], [], []>} : vector<8x128xbf16>, vector<128x384xbf16>, vector<8x384xf32> -> vector<8x384xf32>
    %198 = vector.extract_strided_slice %195 {offsets = [0, 0], sizes = [8, 128], strides = [1, 1]} : vector<8x384xf32> to vector<8x128xf32>
    %199 = vector.extract_strided_slice %195 {offsets = [0, 128], sizes = [8, 128], strides = [1, 1]} : vector<8x384xf32> to vector<8x128xf32>
    %200 = vector.extract_strided_slice %195 {offsets = [0, 256], sizes = [8, 128], strides = [1, 1]} : vector<8x384xf32> to vector<8x128xf32>
    %201 = vector.extract_strided_slice %197 {offsets = [0, 0], sizes = [8, 128], strides = [1, 1]} : vector<8x384xf32> to vector<8x128xf32>
    %202 = vector.extract_strided_slice %197 {offsets = [0, 128], sizes = [8, 128], strides = [1, 1]} : vector<8x384xf32> to vector<8x128xf32>
    %203 = vector.extract_strided_slice %197 {offsets = [0, 256], sizes = [8, 128], strides = [1, 1]} : vector<8x384xf32> to vector<8x128xf32>
    %204 = arith.addf %203, %6 : vector<8x128xf32>
    %205 = arith.addf %198, %201 : vector<8x128xf32>
    %206 = arith.negf %205 : vector<8x128xf32>
    %207 = math.exp %206 : vector<8x128xf32>
    %cst_49 = arith.constant 1.000000e+00 : f32
    %208 = vector.broadcast %cst_49 : f32 to vector<8x128xf32>
    %209 = arith.addf %208, %207 : vector<8x128xf32>
    %210 = arith.divf %208, %209 : vector<8x128xf32>
    %211 = arith.addf %199, %202 : vector<8x128xf32>
    %212 = arith.negf %211 : vector<8x128xf32>
    %213 = math.exp %212 : vector<8x128xf32>
    %cst_50 = arith.constant 1.000000e+00 : f32
    %214 = vector.broadcast %cst_50 : f32 to vector<8x128xf32>
    %215 = arith.addf %214, %213 : vector<8x128xf32>
    %216 = arith.divf %214, %215 : vector<8x128xf32>
    %217 = arith.mulf %210, %204 : vector<8x128xf32>
    %218 = arith.addf %200, %217 : vector<8x128xf32>
    %219 = math.tanh %218 : vector<8x128xf32>
    %cst_51 = arith.constant 1.000000e+00 : f32
    %220 = vector.broadcast %cst_51 : f32 to vector<8x128xf32>
    %221 = arith.subf %220, %216 : vector<8x128xf32>
    %222 = arith.mulf %221, %219 : vector<8x128xf32>
    %223 = arith.mulf %216, %187 : vector<8x128xf32>
    %224 = arith.addf %222, %223 : vector<8x128xf32>
    %225 = arith.truncf %224 : vector<8x128xf32> to vector<8x128xbf16>
    %226 = arith.index_cast %c5_i32 : i32 to index
    %c0_52 = arith.constant 0 : index
    %c0_53 = arith.constant 0 : index
    %227 = vector.load %arg5[%226, %c0_52, %c0_53] : memref<8x8x128xbf16, #tpu.memory_space<vmem>>, vector<1x8x128xbf16>
    %228 = vector.shape_cast %227 : vector<1x8x128xbf16> to vector<8x128xbf16>
    %229 = vector.shape_cast %225 : vector<8x128xbf16> to vector<1x8x128xbf16>
    tpu.vector_store %arg5[%226, %c0_52, %c0_53], %229 {strides = array<i32>} : memref<8x8x128xbf16, #tpu.memory_space<vmem>>, vector<1x8x128xbf16>,
    %c6_i32 = arith.constant 6 : i32
    %230 = arith.index_cast %c6_i32 : i32 to index
    %c0_54 = arith.constant 0 : index
    %c0_55 = arith.constant 0 : index
    %231 = vector.load %arg2[%230, %c0_54, %c0_55] : memref<8x8x384xf32, #tpu.memory_space<vmem>>, vector<1x8x384xf32>
    %232 = vector.shape_cast %231 : vector<1x8x384xf32> to vector<8x384xf32>
    %233 = arith.truncf %224 : vector<8x128xf32> to vector<8x128xbf16>
    %cst_56 = arith.constant dense<0.000000e+00> : vector<8x384xf32>
    %234 = tpu.matmul %233, %3, %cst_56 {dimension_numbers = #tpu.dot_dimension_numbers<[1], [0], [0], [1], [0, 0, 1, 1], [], []>} : vector<8x128xbf16>, vector<128x384xbf16>, vector<8x384xf32> -> vector<8x384xf32>
    %235 = vector.extract_strided_slice %232 {offsets = [0, 0], sizes = [8, 128], strides = [1, 1]} : vector<8x384xf32> to vector<8x128xf32>
    %236 = vector.extract_strided_slice %232 {offsets = [0, 128], sizes = [8, 128], strides = [1, 1]} : vector<8x384xf32> to vector<8x128xf32>
    %237 = vector.extract_strided_slice %232 {offsets = [0, 256], sizes = [8, 128], strides = [1, 1]} : vector<8x384xf32> to vector<8x128xf32>
    %238 = vector.extract_strided_slice %234 {offsets = [0, 0], sizes = [8, 128], strides = [1, 1]} : vector<8x384xf32> to vector<8x128xf32>
    %239 = vector.extract_strided_slice %234 {offsets = [0, 128], sizes = [8, 128], strides = [1, 1]} : vector<8x384xf32> to vector<8x128xf32>
    %240 = vector.extract_strided_slice %234 {offsets = [0, 256], sizes = [8, 128], strides = [1, 1]} : vector<8x384xf32> to vector<8x128xf32>
    %241 = arith.addf %240, %6 : vector<8x128xf32>
    %242 = arith.addf %235, %238 : vector<8x128xf32>
    %243 = arith.negf %242 : vector<8x128xf32>
    %244 = math.exp %243 : vector<8x128xf32>
    %cst_57 = arith.constant 1.000000e+00 : f32
    %245 = vector.broadcast %cst_57 : f32 to vector<8x128xf32>
    %246 = arith.addf %245, %244 : vector<8x128xf32>
    %247 = arith.divf %245, %246 : vector<8x128xf32>
    %248 = arith.addf %236, %239 : vector<8x128xf32>
    %249 = arith.negf %248 : vector<8x128xf32>
    %250 = math.exp %249 : vector<8x128xf32>
    %cst_58 = arith.constant 1.000000e+00 : f32
    %251 = vector.broadcast %cst_58 : f32 to vector<8x128xf32>
    %252 = arith.addf %251, %250 : vector<8x128xf32>
    %253 = arith.divf %251, %252 : vector<8x128xf32>
    %254 = arith.mulf %247, %241 : vector<8x128xf32>
    %255 = arith.addf %237, %254 : vector<8x128xf32>
    %256 = math.tanh %255 : vector<8x128xf32>
    %cst_59 = arith.constant 1.000000e+00 : f32
    %257 = vector.broadcast %cst_59 : f32 to vector<8x128xf32>
    %258 = arith.subf %257, %253 : vector<8x128xf32>
    %259 = arith.mulf %258, %256 : vector<8x128xf32>
    %260 = arith.mulf %253, %224 : vector<8x128xf32>
    %261 = arith.addf %259, %260 : vector<8x128xf32>
    %262 = arith.truncf %261 : vector<8x128xf32> to vector<8x128xbf16>
    %263 = arith.index_cast %c6_i32 : i32 to index
    %c0_60 = arith.constant 0 : index
    %c0_61 = arith.constant 0 : index
    %264 = vector.load %arg5[%263, %c0_60, %c0_61] : memref<8x8x128xbf16, #tpu.memory_space<vmem>>, vector<1x8x128xbf16>
    %265 = vector.shape_cast %264 : vector<1x8x128xbf16> to vector<8x128xbf16>
    %266 = vector.shape_cast %262 : vector<8x128xbf16> to vector<1x8x128xbf16>
    tpu.vector_store %arg5[%263, %c0_60, %c0_61], %266 {strides = array<i32>} : memref<8x8x128xbf16, #tpu.memory_space<vmem>>, vector<1x8x128xbf16>,
    %c7_i32 = arith.constant 7 : i32
    %267 = arith.index_cast %c7_i32 : i32 to index
    %c0_62 = arith.constant 0 : index
    %c0_63 = arith.constant 0 : index
    %268 = vector.load %arg2[%267, %c0_62, %c0_63] : memref<8x8x384xf32, #tpu.memory_space<vmem>>, vector<1x8x384xf32>
    %269 = vector.shape_cast %268 : vector<1x8x384xf32> to vector<8x384xf32>
    %270 = arith.truncf %261 : vector<8x128xf32> to vector<8x128xbf16>
    %cst_64 = arith.constant dense<0.000000e+00> : vector<8x384xf32>
    %271 = tpu.matmul %270, %3, %cst_64 {dimension_numbers = #tpu.dot_dimension_numbers<[1], [0], [0], [1], [0, 0, 1, 1], [], []>} : vector<8x128xbf16>, vector<128x384xbf16>, vector<8x384xf32> -> vector<8x384xf32>
    %272 = vector.extract_strided_slice %269 {offsets = [0, 0], sizes = [8, 128], strides = [1, 1]} : vector<8x384xf32> to vector<8x128xf32>
    %273 = vector.extract_strided_slice %269 {offsets = [0, 128], sizes = [8, 128], strides = [1, 1]} : vector<8x384xf32> to vector<8x128xf32>
    %274 = vector.extract_strided_slice %269 {offsets = [0, 256], sizes = [8, 128], strides = [1, 1]} : vector<8x384xf32> to vector<8x128xf32>
    %275 = vector.extract_strided_slice %271 {offsets = [0, 0], sizes = [8, 128], strides = [1, 1]} : vector<8x384xf32> to vector<8x128xf32>
    %276 = vector.extract_strided_slice %271 {offsets = [0, 128], sizes = [8, 128], strides = [1, 1]} : vector<8x384xf32> to vector<8x128xf32>
    %277 = vector.extract_strided_slice %271 {offsets = [0, 256], sizes = [8, 128], strides = [1, 1]} : vector<8x384xf32> to vector<8x128xf32>
    %278 = arith.addf %277, %6 : vector<8x128xf32>
    %279 = arith.addf %272, %275 : vector<8x128xf32>
    %280 = arith.negf %279 : vector<8x128xf32>
    %281 = math.exp %280 : vector<8x128xf32>
    %cst_65 = arith.constant 1.000000e+00 : f32
    %282 = vector.broadcast %cst_65 : f32 to vector<8x128xf32>
    %283 = arith.addf %282, %281 : vector<8x128xf32>
    %284 = arith.divf %282, %283 : vector<8x128xf32>
    %285 = arith.addf %273, %276 : vector<8x128xf32>
    %286 = arith.negf %285 : vector<8x128xf32>
    %287 = math.exp %286 : vector<8x128xf32>
    %cst_66 = arith.constant 1.000000e+00 : f32
    %288 = vector.broadcast %cst_66 : f32 to vector<8x128xf32>
    %289 = arith.addf %288, %287 : vector<8x128xf32>
    %290 = arith.divf %288, %289 : vector<8x128xf32>
    %291 = arith.mulf %284, %278 : vector<8x128xf32>
    %292 = arith.addf %274, %291 : vector<8x128xf32>
    %293 = math.tanh %292 : vector<8x128xf32>
    %cst_67 = arith.constant 1.000000e+00 : f32
    %294 = vector.broadcast %cst_67 : f32 to vector<8x128xf32>
    %295 = arith.subf %294, %290 : vector<8x128xf32>
    %296 = arith.mulf %295, %293 : vector<8x128xf32>
    %297 = arith.mulf %290, %261 : vector<8x128xf32>
    %298 = arith.addf %296, %297 : vector<8x128xf32>
    %299 = arith.truncf %298 : vector<8x128xf32> to vector<8x128xbf16>
    %300 = arith.index_cast %c7_i32 : i32 to index
    %c0_68 = arith.constant 0 : index
    %c0_69 = arith.constant 0 : index
    %301 = vector.load %arg5[%300, %c0_68, %c0_69] : memref<8x8x128xbf16, #tpu.memory_space<vmem>>, vector<1x8x128xbf16>
    %302 = vector.shape_cast %301 : vector<1x8x128xbf16> to vector<8x128xbf16>
    %303 = vector.shape_cast %299 : vector<8x128xbf16> to vector<1x8x128xbf16>
    tpu.vector_store %arg5[%300, %c0_68, %c0_69], %303 {strides = array<i32>} : memref<8x8x128xbf16, #tpu.memory_space<vmem>>, vector<1x8x128xbf16>,
    %c8_i32 = arith.constant 8 : i32
    %c0_70 = arith.constant 0 : index
    %c0_71 = arith.constant 0 : index
    %304 = vector.load %arg6[%c0_70, %c0_71] : memref<8x128xf32, #tpu.memory_space<vmem>>, vector<8x128xf32>
    tpu.vector_store %arg6[%c0_70, %c0_71], %298 {strides = array<i32>} : memref<8x128xf32, #tpu.memory_space<vmem>>, vector<8x128xf32>,
    return
  }
  func.func @transform_0(%arg0: i32, %arg1: i32) -> (i32, i32, i32) {
    %c0_i32 = arith.constant 0 : i32
    %c0_i32_0 = arith.constant 0 : i32
    return %arg1, %arg0, %c0_i32 : i32, i32, i32
  }
  func.func @transform_1(%arg0: i32, %arg1: i32) -> (i32, i32) {
    %c0_i32 = arith.constant 0 : i32
    %c0_i32_0 = arith.constant 0 : i32
    %c0_i32_1 = arith.constant 0 : i32
    return %c0_i32, %c0_i32_0 : i32, i32
  }
  func.func @transform_2(%arg0: i32, %arg1: i32) -> (i32, i32) {
    %c0_i32 = arith.constant 0 : i32
    %c0_i32_0 = arith.constant 0 : i32
    %c0_i32_1 = arith.constant 0 : i32
    return %c0_i32, %c0_i32_0 : i32, i32
  }
  func.func @transform_3(%arg0: i32, %arg1: i32) -> (i32, i32, i32) {
    %c0_i32 = arith.constant 0 : i32
    %c0_i32_0 = arith.constant 0 : i32
    return %arg1, %arg0, %c0_i32 : i32, i32, i32
  }
}

module attributes {stable_mosaic.version = 11 : i64} {
  func.func @_gru_recurrence_kernel(%arg0: i32, %arg1: i32, %arg2: memref<8x8x384xf32, #tpu.memory_space<vmem>>, %arg3: memref<128x384xbf16, #tpu.memory_space<vmem>>, %arg4: memref<1x128xf32, #tpu.memory_space<vmem>>, %arg5: memref<8x8x128xbf16, #tpu.memory_space<vmem>>, %arg6: memref<8x128xf32, #tpu.memory_space<vmem>>) attributes {dimension_semantics = [#tpu.dimension_semantics<parallel>, #tpu.dimension_semantics<arbitrary>], iteration_bounds = array<i64: 1, 1>, scalar_prefetch = 0 : i64, scratch_operands = 1 : i64, tpu.core_type = #tpu.core_type<tc>, window_params = [{transform_indices = @transform_0, window_bounds = array<i64: 8, 8, 384>}, {pipeline_mode = #tpu.pipeline_mode<synchronous>, transform_indices = @transform_1, window_bounds = array<i64: 128, 384>}, {pipeline_mode = #tpu.pipeline_mode<synchronous>, transform_indices = @transform_2, window_bounds = array<i64: 1, 128>}, {transform_indices = @transform_3, window_bounds = array<i64: 8, 8, 128>}]} {
    %c0_i32 = arith.constant 0 : i32
    %0 = arith.cmpi eq, %arg1, %c0_i32 : i32
    %1 = arith.extui %0 : i1 to i32
    %c0_i32_0 = arith.constant 0 : i32
    %2 = arith.cmpi ne, %1, %c0_i32_0 : i32
    scf.if %2 {
      %cst_72 = arith.constant 0.000000e+00 : f32
      %305 = vector.broadcast %cst_72 : f32 to vector<8x128xf32>
      %c0_73 = arith.constant 0 : index
      %c0_74 = arith.constant 0 : index
      %306 = vector.load %arg6[%c0_73, %c0_74] : memref<8x128xf32, #tpu.memory_space<vmem>>, vector<8x128xf32>
      tpu.vector_store %arg6[%c0_73, %c0_74], %305 {strides = array<i32>} : memref<8x128xf32, #tpu.memory_space<vmem>>, vector<8x128xf32>,
    } else {
    }
    %c0 = arith.constant 0 : index
    %c0_1 = arith.constant 0 : index
    %3 = vector.load %arg3[%c0, %c0_1] : memref<128x384xbf16, #tpu.memory_space<vmem>>, vector<128x384xbf16>
    %c0_2 = arith.constant 0 : index
    %c0_3 = arith.constant 0 : index
    %4 = vector.load %arg4[%c0_2, %c0_3] : memref<1x128xf32, #tpu.memory_space<vmem>>, vector<1x128xf32>
    %5 = vector.shape_cast %4 : vector<1x128xf32> to vector<1x128xf32>
    %6 = vector.broadcast %5 : vector<1x128xf32> to vector<8x128xf32>
    %c0_4 = arith.constant 0 : index
    %c0_5 = arith.constant 0 : index
    %7 = vector.load %arg6[%c0_4, %c0_5] : memref<8x128xf32, #tpu.memory_space<vmem>>, vector<8x128xf32>
    %c0_i32_6 = arith.constant 0 : i32
    %8 = arith.index_cast %c0_i32_6 : i32 to index
    %c0_7 = arith.constant 0 : index
    %c0_8 = arith.constant 0 : index
    %9 = vector.load %arg2[%8, %c0_7, %c0_8] : memref<8x8x384xf32, #tpu.memory_space<vmem>>, vector<1x8x384xf32>
    %10 = vector.shape_cast %9 : vector<1x8x384xf32> to vector<8x384xf32>
    %11 = arith.truncf %7 : vector<8x128xf32> to vector<8x128xbf16>
    %cst = arith.constant dense<0.000000e+00> : vector<8x384xf32>
    %12 = tpu.matmul %11, %3, %cst {dimension_numbers = #tpu.dot_dimension_numbers<[1], [0], [0], [1], [0, 0, 1, 1], [], []>} : vector<8x128xbf16>, vector<128x384xbf16>, vector<8x384xf32> -> vector<8x384xf32>
    %13 = vector.extract_strided_slice %10 {offsets = [0, 0], sizes = [8, 128], strides = [1, 1]} : vector<8x384xf32> to vector<8x128xf32>
    %14 = vector.extract_strided_slice %10 {offsets = [0, 128], sizes = [8, 128], strides = [1, 1]} : vector<8x384xf32> to vector<8x128xf32>
    %15 = vector.extract_strided_slice %10 {offsets = [0, 256], sizes = [8, 128], strides = [1, 1]} : vector<8x384xf32> to vector<8x128xf32>
    %16 = vector.extract_strided_slice %12 {offsets = [0, 0], sizes = [8, 128], strides = [1, 1]} : vector<8x384xf32> to vector<8x128xf32>
    %17 = vector.extract_strided_slice %12 {offsets = [0, 128], sizes = [8, 128], strides = [1, 1]} : vector<8x384xf32> to vector<8x128xf32>
    %18 = vector.extract_strided_slice %12 {offsets = [0, 256], sizes = [8, 128], strides = [1, 1]} : vector<8x384xf32> to vector<8x128xf32>
    %19 = arith.addf %18, %6 : vector<8x128xf32>
    %20 = arith.addf %13, %16 : vector<8x128xf32>
    %21 = arith.negf %20 : vector<8x128xf32>
    %22 = math.exp %21 : vector<8x128xf32>
    %cst_9 = arith.constant 1.000000e+00 : f32
    %23 = vector.broadcast %cst_9 : f32 to vector<8x128xf32>
    %24 = arith.addf %23, %22 : vector<8x128xf32>
    %25 = arith.divf %23, %24 : vector<8x128xf32>
    %26 = arith.addf %14, %17 : vector<8x128xf32>
    %27 = arith.negf %26 : vector<8x128xf32>
    %28 = math.exp %27 : vector<8x128xf32>
    %cst_10 = arith.constant 1.000000e+00 : f32
    %29 = vector.broadcast %cst_10 : f32 to vector<8x128xf32>
    %30 = arith.addf %29, %28 : vector<8x128xf32>
    %31 = arith.divf %29, %30 : vector<8x128xf32>
    %32 = arith.mulf %25, %19 : vector<8x128xf32>
    %33 = arith.addf %15, %32 : vector<8x128xf32>
    %34 = math.tanh %33 : vector<8x128xf32>
    %cst_11 = arith.constant 1.000000e+00 : f32
    %35 = vector.broadcast %cst_11 : f32 to vector<8x128xf32>
    %36 = arith.subf %35, %31 : vector<8x128xf32>
    %37 = arith.mulf %36, %34 : vector<8x128xf32>
    %38 = arith.mulf %31, %7 : vector<8x128xf32>
    %39 = arith.addf %37, %38 : vector<8x128xf32>
    %40 = arith.truncf %39 : vector<8x128xf32> to vector<8x128xbf16>
    %41 = arith.index_cast %c0_i32_6 : i32 to index
    %c0_12 = arith.constant 0 : index
    %c0_13 = arith.constant 0 : index
    %42 = vector.load %arg5[%41, %c0_12, %c0_13] : memref<8x8x128xbf16, #tpu.memory_space<vmem>>, vector<1x8x128xbf16>
    %43 = vector.shape_cast %42 : vector<1x8x128xbf16> to vector<8x128xbf16>
    %44 = vector.shape_cast %40 : vector<8x128xbf16> to vector<1x8x128xbf16>
    tpu.vector_store %arg5[%41, %c0_12, %c0_13], %44 {strides = array<i32>} : memref<8x8x128xbf16, #tpu.memory_space<vmem>>, vector<1x8x128xbf16>,
    %c1_i32 = arith.constant 1 : i32
    %45 = arith.index_cast %c1_i32 : i32 to index
    %c0_14 = arith.constant 0 : index
    %c0_15 = arith.constant 0 : index
    %46 = vector.load %arg2[%45, %c0_14, %c0_15] : memref<8x8x384xf32, #tpu.memory_space<vmem>>, vector<1x8x384xf32>
    %47 = vector.shape_cast %46 : vector<1x8x384xf32> to vector<8x384xf32>
    %48 = arith.truncf %39 : vector<8x128xf32> to vector<8x128xbf16>
    %cst_16 = arith.constant dense<0.000000e+00> : vector<8x384xf32>
    %49 = tpu.matmul %48, %3, %cst_16 {dimension_numbers = #tpu.dot_dimension_numbers<[1], [0], [0], [1], [0, 0, 1, 1], [], []>} : vector<8x128xbf16>, vector<128x384xbf16>, vector<8x384xf32> -> vector<8x384xf32>
    %50 = vector.extract_strided_slice %47 {offsets = [0, 0], sizes = [8, 128], strides = [1, 1]} : vector<8x384xf32> to vector<8x128xf32>
    %51 = vector.extract_strided_slice %47 {offsets = [0, 128], sizes = [8, 128], strides = [1, 1]} : vector<8x384xf32> to vector<8x128xf32>
    %52 = vector.extract_strided_slice %47 {offsets = [0, 256], sizes = [8, 128], strides = [1, 1]} : vector<8x384xf32> to vector<8x128xf32>
    %53 = vector.extract_strided_slice %49 {offsets = [0, 0], sizes = [8, 128], strides = [1, 1]} : vector<8x384xf32> to vector<8x128xf32>
    %54 = vector.extract_strided_slice %49 {offsets = [0, 128], sizes = [8, 128], strides = [1, 1]} : vector<8x384xf32> to vector<8x128xf32>
    %55 = vector.extract_strided_slice %49 {offsets = [0, 256], sizes = [8, 128], strides = [1, 1]} : vector<8x384xf32> to vector<8x128xf32>
    %56 = arith.addf %55, %6 : vector<8x128xf32>
    %57 = arith.addf %50, %53 : vector<8x128xf32>
    %58 = arith.negf %57 : vector<8x128xf32>
    %59 = math.exp %58 : vector<8x128xf32>
    %cst_17 = arith.constant 1.000000e+00 : f32
    %60 = vector.broadcast %cst_17 : f32 to vector<8x128xf32>
    %61 = arith.addf %60, %59 : vector<8x128xf32>
    %62 = arith.divf %60, %61 : vector<8x128xf32>
    %63 = arith.addf %51, %54 : vector<8x128xf32>
    %64 = arith.negf %63 : vector<8x128xf32>
    %65 = math.exp %64 : vector<8x128xf32>
    %cst_18 = arith.constant 1.000000e+00 : f32
    %66 = vector.broadcast %cst_18 : f32 to vector<8x128xf32>
    %67 = arith.addf %66, %65 : vector<8x128xf32>
    %68 = arith.divf %66, %67 : vector<8x128xf32>
    %69 = arith.mulf %62, %56 : vector<8x128xf32>
    %70 = arith.addf %52, %69 : vector<8x128xf32>
    %71 = math.tanh %70 : vector<8x128xf32>
    %cst_19 = arith.constant 1.000000e+00 : f32
    %72 = vector.broadcast %cst_19 : f32 to vector<8x128xf32>
    %73 = arith.subf %72, %68 : vector<8x128xf32>
    %74 = arith.mulf %73, %71 : vector<8x128xf32>
    %75 = arith.mulf %68, %39 : vector<8x128xf32>
    %76 = arith.addf %74, %75 : vector<8x128xf32>
    %77 = arith.truncf %76 : vector<8x128xf32> to vector<8x128xbf16>
    %78 = arith.index_cast %c1_i32 : i32 to index
    %c0_20 = arith.constant 0 : index
    %c0_21 = arith.constant 0 : index
    %79 = vector.load %arg5[%78, %c0_20, %c0_21] : memref<8x8x128xbf16, #tpu.memory_space<vmem>>, vector<1x8x128xbf16>
    %80 = vector.shape_cast %79 : vector<1x8x128xbf16> to vector<8x128xbf16>
    %81 = vector.shape_cast %77 : vector<8x128xbf16> to vector<1x8x128xbf16>
    tpu.vector_store %arg5[%78, %c0_20, %c0_21], %81 {strides = array<i32>} : memref<8x8x128xbf16, #tpu.memory_space<vmem>>, vector<1x8x128xbf16>,
    %c2_i32 = arith.constant 2 : i32
    %82 = arith.index_cast %c2_i32 : i32 to index
    %c0_22 = arith.constant 0 : index
    %c0_23 = arith.constant 0 : index
    %83 = vector.load %arg2[%82, %c0_22, %c0_23] : memref<8x8x384xf32, #tpu.memory_space<vmem>>, vector<1x8x384xf32>
    %84 = vector.shape_cast %83 : vector<1x8x384xf32> to vector<8x384xf32>
    %85 = arith.truncf %76 : vector<8x128xf32> to vector<8x128xbf16>
    %cst_24 = arith.constant dense<0.000000e+00> : vector<8x384xf32>
    %86 = tpu.matmul %85, %3, %cst_24 {dimension_numbers = #tpu.dot_dimension_numbers<[1], [0], [0], [1], [0, 0, 1, 1], [], []>} : vector<8x128xbf16>, vector<128x384xbf16>, vector<8x384xf32> -> vector<8x384xf32>
    %87 = vector.extract_strided_slice %84 {offsets = [0, 0], sizes = [8, 128], strides = [1, 1]} : vector<8x384xf32> to vector<8x128xf32>
    %88 = vector.extract_strided_slice %84 {offsets = [0, 128], sizes = [8, 128], strides = [1, 1]} : vector<8x384xf32> to vector<8x128xf32>
    %89 = vector.extract_strided_slice %84 {offsets = [0, 256], sizes = [8, 128], strides = [1, 1]} : vector<8x384xf32> to vector<8x128xf32>
    %90 = vector.extract_strided_slice %86 {offsets = [0, 0], sizes = [8, 128], strides = [1, 1]} : vector<8x384xf32> to vector<8x128xf32>
    %91 = vector.extract_strided_slice %86 {offsets = [0, 128], sizes = [8, 128], strides = [1, 1]} : vector<8x384xf32> to vector<8x128xf32>
    %92 = vector.extract_strided_slice %86 {offsets = [0, 256], sizes = [8, 128], strides = [1, 1]} : vector<8x384xf32> to vector<8x128xf32>
    %93 = arith.addf %92, %6 : vector<8x128xf32>
    %94 = arith.addf %87, %90 : vector<8x128xf32>
    %95 = arith.negf %94 : vector<8x128xf32>
    %96 = math.exp %95 : vector<8x128xf32>
    %cst_25 = arith.constant 1.000000e+00 : f32
    %97 = vector.broadcast %cst_25 : f32 to vector<8x128xf32>
    %98 = arith.addf %97, %96 : vector<8x128xf32>
    %99 = arith.divf %97, %98 : vector<8x128xf32>
    %100 = arith.addf %88, %91 : vector<8x128xf32>
    %101 = arith.negf %100 : vector<8x128xf32>
    %102 = math.exp %101 : vector<8x128xf32>
    %cst_26 = arith.constant 1.000000e+00 : f32
    %103 = vector.broadcast %cst_26 : f32 to vector<8x128xf32>
    %104 = arith.addf %103, %102 : vector<8x128xf32>
    %105 = arith.divf %103, %104 : vector<8x128xf32>
    %106 = arith.mulf %99, %93 : vector<8x128xf32>
    %107 = arith.addf %89, %106 : vector<8x128xf32>
    %108 = math.tanh %107 : vector<8x128xf32>
    %cst_27 = arith.constant 1.000000e+00 : f32
    %109 = vector.broadcast %cst_27 : f32 to vector<8x128xf32>
    %110 = arith.subf %109, %105 : vector<8x128xf32>
    %111 = arith.mulf %110, %108 : vector<8x128xf32>
    %112 = arith.mulf %105, %76 : vector<8x128xf32>
    %113 = arith.addf %111, %112 : vector<8x128xf32>
    %114 = arith.truncf %113 : vector<8x128xf32> to vector<8x128xbf16>
    %115 = arith.index_cast %c2_i32 : i32 to index
    %c0_28 = arith.constant 0 : index
    %c0_29 = arith.constant 0 : index
    %116 = vector.load %arg5[%115, %c0_28, %c0_29] : memref<8x8x128xbf16, #tpu.memory_space<vmem>>, vector<1x8x128xbf16>
    %117 = vector.shape_cast %116 : vector<1x8x128xbf16> to vector<8x128xbf16>
    %118 = vector.shape_cast %114 : vector<8x128xbf16> to vector<1x8x128xbf16>
    tpu.vector_store %arg5[%115, %c0_28, %c0_29], %118 {strides = array<i32>} : memref<8x8x128xbf16, #tpu.memory_space<vmem>>, vector<1x8x128xbf16>,
    %c3_i32 = arith.constant 3 : i32
    %119 = arith.index_cast %c3_i32 : i32 to index
    %c0_30 = arith.constant 0 : index
    %c0_31 = arith.constant 0 : index
    %120 = vector.load %arg2[%119, %c0_30, %c0_31] : memref<8x8x384xf32, #tpu.memory_space<vmem>>, vector<1x8x384xf32>
    %121 = vector.shape_cast %120 : vector<1x8x384xf32> to vector<8x384xf32>
    %122 = arith.truncf %113 : vector<8x128xf32> to vector<8x128xbf16>
    %cst_32 = arith.constant dense<0.000000e+00> : vector<8x384xf32>
    %123 = tpu.matmul %122, %3, %cst_32 {dimension_numbers = #tpu.dot_dimension_numbers<[1], [0], [0], [1], [0, 0, 1, 1], [], []>} : vector<8x128xbf16>, vector<128x384xbf16>, vector<8x384xf32> -> vector<8x384xf32>
    %124 = vector.extract_strided_slice %121 {offsets = [0, 0], sizes = [8, 128], strides = [1, 1]} : vector<8x384xf32> to vector<8x128xf32>
    %125 = vector.extract_strided_slice %121 {offsets = [0, 128], sizes = [8, 128], strides = [1, 1]} : vector<8x384xf32> to vector<8x128xf32>
    %126 = vector.extract_strided_slice %121 {offsets = [0, 256], sizes = [8, 128], strides = [1, 1]} : vector<8x384xf32> to vector<8x128xf32>
    %127 = vector.extract_strided_slice %123 {offsets = [0, 0], sizes = [8, 128], strides = [1, 1]} : vector<8x384xf32> to vector<8x128xf32>
    %128 = vector.extract_strided_slice %123 {offsets = [0, 128], sizes = [8, 128], strides = [1, 1]} : vector<8x384xf32> to vector<8x128xf32>
    %129 = vector.extract_strided_slice %123 {offsets = [0, 256], sizes = [8, 128], strides = [1, 1]} : vector<8x384xf32> to vector<8x128xf32>
    %130 = arith.addf %129, %6 : vector<8x128xf32>
    %131 = arith.addf %124, %127 : vector<8x128xf32>
    %132 = arith.negf %131 : vector<8x128xf32>
    %133 = math.exp %132 : vector<8x128xf32>
    %cst_33 = arith.constant 1.000000e+00 : f32
    %134 = vector.broadcast %cst_33 : f32 to vector<8x128xf32>
    %135 = arith.addf %134, %133 : vector<8x128xf32>
    %136 = arith.divf %134, %135 : vector<8x128xf32>
    %137 = arith.addf %125, %128 : vector<8x128xf32>
    %138 = arith.negf %137 : vector<8x128xf32>
    %139 = math.exp %138 : vector<8x128xf32>
    %cst_34 = arith.constant 1.000000e+00 : f32
    %140 = vector.broadcast %cst_34 : f32 to vector<8x128xf32>
    %141 = arith.addf %140, %139 : vector<8x128xf32>
    %142 = arith.divf %140, %141 : vector<8x128xf32>
    %143 = arith.mulf %136, %130 : vector<8x128xf32>
    %144 = arith.addf %126, %143 : vector<8x128xf32>
    %145 = math.tanh %144 : vector<8x128xf32>
    %cst_35 = arith.constant 1.000000e+00 : f32
    %146 = vector.broadcast %cst_35 : f32 to vector<8x128xf32>
    %147 = arith.subf %146, %142 : vector<8x128xf32>
    %148 = arith.mulf %147, %145 : vector<8x128xf32>
    %149 = arith.mulf %142, %113 : vector<8x128xf32>
    %150 = arith.addf %148, %149 : vector<8x128xf32>
    %151 = arith.truncf %150 : vector<8x128xf32> to vector<8x128xbf16>
    %152 = arith.index_cast %c3_i32 : i32 to index
    %c0_36 = arith.constant 0 : index
    %c0_37 = arith.constant 0 : index
    %153 = vector.load %arg5[%152, %c0_36, %c0_37] : memref<8x8x128xbf16, #tpu.memory_space<vmem>>, vector<1x8x128xbf16>
    %154 = vector.shape_cast %153 : vector<1x8x128xbf16> to vector<8x128xbf16>
    %155 = vector.shape_cast %151 : vector<8x128xbf16> to vector<1x8x128xbf16>
    tpu.vector_store %arg5[%152, %c0_36, %c0_37], %155 {strides = array<i32>} : memref<8x8x128xbf16, #tpu.memory_space<vmem>>, vector<1x8x128xbf16>,
    %c4_i32 = arith.constant 4 : i32
    %156 = arith.index_cast %c4_i32 : i32 to index
    %c0_38 = arith.constant 0 : index
    %c0_39 = arith.constant 0 : index
    %157 = vector.load %arg2[%156, %c0_38, %c0_39] : memref<8x8x384xf32, #tpu.memory_space<vmem>>, vector<1x8x384xf32>
    %158 = vector.shape_cast %157 : vector<1x8x384xf32> to vector<8x384xf32>
    %159 = arith.truncf %150 : vector<8x128xf32> to vector<8x128xbf16>
    %cst_40 = arith.constant dense<0.000000e+00> : vector<8x384xf32>
    %160 = tpu.matmul %159, %3, %cst_40 {dimension_numbers = #tpu.dot_dimension_numbers<[1], [0], [0], [1], [0, 0, 1, 1], [], []>} : vector<8x128xbf16>, vector<128x384xbf16>, vector<8x384xf32> -> vector<8x384xf32>
    %161 = vector.extract_strided_slice %158 {offsets = [0, 0], sizes = [8, 128], strides = [1, 1]} : vector<8x384xf32> to vector<8x128xf32>
    %162 = vector.extract_strided_slice %158 {offsets = [0, 128], sizes = [8, 128], strides = [1, 1]} : vector<8x384xf32> to vector<8x128xf32>
    %163 = vector.extract_strided_slice %158 {offsets = [0, 256], sizes = [8, 128], strides = [1, 1]} : vector<8x384xf32> to vector<8x128xf32>
    %164 = vector.extract_strided_slice %160 {offsets = [0, 0], sizes = [8, 128], strides = [1, 1]} : vector<8x384xf32> to vector<8x128xf32>
    %165 = vector.extract_strided_slice %160 {offsets = [0, 128], sizes = [8, 128], strides = [1, 1]} : vector<8x384xf32> to vector<8x128xf32>
    %166 = vector.extract_strided_slice %160 {offsets = [0, 256], sizes = [8, 128], strides = [1, 1]} : vector<8x384xf32> to vector<8x128xf32>
    %167 = arith.addf %166, %6 : vector<8x128xf32>
    %168 = arith.addf %161, %164 : vector<8x128xf32>
    %169 = arith.negf %168 : vector<8x128xf32>
    %170 = math.exp %169 : vector<8x128xf32>
    %cst_41 = arith.constant 1.000000e+00 : f32
    %171 = vector.broadcast %cst_41 : f32 to vector<8x128xf32>
    %172 = arith.addf %171, %170 : vector<8x128xf32>
    %173 = arith.divf %171, %172 : vector<8x128xf32>
    %174 = arith.addf %162, %165 : vector<8x128xf32>
    %175 = arith.negf %174 : vector<8x128xf32>
    %176 = math.exp %175 : vector<8x128xf32>
    %cst_42 = arith.constant 1.000000e+00 : f32
    %177 = vector.broadcast %cst_42 : f32 to vector<8x128xf32>
    %178 = arith.addf %177, %176 : vector<8x128xf32>
    %179 = arith.divf %177, %178 : vector<8x128xf32>
    %180 = arith.mulf %173, %167 : vector<8x128xf32>
    %181 = arith.addf %163, %180 : vector<8x128xf32>
    %182 = math.tanh %181 : vector<8x128xf32>
    %cst_43 = arith.constant 1.000000e+00 : f32
    %183 = vector.broadcast %cst_43 : f32 to vector<8x128xf32>
    %184 = arith.subf %183, %179 : vector<8x128xf32>
    %185 = arith.mulf %184, %182 : vector<8x128xf32>
    %186 = arith.mulf %179, %150 : vector<8x128xf32>
    %187 = arith.addf %185, %186 : vector<8x128xf32>
    %188 = arith.truncf %187 : vector<8x128xf32> to vector<8x128xbf16>
    %189 = arith.index_cast %c4_i32 : i32 to index
    %c0_44 = arith.constant 0 : index
    %c0_45 = arith.constant 0 : index
    %190 = vector.load %arg5[%189, %c0_44, %c0_45] : memref<8x8x128xbf16, #tpu.memory_space<vmem>>, vector<1x8x128xbf16>
    %191 = vector.shape_cast %190 : vector<1x8x128xbf16> to vector<8x128xbf16>
    %192 = vector.shape_cast %188 : vector<8x128xbf16> to vector<1x8x128xbf16>
    tpu.vector_store %arg5[%189, %c0_44, %c0_45], %192 {strides = array<i32>} : memref<8x8x128xbf16, #tpu.memory_space<vmem>>, vector<1x8x128xbf16>,
    %c5_i32 = arith.constant 5 : i32
    %193 = arith.index_cast %c5_i32 : i32 to index
    %c0_46 = arith.constant 0 : index
    %c0_47 = arith.constant 0 : index
    %194 = vector.load %arg2[%193, %c0_46, %c0_47] : memref<8x8x384xf32, #tpu.memory_space<vmem>>, vector<1x8x384xf32>
    %195 = vector.shape_cast %194 : vector<1x8x384xf32> to vector<8x384xf32>
    %196 = arith.truncf %187 : vector<8x128xf32> to vector<8x128xbf16>
    %cst_48 = arith.constant dense<0.000000e+00> : vector<8x384xf32>
    %197 = tpu.matmul %196, %3, %cst_48 {dimension_numbers = #tpu.dot_dimension_numbers<[1], [0], [0], [1], [0, 0, 1, 1], [], []>} : vector<8x128xbf16>, vector<128x384xbf16>, vector<8x384xf32> -> vector<8x384xf32>
    %198 = vector.extract_strided_slice %195 {offsets = [0, 0], sizes = [8, 128], strides = [1, 1]} : vector<8x384xf32> to vector<8x128xf32>
    %199 = vector.extract_strided_slice %195 {offsets = [0, 128], sizes = [8, 128], strides = [1, 1]} : vector<8x384xf32> to vector<8x128xf32>
    %200 = vector.extract_strided_slice %195 {offsets = [0, 256], sizes = [8, 128], strides = [1, 1]} : vector<8x384xf32> to vector<8x128xf32>
    %201 = vector.extract_strided_slice %197 {offsets = [0, 0], sizes = [8, 128], strides = [1, 1]} : vector<8x384xf32> to vector<8x128xf32>
    %202 = vector.extract_strided_slice %197 {offsets = [0, 128], sizes = [8, 128], strides = [1, 1]} : vector<8x384xf32> to vector<8x128xf32>
    %203 = vector.extract_strided_slice %197 {offsets = [0, 256], sizes = [8, 128], strides = [1, 1]} : vector<8x384xf32> to vector<8x128xf32>
    %204 = arith.addf %203, %6 : vector<8x128xf32>
    %205 = arith.addf %198, %201 : vector<8x128xf32>
    %206 = arith.negf %205 : vector<8x128xf32>
    %207 = math.exp %206 : vector<8x128xf32>
    %cst_49 = arith.constant 1.000000e+00 : f32
    %208 = vector.broadcast %cst_49 : f32 to vector<8x128xf32>
    %209 = arith.addf %208, %207 : vector<8x128xf32>
    %210 = arith.divf %208, %209 : vector<8x128xf32>
    %211 = arith.addf %199, %202 : vector<8x128xf32>
    %212 = arith.negf %211 : vector<8x128xf32>
    %213 = math.exp %212 : vector<8x128xf32>
    %cst_50 = arith.constant 1.000000e+00 : f32
    %214 = vector.broadcast %cst_50 : f32 to vector<8x128xf32>
    %215 = arith.addf %214, %213 : vector<8x128xf32>
    %216 = arith.divf %214, %215 : vector<8x128xf32>
    %217 = arith.mulf %210, %204 : vector<8x128xf32>
    %218 = arith.addf %200, %217 : vector<8x128xf32>
    %219 = math.tanh %218 : vector<8x128xf32>
    %cst_51 = arith.constant 1.000000e+00 : f32
    %220 = vector.broadcast %cst_51 : f32 to vector<8x128xf32>
    %221 = arith.subf %220, %216 : vector<8x128xf32>
    %222 = arith.mulf %221, %219 : vector<8x128xf32>
    %223 = arith.mulf %216, %187 : vector<8x128xf32>
    %224 = arith.addf %222, %223 : vector<8x128xf32>
    %225 = arith.truncf %224 : vector<8x128xf32> to vector<8x128xbf16>
    %226 = arith.index_cast %c5_i32 : i32 to index
    %c0_52 = arith.constant 0 : index
    %c0_53 = arith.constant 0 : index
    %227 = vector.load %arg5[%226, %c0_52, %c0_53] : memref<8x8x128xbf16, #tpu.memory_space<vmem>>, vector<1x8x128xbf16>
    %228 = vector.shape_cast %227 : vector<1x8x128xbf16> to vector<8x128xbf16>
    %229 = vector.shape_cast %225 : vector<8x128xbf16> to vector<1x8x128xbf16>
    tpu.vector_store %arg5[%226, %c0_52, %c0_53], %229 {strides = array<i32>} : memref<8x8x128xbf16, #tpu.memory_space<vmem>>, vector<1x8x128xbf16>,
    %c6_i32 = arith.constant 6 : i32
    %230 = arith.index_cast %c6_i32 : i32 to index
    %c0_54 = arith.constant 0 : index
    %c0_55 = arith.constant 0 : index
    %231 = vector.load %arg2[%230, %c0_54, %c0_55] : memref<8x8x384xf32, #tpu.memory_space<vmem>>, vector<1x8x384xf32>
    %232 = vector.shape_cast %231 : vector<1x8x384xf32> to vector<8x384xf32>
    %233 = arith.truncf %224 : vector<8x128xf32> to vector<8x128xbf16>
    %cst_56 = arith.constant dense<0.000000e+00> : vector<8x384xf32>
    %234 = tpu.matmul %233, %3, %cst_56 {dimension_numbers = #tpu.dot_dimension_numbers<[1], [0], [0], [1], [0, 0, 1, 1], [], []>} : vector<8x128xbf16>, vector<128x384xbf16>, vector<8x384xf32> -> vector<8x384xf32>
    %235 = vector.extract_strided_slice %232 {offsets = [0, 0], sizes = [8, 128], strides = [1, 1]} : vector<8x384xf32> to vector<8x128xf32>
    %236 = vector.extract_strided_slice %232 {offsets = [0, 128], sizes = [8, 128], strides = [1, 1]} : vector<8x384xf32> to vector<8x128xf32>
    %237 = vector.extract_strided_slice %232 {offsets = [0, 256], sizes = [8, 128], strides = [1, 1]} : vector<8x384xf32> to vector<8x128xf32>
    %238 = vector.extract_strided_slice %234 {offsets = [0, 0], sizes = [8, 128], strides = [1, 1]} : vector<8x384xf32> to vector<8x128xf32>
    %239 = vector.extract_strided_slice %234 {offsets = [0, 128], sizes = [8, 128], strides = [1, 1]} : vector<8x384xf32> to vector<8x128xf32>
    %240 = vector.extract_strided_slice %234 {offsets = [0, 256], sizes = [8, 128], strides = [1, 1]} : vector<8x384xf32> to vector<8x128xf32>
    %241 = arith.addf %240, %6 : vector<8x128xf32>
    %242 = arith.addf %235, %238 : vector<8x128xf32>
    %243 = arith.negf %242 : vector<8x128xf32>
    %244 = math.exp %243 : vector<8x128xf32>
    %cst_57 = arith.constant 1.000000e+00 : f32
    %245 = vector.broadcast %cst_57 : f32 to vector<8x128xf32>
    %246 = arith.addf %245, %244 : vector<8x128xf32>
    %247 = arith.divf %245, %246 : vector<8x128xf32>
    %248 = arith.addf %236, %239 : vector<8x128xf32>
    %249 = arith.negf %248 : vector<8x128xf32>
    %250 = math.exp %249 : vector<8x128xf32>
    %cst_58 = arith.constant 1.000000e+00 : f32
    %251 = vector.broadcast %cst_58 : f32 to vector<8x128xf32>
    %252 = arith.addf %251, %250 : vector<8x128xf32>
    %253 = arith.divf %251, %252 : vector<8x128xf32>
    %254 = arith.mulf %247, %241 : vector<8x128xf32>
    %255 = arith.addf %237, %254 : vector<8x128xf32>
    %256 = math.tanh %255 : vector<8x128xf32>
    %cst_59 = arith.constant 1.000000e+00 : f32
    %257 = vector.broadcast %cst_59 : f32 to vector<8x128xf32>
    %258 = arith.subf %257, %253 : vector<8x128xf32>
    %259 = arith.mulf %258, %256 : vector<8x128xf32>
    %260 = arith.mulf %253, %224 : vector<8x128xf32>
    %261 = arith.addf %259, %260 : vector<8x128xf32>
    %262 = arith.truncf %261 : vector<8x128xf32> to vector<8x128xbf16>
    %263 = arith.index_cast %c6_i32 : i32 to index
    %c0_60 = arith.constant 0 : index
    %c0_61 = arith.constant 0 : index
    %264 = vector.load %arg5[%263, %c0_60, %c0_61] : memref<8x8x128xbf16, #tpu.memory_space<vmem>>, vector<1x8x128xbf16>
    %265 = vector.shape_cast %264 : vector<1x8x128xbf16> to vector<8x128xbf16>
    %266 = vector.shape_cast %262 : vector<8x128xbf16> to vector<1x8x128xbf16>
    tpu.vector_store %arg5[%263, %c0_60, %c0_61], %266 {strides = array<i32>} : memref<8x8x128xbf16, #tpu.memory_space<vmem>>, vector<1x8x128xbf16>,
    %c7_i32 = arith.constant 7 : i32
    %267 = arith.index_cast %c7_i32 : i32 to index
    %c0_62 = arith.constant 0 : index
    %c0_63 = arith.constant 0 : index
    %268 = vector.load %arg2[%267, %c0_62, %c0_63] : memref<8x8x384xf32, #tpu.memory_space<vmem>>, vector<1x8x384xf32>
    %269 = vector.shape_cast %268 : vector<1x8x384xf32> to vector<8x384xf32>
    %270 = arith.truncf %261 : vector<8x128xf32> to vector<8x128xbf16>
    %cst_64 = arith.constant dense<0.000000e+00> : vector<8x384xf32>
    %271 = tpu.matmul %270, %3, %cst_64 {dimension_numbers = #tpu.dot_dimension_numbers<[1], [0], [0], [1], [0, 0, 1, 1], [], []>} : vector<8x128xbf16>, vector<128x384xbf16>, vector<8x384xf32> -> vector<8x384xf32>
    %272 = vector.extract_strided_slice %269 {offsets = [0, 0], sizes = [8, 128], strides = [1, 1]} : vector<8x384xf32> to vector<8x128xf32>
    %273 = vector.extract_strided_slice %269 {offsets = [0, 128], sizes = [8, 128], strides = [1, 1]} : vector<8x384xf32> to vector<8x128xf32>
    %274 = vector.extract_strided_slice %269 {offsets = [0, 256], sizes = [8, 128], strides = [1, 1]} : vector<8x384xf32> to vector<8x128xf32>
    %275 = vector.extract_strided_slice %271 {offsets = [0, 0], sizes = [8, 128], strides = [1, 1]} : vector<8x384xf32> to vector<8x128xf32>
    %276 = vector.extract_strided_slice %271 {offsets = [0, 128], sizes = [8, 128], strides = [1, 1]} : vector<8x384xf32> to vector<8x128xf32>
    %277 = vector.extract_strided_slice %271 {offsets = [0, 256], sizes = [8, 128], strides = [1, 1]} : vector<8x384xf32> to vector<8x128xf32>
    %278 = arith.addf %277, %6 : vector<8x128xf32>
    %279 = arith.addf %272, %275 : vector<8x128xf32>
    %280 = arith.negf %279 : vector<8x128xf32>
    %281 = math.exp %280 : vector<8x128xf32>
    %cst_65 = arith.constant 1.000000e+00 : f32
    %282 = vector.broadcast %cst_65 : f32 to vector<8x128xf32>
    %283 = arith.addf %282, %281 : vector<8x128xf32>
    %284 = arith.divf %282, %283 : vector<8x128xf32>
    %285 = arith.addf %273, %276 : vector<8x128xf32>
    %286 = arith.negf %285 : vector<8x128xf32>
    %287 = math.exp %286 : vector<8x128xf32>
    %cst_66 = arith.constant 1.000000e+00 : f32
    %288 = vector.broadcast %cst_66 : f32 to vector<8x128xf32>
    %289 = arith.addf %288, %287 : vector<8x128xf32>
    %290 = arith.divf %288, %289 : vector<8x128xf32>
    %291 = arith.mulf %284, %278 : vector<8x128xf32>
    %292 = arith.addf %274, %291 : vector<8x128xf32>
    %293 = math.tanh %292 : vector<8x128xf32>
    %cst_67 = arith.constant 1.000000e+00 : f32
    %294 = vector.broadcast %cst_67 : f32 to vector<8x128xf32>
    %295 = arith.subf %294, %290 : vector<8x128xf32>
    %296 = arith.mulf %295, %293 : vector<8x128xf32>
    %297 = arith.mulf %290, %261 : vector<8x128xf32>
    %298 = arith.addf %296, %297 : vector<8x128xf32>
    %299 = arith.truncf %298 : vector<8x128xf32> to vector<8x128xbf16>
    %300 = arith.index_cast %c7_i32 : i32 to index
    %c0_68 = arith.constant 0 : index
    %c0_69 = arith.constant 0 : index
    %301 = vector.load %arg5[%300, %c0_68, %c0_69] : memref<8x8x128xbf16, #tpu.memory_space<vmem>>, vector<1x8x128xbf16>
    %302 = vector.shape_cast %301 : vector<1x8x128xbf16> to vector<8x128xbf16>
    %303 = vector.shape_cast %299 : vector<8x128xbf16> to vector<1x8x128xbf16>
    tpu.vector_store %arg5[%300, %c0_68, %c0_69], %303 {strides = array<i32>} : memref<8x8x128xbf16, #tpu.memory_space<vmem>>, vector<1x8x128xbf16>,
    %c8_i32 = arith.constant 8 : i32
    %c0_70 = arith.constant 0 : index
    %c0_71 = arith.constant 0 : index
    %304 = vector.load %arg6[%c0_70, %c0_71] : memref<8x128xf32, #tpu.memory_space<vmem>>, vector<8x128xf32>
    tpu.vector_store %arg6[%c0_70, %c0_71], %298 {strides = array<i32>} : memref<8x128xf32, #tpu.memory_space<vmem>>, vector<8x128xf32>,
    return
  }
  func.func @transform_0(%arg0: i32, %arg1: i32) -> (i32, i32, i32) {
    %c0_i32 = arith.constant 0 : i32
    %c0_i32_0 = arith.constant 0 : i32
    return %arg1, %arg0, %c0_i32 : i32, i32, i32
  }
  func.func @transform_1(%arg0: i32, %arg1: i32) -> (i32, i32) {
    %c0_i32 = arith.constant 0 : i32
    %c0_i32_0 = arith.constant 0 : i32
    %c0_i32_1 = arith.constant 0 : i32
    return %c0_i32, %c0_i32_0 : i32, i32
  }
  func.func @transform_2(%arg0: i32, %arg1: i32) -> (i32, i32) {
    %c0_i32 = arith.constant 0 : i32
    %c0_i32_0 = arith.constant 0 : i32
    %c0_i32_1 = arith.constant 0 : i32
    return %c0_i32, %c0_i32_0 : i32, i32
  }
  func.func @transform_3(%arg0: i32, %arg1: i32) -> (i32, i32, i32) {
    %c0_i32 = arith.constant 0 : i32
    %c0_i32_0 = arith.constant 0 : i32
    return %arg1, %arg0, %c0_i32 : i32, i32, i32
  }
}

</mosaic_0001>

<bundles_post_ra>
// kernel: spot_model_forward.1
= control target key start
LH: loop header
LB: loop body
LE: loop exit
PB: predicated region body
PF: predicated region fallthrough
CT: control target
= control target key end

     0   :  { %v1495_v1 = vmov 0.0   ;;  %v1496_v2 = vmov 0   ;;  %vm1497_vm0 = vmmov 0   ;;  %v1498_v25 = vmov 0.0|0.0   ;;  %s2070_s1 = inlined_call_operand.vmem [shape: bf16[128,384], index: 1, kind: input, shape index: {}]   ;;  %s2071_s0 = inlined_call_operand.vmem [shape: f32[8,8,384], index: 0, kind: input, shape index: {}]   ;;  %s2072_s2 = inlined_call_operand.vmem [shape: f32[1,128], index: 2, kind: input, shape index: {}]   ;;  %s2073_s3 = inlined_call_operand.vmem [shape: bf16[8,8,128], index: 3, kind: output, shape index: {}]  }
   0x1   :  { %v1522_v0 = vld [vmem:[%s2070_s1 + $0x4] ss:$12 sps:$4 sm:$0xff]   ;;  %1213 = vmatprep.subr.bf16.mxu1 %v1495_v1  ;;  %224 = vmatprep.mubr.bf16.mxu0 %v1496_v2  ;;  %v1529_v3 = vld [vmem:[%s2070_s1] ss:$12 sps:$4 sm:$0xff]   ;;  %v1537_v4 = vld [vmem:[%s2070_s1 + $0x1c] ss:$12 sps:$4 sm:$0xff]  }
   0x2   :  { %1229 = vmatprep.mubr.msk.bf16.mxu1 %vm1497_vm0, %v1495_v1  ;;  %192 = vmatprep.subr.bf16.mxu0 %v1522_v0  ;;  %v1543_v5 = vld [vmem:[%s2070_s1 + $0x18] ss:$12 sps:$4 sm:$0xff]   ;;  %v1549_v6 = vld [vmem:[%s2070_s1 + $0x34] ss:$12 sps:$4 sm:$0xff]   ;;  %v1555_v7 = vld [vmem:[%s2070_s1 + $0x30] ss:$12 sps:$4 sm:$0xff]  }
   0x3   :  { %193 = vmatpush1.bf16.msra.mxu0 %v1529_v3  ;;  %v1561_v8 = vld [vmem:[%s2070_s1 + $0x4c] ss:$12 sps:$4 sm:$0xff]   ;;  %v1566_v9 = vld [vmem:[%s2070_s1 + $0x8] ss:$12 sps:$4 sm:$0xff]   ;;  %v1579_v11 = vld [vmem:[%s2070_s1 + $0x64] ss:$12 sps:$4 sm:$0xff]  }
   0x4   :  { %194 = vmatprep.subr.bf16.mxu0 %v1537_v4  ;;  %v1572_v10 = vld [vmem:[%s2070_s1 + $0x48] ss:$12 sps:$4 sm:$0xff]   ;;  %1214 = vmatpush3.bf16.msra.mxu1 %v1566_v9  ;;  %v1585_v12 = vld [vmem:[%s2070_s1 + $0x20] ss:$12 sps:$4 sm:$0xff]   ;;  %v1597_v14 = vld [vmem:[%s2070_s1 + $0x38] ss:$12 sps:$4 sm:$0xff]  }
   0x5   :  { %1215 = vmatprep.subr.bf16.mxu1 %v1495_v1  ;;  %v1590_v13 = vld [vmem:[%s2070_s1 + $0x60] ss:$12 sps:$4 sm:$0xff]   ;;  %v1603_v15 = vld [vmem:[%s2070_s1 + $0x7c] ss:$12 sps:$4 sm:$0xff]   ;;  %v1610_v16 = vld [vmem:[%s2070_s1 + $0x78] ss:$12 sps:$4 sm:$0xff]  }
   0x6   :  { %v1616_v17 = vld [vmem:[%s2070_s1 + $0x50] ss:$12 sps:$4 sm:$0xff]   ;;  %v1622_v18 = vld [vmem:[%s2070_s1 + $0x94] ss:$12 sps:$4 sm:$0xff]   ;;  %v1641_v21 = vld [vmem:[%s2070_s1 + $0xac] ss:$12 sps:$4 sm:$0xff]  }
   0x7   :  { %195 = vmatpush1.bf16.msra.mxu0 %v1543_v5  ;;  %v1629_v19 = vld [vmem:[%s2070_s1 + $0x90] ss:$12 sps:$4 sm:$0xff]   ;;  %v1635_v20 = vld [vmem:[%s2070_s1 + $0x68] ss:$12 sps:$4 sm:$0xff]   ;;  %v1654_v23 = vld [vmem:[%s2070_s1 + $0x80] ss:$12 sps:$4 sm:$0xff]  }
   0x8   :  { %196 = vmatprep.subr.bf16.mxu0 %v1549_v6  ;;  %1216 = vmatpush3.bf16.msra.mxu1 %v1585_v12  ;;  %v1648_v22 = vld [vmem:[%s2070_s1 + $0xa8] ss:$12 sps:$4 sm:$0xff]   ;;  %v1663_v24 = vld [vmem:[%s2070_s1 + $0x98] ss:$12 sps:$4 sm:$0xff]   ;;  %v1671_v26 = vld [vmem:[%s2070_s1 + $0xb0] ss:$12 sps:$4 sm:$0xff]  }
   0x9   :  { %1217 = vmatprep.subr.bf16.mxu1 %v1495_v1  ;;  %v60_v27 = vld [vmem:[%s2071_s0] sm:$0xff]  ;;  %v61_v30 = vld [vmem:[%s2071_s0 + $0x8] sm:$0xff]  ;;  %v62_v48 = vld [vmem:[%s2071_s0 + $0x10] sm:$0xff] }
   0xa   :  { %v1720_v44 = vld [vmem:[%s2072_s2] ss:$0 sm:$0xff]  ;;  %v1099_v58 = vld [vmem:[%s2071_s0 + $0x18] sm:$0xff] }
   0xb   :  { %197 = vmatpush1.bf16.msra.mxu0 %v1555_v7  ;;  %v1100_v62 = vld [vmem:[%s2071_s0 + $0x20] sm:$0xff] }
   0xc   :  { %198 = vmatprep.subr.bf16.mxu0 %v1561_v8  ;;  %1218 = vmatpush3.bf16.msra.mxu1 %v1597_v14 }
   0xd   :  { %1219 = vmatprep.subr.bf16.mxu1 %v1495_v1 }
   0xf   :  { %199 = vmatpush1.bf16.msra.mxu0 %v1572_v10 }
  0x10   :  { %200 = vmatprep.subr.bf16.mxu0 %v1579_v11  ;;  %1220 = vmatpush3.bf16.msra.mxu1 %v1616_v17 }
  0x11   :  { %1221 = vmatprep.subr.bf16.mxu1 %v1495_v1 }
  0x13   :  { %201 = vmatpush1.bf16.msra.mxu0 %v1590_v13 }
  0x14   :  { %202 = vmatprep.subr.bf16.mxu0 %v1603_v15  ;;  %1222 = vmatpush3.bf16.msra.mxu1 %v1635_v20 }
  0x15   :  { %1223 = vmatprep.subr.bf16.mxu1 %v1495_v1 }
  0x17   :  { %203 = vmatpush1.bf16.msra.mxu0 %v1610_v16 }
  0x18   :  { %204 = vmatprep.subr.bf16.mxu0 %v1622_v18  ;;  %1224 = vmatpush3.bf16.msra.mxu1 %v1654_v23 }
  0x19   :  { %1225 = vmatprep.subr.bf16.mxu1 %v1495_v1 }
  0x1b   :  { %205 = vmatpush1.bf16.msra.mxu0 %v1629_v19 }
  0x1c   :  { %206 = vmatprep.subr.bf16.mxu0 %v1641_v21  ;;  %1226 = vmatpush3.bf16.msra.mxu1 %v1663_v24 }
  0x1d   :  { %1227 = vmatprep.subr.bf16.mxu1 %v1495_v1 }
  0x1f   :  { %207 = vmatpush1.bf16.msra.mxu0 %v1648_v22 }
  0x20   :  { %301 = vmatprep.subr.bf16.mxu0 %v1522_v0  ;;  %1228 = vmatpush3.bf16.msra.mxu1 %v1671_v26 }
  0x21   :  { %1233 = vmatprep.subr.bf16.mxu1 %v1495_v1 }
  0x22   :  { %225 = vmatmul.mubr.bf16.vlgmr.msra.gmra.mrb[0].mxu0 %v1498_v25 }
  0x23   :  { %302 = vmatpush1.bf16.msra.mxu0 %v1529_v3  ;;  %333 = vmatprep.mubr.bf16.mxu0 %v1496_v2 }
  0x24   :  { %303 = vmatprep.subr.bf16.mxu0 %v1537_v4  ;;  %1230 = vmatmul.mubr.bf16.vlgmr.msra.gmra.mrb[0].mxu1 %v1498_v25 }
  0x25   :  { %1234 = vmatpush3.bf16.msra.mxu1 %v1566_v9  ;;  %1249 = vmatprep.mubr.msk.bf16.mxu1 %vm1497_vm0, %v1495_v1 }
  0x26   :  { %1235 = vmatprep.subr.bf16.mxu1 %v1495_v1 }
  0x27   :  { %304 = vmatpush1.bf16.msra.mxu0 %v1543_v5 }
  0x28   :  { %305 = vmatprep.subr.bf16.mxu0 %v1549_v6 }
  0x29   :  { %1236 = vmatpush3.bf16.msra.mxu1 %v1585_v12 }
  0x2a   :  { %1237 = vmatprep.subr.bf16.mxu1 %v1495_v1 }
  0x2b   :  { %306 = vmatpush1.bf16.msra.mxu0 %v1555_v7 }
  0x2c   :  { %307 = vmatprep.subr.bf16.mxu0 %v1561_v8 }
  0x2d   :  { %1238 = vmatpush3.bf16.msra.mxu1 %v1597_v14 }
  0x2e   :  { %1239 = vmatprep.subr.bf16.mxu1 %v1495_v1 }
  0x2f   :  { %308 = vmatpush1.bf16.msra.mxu0 %v1572_v10 }
  0x30   :  { %309 = vmatprep.subr.bf16.mxu0 %v1579_v11 }
  0x31   :  { %1240 = vmatpush3.bf16.msra.mxu1 %v1616_v17 }
  0x32   :  { %1241 = vmatprep.subr.bf16.mxu1 %v1495_v1 }
  0x33   :  { %310 = vmatpush1.bf16.msra.mxu0 %v1590_v13 }
  0x34   :  { %311 = vmatprep.subr.bf16.mxu0 %v1603_v15 }
  0x35   :  { %1242 = vmatpush3.bf16.msra.mxu1 %v1635_v20 }
  0x36   :  { %1243 = vmatprep.subr.bf16.mxu1 %v1495_v1 }
  0x37   :  { %312 = vmatpush1.bf16.msra.mxu0 %v1610_v16 }
  0x38   :  { %313 = vmatprep.subr.bf16.mxu0 %v1622_v18 }
  0x39   :  { %1244 = vmatpush3.bf16.msra.mxu1 %v1654_v23 }
  0x3a   :  { %1245 = vmatprep.subr.bf16.mxu1 %v1495_v1 }
  0x3b   :  { %314 = vmatpush1.bf16.msra.mxu0 %v1629_v19 }
  0x3c   :  { %315 = vmatprep.subr.bf16.mxu0 %v1641_v21 }
  0x3d   :  { %1246 = vmatpush3.bf16.msra.mxu1 %v1663_v24 }
  0x3e   :  { %1247 = vmatprep.subr.bf16.mxu1 %v1495_v1 }
  0x3f   :  { %316 = vmatpush1.bf16.msra.mxu0 %v1648_v22 }
  0x40   :  { %411 = vmatprep.subr.bf16.mxu0 %v1522_v0 }
  0x41   :  { %1248 = vmatpush3.bf16.msra.mxu1 %v1671_v26 }
  0x42   :  { %1253 = vmatprep.subr.bf16.mxu1 %v1495_v1 }
  0xf5   :  { %v226_v28 = vpop.f32.mrb[0].mxu0 }
  0xf6   :  { %v274_v29 = vadd.f32 %v226_v28, %v60_v27  ;;  %v228_v31 = vpop.f32.mrb[1].mxu0 }
  0xf7   :  { %v230_v32 = vpop.f32.mrb[2].mxu0  ;;  %v281_v35 = vadd.f32 %v228_v31, %v61_v30  ;;  %v267_v37 = vpop.f32.mrb[0].mxu1 }
  0xf8   :  { %v1097_v33 = vmul.f32 -1.442695, %v274_v29  ;;  %v231_v34 = vpop.f32.mrb[3].mxu0  ;;  %v1231_v38 = vpop.f32.mrb[1].mxu1  ;;  %v273_v46 = vadd.f32 %v1720_v44, %v267_v37 }
  0xf9   :  { %v1098_v36 = vmul.f32 -1.442695, %v281_v35  ;;  %v270_v39 = vpop.f32.mrb[2].mxu1 }
  0xfa   :  { %1409 = vpow2.f32 %v1097_v33  ;;  %v1232_v40 = vpop.f32.mrb[3].mxu1 }
  0xfb   :  { %1411 = vpow2.f32 %v1098_v36  ;;  %v1101_v40 = vld [vmem:[%s2071_s0 + $0x28] sm:$0xff] }
 0x104   :  { %v1410_v41 = vpop.eup %1409 }
 0x105   :  { %v278_v42 = vadd.f32 1.0, %v1410_v41  ;;  %v1412_v43 = vpop.eup %1411 }
 0x106   :  { %v285_v45 = vadd.f32 1.0, %v1412_v43 }
 0x107   :  { %1413 = vrcp.f32 %v278_v42 }
 0x108   :  { %1415 = vrcp.f32 %v285_v45 }
 0x111   :  { %v1414_v47 = vpop.eup %1413 }
 0x112   :  { %v288_v49 = vmul.f32 %v1414_v47, %v273_v46  ;;  %v1416_v51 = vpop.eup %1415 }
 0x113   :  { %v291_v52 = vsub.f32 1.0, %v1416_v51  ;;  %v293_v55 = vmul.f32 0.0, %v1416_v51  ;;  %v1105_v51 = vld [vmem:[%s2071_s0 + $0x30] sm:$0xff] }
 0x114   :  { %v289_v50 = vadd.f32 %v288_v49, %v62_v48 }
 0x116   :  { %1417 = vtanh.f32 %v289_v50 }
 0x120   :  { %v1418_v53 = vpop.eup %1417 }
 0x121   :  { %v292_v54 = vmul.f32 %v1418_v53, %v291_v52 }
 0x123   :  { %v1726_v56 = vadd.f32 %v293_v55, %v292_v54  ;;  %v1106_v55 = vld [vmem:[%s2071_s0 + $0x38] sm:$0xff] }
 0x125   :  { %v295_v57 = vpack.c.bf16 %v1726_v56, %v1726_v56 }
 0x127   :  { %296 = vst [vmem:[%s2073_s3] sm:$0xf] %v295_v57  ;;  %334 = vmatmul.mubr.bf16.vlgmr.msra.gmra.mrb[4].mxu0 %v295_v57  ;;  %1250 = vmatmul.mubr.bf16.vlgmr.msra.gmra.mrb[4].mxu1 %v295_v57 }
 0x128   :  { %412 = vmatpush1.bf16.msra.mxu0 %v1529_v3  ;;  %1254 = vmatpush3.bf16.msra.mxu1 %v1566_v9 }
 0x129   :  { %413 = vmatprep.subr.bf16.mxu0 %v1537_v4  ;;  %1255 = vmatprep.subr.bf16.mxu1 %v1495_v1 }
 0x12a   :  { %443 = vmatprep.mubr.bf16.mxu0 %v1496_v2  ;;  %1269 = vmatprep.mubr.msk.bf16.mxu1 %vm1497_vm0, %v1495_v1 }
 0x12c   :  { %414 = vmatpush1.bf16.msra.mxu0 %v1543_v5  ;;  %1256 = vmatpush3.bf16.msra.mxu1 %v1585_v12 }
 0x12d   :  { %415 = vmatprep.subr.bf16.mxu0 %v1549_v6  ;;  %1257 = vmatprep.subr.bf16.mxu1 %v1495_v1 }
 0x130   :  { %416 = vmatpush1.bf16.msra.mxu0 %v1555_v7  ;;  %1258 = vmatpush3.bf16.msra.mxu1 %v1597_v14 }
 0x131   :  { %417 = vmatprep.subr.bf16.mxu0 %v1561_v8  ;;  %1259 = vmatprep.subr.bf16.mxu1 %v1495_v1 }
 0x134   :  { %418 = vmatpush1.bf16.msra.mxu0 %v1572_v10  ;;  %1260 = vmatpush3.bf16.msra.mxu1 %v1616_v17 }
 0x135   :  { %419 = vmatprep.subr.bf16.mxu0 %v1579_v11  ;;  %1261 = vmatprep.subr.bf16.mxu1 %v1495_v1 }
 0x138   :  { %420 = vmatpush1.bf16.msra.mxu0 %v1590_v13  ;;  %1262 = vmatpush3.bf16.msra.mxu1 %v1635_v20 }
 0x139   :  { %421 = vmatprep.subr.bf16.mxu0 %v1603_v15  ;;  %1263 = vmatprep.subr.bf16.mxu1 %v1495_v1 }
 0x13c   :  { %422 = vmatpush1.bf16.msra.mxu0 %v1610_v16  ;;  %1264 = vmatpush3.bf16.msra.mxu1 %v1654_v23 }
 0x13d   :  { %423 = vmatprep.subr.bf16.mxu0 %v1622_v18  ;;  %1265 = vmatprep.subr.bf16.mxu1 %v1495_v1 }
 0x140   :  { %424 = vmatpush1.bf16.msra.mxu0 %v1629_v19  ;;  %1266 = vmatpush3.bf16.msra.mxu1 %v1663_v24 }
 0x141   :  { %425 = vmatprep.subr.bf16.mxu0 %v1641_v21  ;;  %1267 = vmatprep.subr.bf16.mxu1 %v1495_v1 }
 0x144   :  { %426 = vmatpush1.bf16.msra.mxu0 %v1648_v22  ;;  %1268 = vmatpush3.bf16.msra.mxu1 %v1671_v26 }
 0x145   :  { %521 = vmatprep.subr.bf16.mxu0 %v1522_v0  ;;  %1273 = vmatprep.subr.bf16.mxu1 %v1495_v1 }
 0x1fa   :  { %v335_v59 = vpop.f32.mrb[4].mxu0  ;;  %v376_v60 = vpop.f32.mrb[4].mxu1 }
 0x1fb   :  { %v383_v61 = vadd.f32 %v1099_v58, %v335_v59  ;;  %v337_v63 = vpop.f32.mrb[5].mxu0  ;;  %v1251_v25 = vpop.f32.mrb[5].mxu1  ;;  %v382_v38 = vadd.f32 %v1720_v44, %v376_v60 }
 0x1fc   :  { %v339_v27 = vpop.f32.mrb[6].mxu0  ;;  %v379_v28 = vpop.f32.mrb[6].mxu1  ;;  %v390_v32 = vadd.f32 %v1100_v62, %v337_v63 }
 0x1fd   :  { %v1102_v29 = vmul.f32 -1.442695, %v383_v61  ;;  %v340_v30 = vpop.f32.mrb[7].mxu0  ;;  %v1252_v31 = vpop.f32.mrb[7].mxu1 }
 0x1fe   :  { %v1103_v33 = vmul.f32 -1.442695, %v390_v32 }
 0x1ff   :  { %1419 = vpow2.f32 %v1102_v29 }
 0x200   :  { %1421 = vpow2.f32 %v1103_v33  ;;  %v1107_v33 = vld [vmem:[%s2071_s0 + $0x40] sm:$0xff] }
 0x209   :  { %v1420_v34 = vpop.eup %1419 }
 0x20a   :  { %v387_v35 = vadd.f32 1.0, %v1420_v34  ;;  %v1422_v36 = vpop.eup %1421 }
 0x20b   :  { %v394_v37 = vadd.f32 1.0, %v1422_v36 }
 0x20c   :  { %1423 = vrcp.f32 %v387_v35 }
 0x20d   :  { %1425 = vrcp.f32 %v394_v37 }
 0x216   :  { %v1424_v39 = vpop.eup %1423 }
 0x217   :  { %v397_v41 = vmul.f32 %v1424_v39, %v382_v38  ;;  %v1426_v43 = vpop.eup %1425 }
 0x218   :  { %v400_v45 = vsub.f32 1.0, %v1426_v43  ;;  %v402_v48 = vmul.f32 %v1426_v43, %v1726_v56  ;;  %v1111_v43 = vld [vmem:[%s2071_s0 + $0x48] sm:$0xff] }
 0x219   :  { %v398_v42 = vadd.f32 %v1101_v40, %v397_v41 }
 0x21b   :  { %1427 = vtanh.f32 %v398_v42 }
 0x225   :  { %v1428_v46 = vpop.eup %1427 }
 0x226   :  { %v401_v47 = vmul.f32 %v1428_v46, %v400_v45 }
 0x228   :  { %v1779_v49 = vadd.f32 %v402_v48, %v401_v47  ;;  %v1112_v48 = vld [vmem:[%s2071_s0 + $0x50] sm:$0xff] }
 0x22a   :  { %v404_v50 = vpack.c.bf16 %v1779_v49, %v1779_v49 }
 0x22c   :  { %1104 = vst [vmem:[%s2073_s3 + $0x4] sm:$0xf] %v404_v50  ;;  %444 = vmatmul.mubr.bf16.vlgmr.msra.gmra.mrb[8].mxu0 %v404_v50  ;;  %1270 = vmatmul.mubr.bf16.vlgmr.msra.gmra.mrb[8].mxu1 %v404_v50 }
 0x22d   :  { %522 = vmatpush1.bf16.msra.mxu0 %v1529_v3  ;;  %1274 = vmatpush3.bf16.msra.mxu1 %v1566_v9 }
 0x22e   :  { %523 = vmatprep.subr.bf16.mxu0 %v1537_v4  ;;  %1275 = vmatprep.subr.bf16.mxu1 %v1495_v1 }
 0x22f   :  { %553 = vmatprep.mubr.bf16.mxu0 %v1496_v2  ;;  %1289 = vmatprep.mubr.msk.bf16.mxu1 %vm1497_vm0, %v1495_v1 }
 0x231   :  { %524 = vmatpush1.bf16.msra.mxu0 %v1543_v5  ;;  %1276 = vmatpush3.bf16.msra.mxu1 %v1585_v12 }
 0x232   :  { %525 = vmatprep.subr.bf16.mxu0 %v1549_v6  ;;  %1277 = vmatprep.subr.bf16.mxu1 %v1495_v1 }
 0x235   :  { %526 = vmatpush1.bf16.msra.mxu0 %v1555_v7  ;;  %1278 = vmatpush3.bf16.msra.mxu1 %v1597_v14 }
 0x236   :  { %527 = vmatprep.subr.bf16.mxu0 %v1561_v8  ;;  %1279 = vmatprep.subr.bf16.mxu1 %v1495_v1 }
 0x239   :  { %528 = vmatpush1.bf16.msra.mxu0 %v1572_v10  ;;  %1280 = vmatpush3.bf16.msra.mxu1 %v1616_v17 }
 0x23a   :  { %529 = vmatprep.subr.bf16.mxu0 %v1579_v11  ;;  %1281 = vmatprep.subr.bf16.mxu1 %v1495_v1 }
 0x23d   :  { %530 = vmatpush1.bf16.msra.mxu0 %v1590_v13  ;;  %1282 = vmatpush3.bf16.msra.mxu1 %v1635_v20 }
 0x23e   :  { %531 = vmatprep.subr.bf16.mxu0 %v1603_v15  ;;  %1283 = vmatprep.subr.bf16.mxu1 %v1495_v1 }
 0x241   :  { %532 = vmatpush1.bf16.msra.mxu0 %v1610_v16  ;;  %1284 = vmatpush3.bf16.msra.mxu1 %v1654_v23 }
 0x242   :  { %533 = vmatprep.subr.bf16.mxu0 %v1622_v18  ;;  %1285 = vmatprep.subr.bf16.mxu1 %v1495_v1 }
 0x245   :  { %534 = vmatpush1.bf16.msra.mxu0 %v1629_v19  ;;  %1286 = vmatpush3.bf16.msra.mxu1 %v1663_v24 }
 0x246   :  { %535 = vmatprep.subr.bf16.mxu0 %v1641_v21  ;;  %1287 = vmatprep.subr.bf16.mxu1 %v1495_v1 }
 0x249   :  { %536 = vmatpush1.bf16.msra.mxu0 %v1648_v22  ;;  %1288 = vmatpush3.bf16.msra.mxu1 %v1671_v26 }
 0x24a   :  { %631 = vmatprep.subr.bf16.mxu0 %v1522_v0  ;;  %1293 = vmatprep.subr.bf16.mxu1 %v1495_v1 }
 0x2ff   :  { %v445_v52 = vpop.f32.mrb[8].mxu0  ;;  %v486_v53 = vpop.f32.mrb[8].mxu1 }
 0x300   :  { %v493_v54 = vadd.f32 %v1105_v51, %v445_v52  ;;  %v447_v56 = vpop.f32.mrb[9].mxu0  ;;  %v1271_v57 = vpop.f32.mrb[9].mxu1  ;;  %v492_v31 = vadd.f32 %v1720_v44, %v486_v53 }
 0x301   :  { %v449_v58 = vpop.f32.mrb[10].mxu0  ;;  %v489_v59 = vpop.f32.mrb[10].mxu1  ;;  %v500_v63 = vadd.f32 %v1106_v55, %v447_v56 }
 0x302   :  { %v1108_v60 = vmul.f32 -1.442695, %v493_v54  ;;  %v450_v61 = vpop.f32.mrb[11].mxu0  ;;  %v1272_v62 = vpop.f32.mrb[11].mxu1 }
 0x303   :  { %v1109_v25 = vmul.f32 -1.442695, %v500_v63 }
 0x304   :  { %1429 = vpow2.f32 %v1108_v60 }
 0x305   :  { %1431 = vpow2.f32 %v1109_v25  ;;  %v1113_v25 = vld [vmem:[%s2071_s0 + $0x58] sm:$0xff] }
 0x30e   :  { %v1430_v27 = vpop.eup %1429 }
 0x30f   :  { %v497_v28 = vadd.f32 1.0, %v1430_v27  ;;  %v1432_v29 = vpop.eup %1431 }
 0x310   :  { %v504_v30 = vadd.f32 1.0, %v1432_v29 }
 0x311   :  { %1433 = vrcp.f32 %v497_v28 }
 0x312   :  { %1435 = vrcp.f32 %v504_v30 }
 0x31b   :  { %v1434_v32 = vpop.eup %1433 }
 0x31c   :  { %v507_v34 = vmul.f32 %v1434_v32, %v492_v31  ;;  %v1436_v36 = vpop.eup %1435 }
 0x31d   :  { %v510_v37 = vsub.f32 1.0, %v1436_v36  ;;  %v512_v40 = vmul.f32 %v1436_v36, %v1779_v49  ;;  %v1117_v36 = vld [vmem:[%s2071_s0 + $0x60] sm:$0xff] }
 0x31e   :  { %v508_v35 = vadd.f32 %v1107_v33, %v507_v34 }
 0x320   :  { %1437 = vtanh.f32 %v508_v35 }
 0x32a   :  { %v1438_v38 = vpop.eup %1437 }
 0x32b   :  { %v511_v39 = vmul.f32 %v1438_v38, %v510_v37 }
 0x32d   :  { %v1832_v41 = vadd.f32 %v512_v40, %v511_v39  ;;  %v1118_v40 = vld [vmem:[%s2071_s0 + $0x68] sm:$0xff] }
 0x32f   :  { %v514_v42 = vpack.c.bf16 %v1832_v41, %v1832_v41 }
 0x331   :  { %1110 = vst [vmem:[%s2073_s3 + $0x8] sm:$0xf] %v514_v42  ;;  %554 = vmatmul.mubr.bf16.vlgmr.msra.gmra.mrb[12].mxu0 %v514_v42  ;;  %1290 = vmatmul.mubr.bf16.vlgmr.msra.gmra.mrb[12].mxu1 %v514_v42 }
 0x332   :  { %632 = vmatpush1.bf16.msra.mxu0 %v1529_v3  ;;  %1294 = vmatpush3.bf16.msra.mxu1 %v1566_v9 }
 0x333   :  { %633 = vmatprep.subr.bf16.mxu0 %v1537_v4  ;;  %1295 = vmatprep.subr.bf16.mxu1 %v1495_v1 }
 0x334   :  { %663 = vmatprep.mubr.bf16.mxu0 %v1496_v2  ;;  %1309 = vmatprep.mubr.msk.bf16.mxu1 %vm1497_vm0, %v1495_v1 }
 0x336   :  { %634 = vmatpush1.bf16.msra.mxu0 %v1543_v5  ;;  %1296 = vmatpush3.bf16.msra.mxu1 %v1585_v12 }
 0x337   :  { %635 = vmatprep.subr.bf16.mxu0 %v1549_v6  ;;  %1297 = vmatprep.subr.bf16.mxu1 %v1495_v1 }
 0x33a   :  { %636 = vmatpush1.bf16.msra.mxu0 %v1555_v7  ;;  %1298 = vmatpush3.bf16.msra.mxu1 %v1597_v14 }
 0x33b   :  { %637 = vmatprep.subr.bf16.mxu0 %v1561_v8  ;;  %1299 = vmatprep.subr.bf16.mxu1 %v1495_v1 }
 0x33e   :  { %638 = vmatpush1.bf16.msra.mxu0 %v1572_v10  ;;  %1300 = vmatpush3.bf16.msra.mxu1 %v1616_v17 }
 0x33f   :  { %639 = vmatprep.subr.bf16.mxu0 %v1579_v11  ;;  %1301 = vmatprep.subr.bf16.mxu1 %v1495_v1 }
 0x342   :  { %640 = vmatpush1.bf16.msra.mxu0 %v1590_v13  ;;  %1302 = vmatpush3.bf16.msra.mxu1 %v1635_v20 }
 0x343   :  { %641 = vmatprep.subr.bf16.mxu0 %v1603_v15  ;;  %1303 = vmatprep.subr.bf16.mxu1 %v1495_v1 }
 0x346   :  { %642 = vmatpush1.bf16.msra.mxu0 %v1610_v16  ;;  %1304 = vmatpush3.bf16.msra.mxu1 %v1654_v23 }
 0x347   :  { %643 = vmatprep.subr.bf16.mxu0 %v1622_v18  ;;  %1305 = vmatprep.subr.bf16.mxu1 %v1495_v1 }
 0x34a   :  { %644 = vmatpush1.bf16.msra.mxu0 %v1629_v19  ;;  %1306 = vmatpush3.bf16.msra.mxu1 %v1663_v24 }
 0x34b   :  { %645 = vmatprep.subr.bf16.mxu0 %v1641_v21  ;;  %1307 = vmatprep.subr.bf16.mxu1 %v1495_v1 }
 0x34e   :  { %646 = vmatpush1.bf16.msra.mxu0 %v1648_v22  ;;  %1308 = vmatpush3.bf16.msra.mxu1 %v1671_v26 }
 0x34f   :  { %741 = vmatprep.subr.bf16.mxu0 %v1522_v0  ;;  %1313 = vmatprep.subr.bf16.mxu1 %v1495_v1 }
 0x404   :  { %v555_v45 = vpop.f32.mrb[12].mxu0  ;;  %v596_v46 = vpop.f32.mrb[12].mxu1 }
 0x405   :  { %v603_v47 = vadd.f32 %v1111_v43, %v555_v45  ;;  %v557_v49 = vpop.f32.mrb[13].mxu0  ;;  %v1291_v50 = vpop.f32.mrb[13].mxu1  ;;  %v602_v62 = vadd.f32 %v1720_v44, %v596_v46 }
 0x406   :  { %v559_v51 = vpop.f32.mrb[14].mxu0  ;;  %v599_v52 = vpop.f32.mrb[14].mxu1  ;;  %v610_v56 = vadd.f32 %v1112_v48, %v557_v49 }
 0x407   :  { %v1114_v53 = vmul.f32 -1.442695, %v603_v47  ;;  %v560_v54 = vpop.f32.mrb[15].mxu0  ;;  %v1292_v55 = vpop.f32.mrb[15].mxu1 }
 0x408   :  { %v1115_v57 = vmul.f32 -1.442695, %v610_v56 }
 0x409   :  { %1439 = vpow2.f32 %v1114_v53 }
 0x40a   :  { %1441 = vpow2.f32 %v1115_v57  ;;  %v1119_v57 = vld [vmem:[%s2071_s0 + $0x70] sm:$0xff] }
 0x413   :  { %v1440_v58 = vpop.eup %1439 }
 0x414   :  { %v607_v59 = vadd.f32 1.0, %v1440_v58  ;;  %v1442_v60 = vpop.eup %1441 }
 0x415   :  { %v614_v61 = vadd.f32 1.0, %v1442_v60 }
 0x416   :  { %1443 = vrcp.f32 %v607_v59 }
 0x417   :  { %1445 = vrcp.f32 %v614_v61 }
 0x420   :  { %v1444_v63 = vpop.eup %1443 }
 0x421   :  { %v617_v27 = vmul.f32 %v1444_v63, %v602_v62  ;;  %v1446_v29 = vpop.eup %1445 }
 0x422   :  { %v620_v30 = vsub.f32 1.0, %v1446_v29  ;;  %v622_v33 = vmul.f32 %v1446_v29, %v1832_v41 }
 0x423   :  { %v618_v28 = vadd.f32 %v1113_v25, %v617_v27 }
 0x425   :  { %1447 = vtanh.f32 %v618_v28 }
 0x42f   :  { %v1448_v31 = vpop.eup %1447 }
 0x430   :  { %v621_v32 = vmul.f32 %v1448_v31, %v620_v30 }
 0x432   :  { %v1885_v34 = vadd.f32 %v622_v33, %v621_v32 }
 0x434   :  { %v624_v35 = vpack.c.bf16 %v1885_v34, %v1885_v34 }
 0x436   :  { %1116 = vst [vmem:[%s2073_s3 + $0xc] sm:$0xf] %v624_v35  ;;  %664 = vmatmul.mubr.bf16.vlgmr.msra.gmra.mrb[16].mxu0 %v624_v35  ;;  %1310 = vmatmul.mubr.bf16.vlgmr.msra.gmra.mrb[16].mxu1 %v624_v35 }
 0x437   :  { %742 = vmatpush1.bf16.msra.mxu0 %v1529_v3  ;;  %1314 = vmatpush3.bf16.msra.mxu1 %v1566_v9 }
 0x438   :  { %743 = vmatprep.subr.bf16.mxu0 %v1537_v4  ;;  %1315 = vmatprep.subr.bf16.mxu1 %v1495_v1 }
 0x439   :  { %773 = vmatprep.mubr.bf16.mxu0 %v1496_v2  ;;  %1329 = vmatprep.mubr.msk.bf16.mxu1 %vm1497_vm0, %v1495_v1 }
 0x43b   :  { %744 = vmatpush1.bf16.msra.mxu0 %v1543_v5  ;;  %1316 = vmatpush3.bf16.msra.mxu1 %v1585_v12 }
 0x43c   :  { %745 = vmatprep.subr.bf16.mxu0 %v1549_v6  ;;  %1317 = vmatprep.subr.bf16.mxu1 %v1495_v1 }
 0x43f   :  { %746 = vmatpush1.bf16.msra.mxu0 %v1555_v7  ;;  %1318 = vmatpush3.bf16.msra.mxu1 %v1597_v14 }
 0x440   :  { %747 = vmatprep.subr.bf16.mxu0 %v1561_v8  ;;  %1319 = vmatprep.subr.bf16.mxu1 %v1495_v1 }
 0x443   :  { %748 = vmatpush1.bf16.msra.mxu0 %v1572_v10  ;;  %1320 = vmatpush3.bf16.msra.mxu1 %v1616_v17 }
 0x444   :  { %749 = vmatprep.subr.bf16.mxu0 %v1579_v11  ;;  %1321 = vmatprep.subr.bf16.mxu1 %v1495_v1 }
 0x447   :  { %750 = vmatpush1.bf16.msra.mxu0 %v1590_v13  ;;  %1322 = vmatpush3.bf16.msra.mxu1 %v1635_v20 }
 0x448   :  { %751 = vmatprep.subr.bf16.mxu0 %v1603_v15  ;;  %1323 = vmatprep.subr.bf16.mxu1 %v1495_v1 }
 0x44b   :  { %752 = vmatpush1.bf16.msra.mxu0 %v1610_v16  ;;  %1324 = vmatpush3.bf16.msra.mxu1 %v1654_v23 }
 0x44c   :  { %753 = vmatprep.subr.bf16.mxu0 %v1622_v18  ;;  %1325 = vmatprep.subr.bf16.mxu1 %v1495_v1 }
 0x44f   :  { %754 = vmatpush1.bf16.msra.mxu0 %v1629_v19  ;;  %1326 = vmatpush3.bf16.msra.mxu1 %v1663_v24 }
 0x450   :  { %755 = vmatprep.subr.bf16.mxu0 %v1641_v21  ;;  %1327 = vmatprep.subr.bf16.mxu1 %v1495_v1 }
 0x453   :  { %756 = vmatpush1.bf16.msra.mxu0 %v1648_v22  ;;  %1328 = vmatpush3.bf16.msra.mxu1 %v1671_v26 }
 0x454   :  { %851 = vmatprep.subr.bf16.mxu0 %v1522_v0  ;;  %1333 = vmatprep.subr.bf16.mxu1 %v1495_v1 }
 0x509   :  { %v665_v37 = vpop.f32.mrb[16].mxu0  ;;  %v706_v38 = vpop.f32.mrb[16].mxu1 }
 0x50a   :  { %v713_v39 = vadd.f32 %v1117_v36, %v665_v37  ;;  %v667_v41 = vpop.f32.mrb[17].mxu0  ;;  %v1311_v42 = vpop.f32.mrb[17].mxu1  ;;  %v712_v55 = vadd.f32 %v1720_v44, %v706_v38 }
 0x50b   :  { %v669_v43 = vpop.f32.mrb[18].mxu0  ;;  %v709_v45 = vpop.f32.mrb[18].mxu1  ;;  %v720_v49 = vadd.f32 %v1118_v40, %v667_v41  ;;  %v1125_v42 = vld [vmem:[%s2071_s0 + $0x88] sm:$0xff] }
 0x50c   :  { %v1120_v46 = vmul.f32 -1.442695, %v713_v39  ;;  %v670_v47 = vpop.f32.mrb[19].mxu0  ;;  %v1312_v48 = vpop.f32.mrb[19].mxu1 }
 0x50d   :  { %v1121_v50 = vmul.f32 -1.442695, %v720_v49 }
 0x50e   :  { %1449 = vpow2.f32 %v1120_v46 }
 0x50f   :  { %1451 = vpow2.f32 %v1121_v50 }
 0x518   :  { %v1450_v51 = vpop.eup %1449 }
 0x519   :  { %v717_v52 = vadd.f32 1.0, %v1450_v51  ;;  %v1452_v53 = vpop.eup %1451 }
 0x51a   :  { %v724_v54 = vadd.f32 1.0, %v1452_v53  ;;  %v1489_v53 = vld [vmem:[%s2070_s1] ss:$12 sps:$4 sm:$0xff]  }
 0x51b   :  { %1453 = vrcp.f32 %v717_v52 }
 0x51c   :  { %1455 = vrcp.f32 %v724_v54  ;;  %v1490_v54 = vld [vmem:[%s2070_s1 + $0x1c] ss:$12 sps:$4 sm:$0xff]  }
 0x525   :  { %v1454_v56 = vpop.eup %1453 }
 0x526   :  { %v727_v58 = vmul.f32 %v1454_v56, %v712_v55  ;;  %v1456_v60 = vpop.eup %1455  ;;  %v1491_v55 = vld [vmem:[%s2070_s1 + $0x18] ss:$12 sps:$4 sm:$0xff]  }
 0x527   :  { %v730_v61 = vsub.f32 1.0, %v1456_v60  ;;  %v732_v25 = vmul.f32 %v1456_v60, %v1885_v34  ;;  %v1494_v56 = vld [vmem:[%s2070_s1 + $0x4c] ss:$12 sps:$4 sm:$0xff]   ;;  %v1131_v60 = vld [vmem:[%s2071_s0 + $0xa0] sm:$0xff] }
 0x528   :  { %v728_v59 = vadd.f32 %v1119_v57, %v727_v58 }
 0x52a   :  { %1457 = vtanh.f32 %v728_v59 }
 0x534   :  { %v1458_v62 = vpop.eup %1457 }
 0x535   :  { %v731_v63 = vmul.f32 %v1458_v62, %v730_v61 }
 0x537   :  { %v1938_v27 = vadd.f32 %v732_v25, %v731_v63 }
 0x539   :  { %v734_v28 = vpack.c.bf16 %v1938_v27, %v1938_v27 }
 0x53b   :  { %1122 = vst [vmem:[%s2073_s3 + $0x10] sm:$0xf] %v734_v28  ;;  %774 = vmatmul.mubr.bf16.vlgmr.msra.gmra.mrb[20].mxu0 %v734_v28  ;;  %1330 = vmatmul.mubr.bf16.vlgmr.msra.gmra.mrb[20].mxu1 %v734_v28 }
 0x53c   :  { %852 = vmatpush1.bf16.msra.mxu0 %v1529_v3  ;;  %1334 = vmatpush3.bf16.msra.mxu1 %v1566_v9  ;;  %v1123_v3 = vld [vmem:[%s2071_s0 + $0x78] sm:$0xff] }
 0x53d   :  { %853 = vmatprep.subr.bf16.mxu0 %v1537_v4  ;;  %1335 = vmatprep.subr.bf16.mxu1 %v1495_v1 }
 0x53e   :  { %883 = vmatprep.mubr.bf16.mxu0 %v1496_v2  ;;  %1349 = vmatprep.mubr.msk.bf16.mxu1 %vm1497_vm0, %v1495_v1 }
 0x540   :  { %854 = vmatpush1.bf16.msra.mxu0 %v1543_v5  ;;  %1336 = vmatpush3.bf16.msra.mxu1 %v1585_v12 }
 0x541   :  { %855 = vmatprep.subr.bf16.mxu0 %v1549_v6  ;;  %1337 = vmatprep.subr.bf16.mxu1 %v1495_v1 }
 0x544   :  { %856 = vmatpush1.bf16.msra.mxu0 %v1555_v7  ;;  %1338 = vmatpush3.bf16.msra.mxu1 %v1597_v14  ;;  %v1124_v7 = vld [vmem:[%s2071_s0 + $0x80] sm:$0xff] }
 0x545   :  { %857 = vmatprep.subr.bf16.mxu0 %v1561_v8  ;;  %1339 = vmatprep.subr.bf16.mxu1 %v1495_v1 }
 0x548   :  { %858 = vmatpush1.bf16.msra.mxu0 %v1572_v10  ;;  %1340 = vmatpush3.bf16.msra.mxu1 %v1616_v17 }
 0x549   :  { %859 = vmatprep.subr.bf16.mxu0 %v1579_v11  ;;  %1341 = vmatprep.subr.bf16.mxu1 %v1495_v1 }
 0x54c   :  { %860 = vmatpush1.bf16.msra.mxu0 %v1590_v13  ;;  %1342 = vmatpush3.bf16.msra.mxu1 %v1635_v20 }
 0x54d   :  { %861 = vmatprep.subr.bf16.mxu0 %v1603_v15  ;;  %1343 = vmatprep.subr.bf16.mxu1 %v1495_v1 }
 0x550   :  { %862 = vmatpush1.bf16.msra.mxu0 %v1610_v16  ;;  %1344 = vmatpush3.bf16.msra.mxu1 %v1654_v23 }
 0x551   :  { %863 = vmatprep.subr.bf16.mxu0 %v1622_v18  ;;  %1345 = vmatprep.subr.bf16.mxu1 %v1495_v1 }
 0x554   :  { %864 = vmatpush1.bf16.msra.mxu0 %v1629_v19  ;;  %1346 = vmatpush3.bf16.msra.mxu1 %v1663_v24 }
 0x555   :  { %865 = vmatprep.subr.bf16.mxu0 %v1641_v21  ;;  %1347 = vmatprep.subr.bf16.mxu1 %v1495_v1 }
 0x558   :  { %866 = vmatpush1.bf16.msra.mxu0 %v1648_v22  ;;  %1348 = vmatpush3.bf16.msra.mxu1 %v1671_v26 }
 0x559   :  { %961 = vmatprep.subr.bf16.mxu0 %v1522_v0  ;;  %1353 = vmatprep.subr.bf16.mxu1 %v1495_v1 }
 0x60e   :  { %v775_v4 = vpop.f32.mrb[20].mxu0  ;;  %v816_v5 = vpop.f32.mrb[20].mxu1 }
 0x60f   :  { %v823_v6 = vadd.f32 %v1123_v3, %v775_v4  ;;  %v777_v8 = vpop.f32.mrb[21].mxu0  ;;  %v1331_v29 = vpop.f32.mrb[21].mxu1  ;;  %v822_v40 = vadd.f32 %v1720_v44, %v816_v5 }
 0x610   :  { %v779_v30 = vpop.f32.mrb[22].mxu0  ;;  %v819_v31 = vpop.f32.mrb[22].mxu1  ;;  %v830_v34 = vadd.f32 %v1124_v7, %v777_v8 }
 0x611   :  { %v1126_v32 = vmul.f32 -1.442695, %v823_v6  ;;  %v780_v33 = vpop.f32.mrb[23].mxu0  ;;  %v1332_v0 = vpop.f32.mrb[23].mxu1  ;;  %v1135_v6 = vld [vmem:[%s2071_s0 + $0xa8] sm:$0xff]  ;;  %v1136_v30 = vld [vmem:[%s2071_s0 + $0xb0] sm:$0xff] }
 0x612   :  { %v1127_v35 = vmul.f32 -1.442695, %v830_v34 }
 0x613   :  { %1459 = vpow2.f32 %v1126_v32 }
 0x614   :  { %1461 = vpow2.f32 %v1127_v35 }
 0x61d   :  { %v1460_v36 = vpop.eup %1459 }
 0x61e   :  { %v827_v37 = vadd.f32 1.0, %v1460_v36  ;;  %v1462_v38 = vpop.eup %1461 }
 0x61f   :  { %v834_v39 = vadd.f32 1.0, %v1462_v38 }
 0x620   :  { %1463 = vrcp.f32 %v827_v37 }
 0x621   :  { %1465 = vrcp.f32 %v834_v39 }
 0x62a   :  { %v1464_v41 = vpop.eup %1463 }
 0x62b   :  { %v837_v43 = vmul.f32 %v1464_v41, %v822_v40  ;;  %v1466_v46 = vpop.eup %1465 }
 0x62c   :  { %v840_v47 = vsub.f32 1.0, %v1466_v46  ;;  %v842_v50 = vmul.f32 %v1466_v46, %v1938_v27  ;;  %v1137_v46 = vld [vmem:[%s2071_s0 + $0xb8] sm:$0xff] }
 0x62d   :  { %v838_v45 = vadd.f32 %v1125_v42, %v837_v43 }
 0x62f   :  { %1467 = vtanh.f32 %v838_v45 }
 0x639   :  { %v1468_v48 = vpop.eup %1467 }
 0x63a   :  { %v841_v49 = vmul.f32 %v1468_v48, %v840_v47 }
 0x63c   :  { %v1991_v51 = vadd.f32 %v842_v50, %v841_v49 }
 0x63e   :  { %v844_v52 = vpack.c.bf16 %v1991_v51, %v1991_v51 }
 0x640   :  { %1128 = vst [vmem:[%s2073_s3 + $0x14] sm:$0xf] %v844_v52  ;;  %884 = vmatmul.mubr.bf16.vlgmr.msra.gmra.mrb[24].mxu0 %v844_v52  ;;  %1350 = vmatmul.mubr.bf16.vlgmr.msra.gmra.mrb[24].mxu1 %v844_v52 }
 0x641   :  { %962 = vmatpush1.bf16.msra.mxu0 %v1489_v53  ;;  %1354 = vmatpush3.bf16.msra.mxu1 %v1566_v9  ;;  %v1492_v9 = vld [vmem:[%s2070_s1 + $0x34] ss:$12 sps:$4 sm:$0xff]  }
 0x642   :  { %963 = vmatprep.subr.bf16.mxu0 %v1490_v54  ;;  %1355 = vmatprep.subr.bf16.mxu1 %v1495_v1 }
 0x643   :  { %993 = vmatprep.mubr.bf16.mxu0 %v1496_v2  ;;  %1369 = vmatprep.mubr.msk.bf16.mxu1 %vm1497_vm0, %v1495_v1  ;;  %v1493_v2 = vld [vmem:[%s2070_s1 + $0x30] ss:$12 sps:$4 sm:$0xff]  }
 0x645   :  { %964 = vmatpush1.bf16.msra.mxu0 %v1491_v55  ;;  %1356 = vmatpush3.bf16.msra.mxu1 %v1585_v12 }
 0x646   :  { %965 = vmatprep.subr.bf16.mxu0 %v1492_v9  ;;  %1357 = vmatprep.subr.bf16.mxu1 %v1495_v1 }
 0x649   :  { %966 = vmatpush1.bf16.msra.mxu0 %v1493_v2  ;;  %1358 = vmatpush3.bf16.msra.mxu1 %v1597_v14  ;;  %v1130_v14 = vld [vmem:[%s2071_s0 + $0x98] sm:$0xff] }
 0x64a   :  { %967 = vmatprep.subr.bf16.mxu0 %v1494_v56  ;;  %1359 = vmatprep.subr.bf16.mxu1 %v1495_v1 }
 0x64d   :  { %968 = vmatpush1.bf16.msra.mxu0 %v1572_v10  ;;  %1360 = vmatpush3.bf16.msra.mxu1 %v1616_v17  ;;  %v1129_v10 = vld [vmem:[%s2071_s0 + $0x90] sm:$0xff] }
 0x64e   :  { %969 = vmatprep.subr.bf16.mxu0 %v1579_v11  ;;  %1361 = vmatprep.subr.bf16.mxu1 %v1495_v1 }
 0x651   :  { %970 = vmatpush1.bf16.msra.mxu0 %v1590_v13  ;;  %1362 = vmatpush3.bf16.msra.mxu1 %v1635_v20 }
 0x652   :  { %971 = vmatprep.subr.bf16.mxu0 %v1603_v15  ;;  %1363 = vmatprep.subr.bf16.mxu1 %v1495_v1 }
 0x655   :  { %972 = vmatpush1.bf16.msra.mxu0 %v1610_v16  ;;  %1364 = vmatpush3.bf16.msra.mxu1 %v1654_v23 }
 0x656   :  { %973 = vmatprep.subr.bf16.mxu0 %v1622_v18  ;;  %1365 = vmatprep.subr.bf16.mxu1 %v1495_v1 }
 0x659   :  { %974 = vmatpush1.bf16.msra.mxu0 %v1629_v19  ;;  %1366 = vmatpush3.bf16.msra.mxu1 %v1663_v24 }
 0x65a   :  { %975 = vmatprep.subr.bf16.mxu0 %v1641_v21  ;;  %1367 = vmatprep.subr.bf16.mxu1 %v1495_v1 }
 0x65d   :  { %976 = vmatpush1.bf16.msra.mxu0 %v1648_v22  ;;  %1368 = vmatpush3.bf16.msra.mxu1 %v1671_v26 }
 0x713   :  { %v885_v11 = vpop.f32.mrb[24].mxu0  ;;  %v926_v12 = vpop.f32.mrb[24].mxu1 }
 0x714   :  { %v933_v13 = vadd.f32 %v1129_v10, %v885_v11  ;;  %v887_v15 = vpop.f32.mrb[25].mxu0  ;;  %v1351_v16 = vpop.f32.mrb[25].mxu1  ;;  %v932_v58 = vadd.f32 %v1720_v44, %v926_v12 }
 0x715   :  { %v889_v17 = vpop.f32.mrb[26].mxu0  ;;  %v929_v18 = vpop.f32.mrb[26].mxu1  ;;  %v940_v21 = vadd.f32 %v1130_v14, %v887_v15 }
 0x716   :  { %v1132_v1 = vmul.f32 -1.442695, %v933_v13  ;;  %v890_v19 = vpop.f32.mrb[27].mxu0  ;;  %v1352_v20 = vpop.f32.mrb[27].mxu1 }
 0x717   :  { %v1133_v22 = vmul.f32 -1.442695, %v940_v21 }
 0x718   :  { %1469 = vpow2.f32 %v1132_v1 }
 0x719   :  { %1471 = vpow2.f32 %v1133_v22 }
 0x722   :  { %v1470_v23 = vpop.eup %1469 }
 0x723   :  { %v937_v24 = vadd.f32 1.0, %v1470_v23  ;;  %v1472_v26 = vpop.eup %1471 }
 0x724   :  { %v944_v57 = vadd.f32 1.0, %v1472_v26 }
 0x725   :  { %1473 = vrcp.f32 %v937_v24 }
 0x726   :  { %1475 = vrcp.f32 %v944_v57 }
 0x72f   :  { %v1474_v59 = vpop.eup %1473 }
 0x730   :  { %v947_v61 = vmul.f32 %v1474_v59, %v932_v58  ;;  %v1476_v63 = vpop.eup %1475 }
 0x731   :  { %v950_v25 = vsub.f32 1.0, %v1476_v63  ;;  %v952_v3 = vmul.f32 %v1476_v63, %v1991_v51 }
 0x732   :  { %v948_v62 = vadd.f32 %v1131_v60, %v947_v61 }
 0x734   :  { %1477 = vtanh.f32 %v948_v62 }
 0x73e   :  { %v1478_v27 = vpop.eup %1477 }
 0x73f   :  { %v951_v28 = vmul.f32 %v1478_v27, %v950_v25 }
 0x741   :  { %v953_v4 = vadd.f32 %v952_v3, %v951_v28 }
 0x743   :  { %v954_v5 = vpack.c.bf16 %v953_v4, %v953_v4 }
 0x745   :  { %1134 = vst [vmem:[%s2073_s3 + $0x18] sm:$0xf] %v954_v5  ;;  %994 = vmatmul.mubr.bf16.vlgmr.msra.gmra.mrb[28].mxu0 %v954_v5  ;;  %1370 = vmatmul.mubr.bf16.vlgmr.msra.gmra.mrb[28].mxu1 %v954_v5 }
 0x818   :  { %v995_v7 = vpop.f32.mrb[28].mxu0  ;;  %v1036_v8 = vpop.f32.mrb[28].mxu1 }
 0x819   :  { %v1043_v29 = vadd.f32 %v1135_v6, %v995_v7  ;;  %v997_v31 = vpop.f32.mrb[29].mxu0  ;;  %v1371_v32 = vpop.f32.mrb[29].mxu1  ;;  %v1042_v43 = vadd.f32 %v1720_v44, %v1036_v8 }
 0x81a   :  { %v999_v33 = vpop.f32.mrb[30].mxu0  ;;  %v1039_v0 = vpop.f32.mrb[30].mxu1  ;;  %v1050_v37 = vadd.f32 %v1136_v30, %v997_v31 }
 0x81b   :  { %v1138_v34 = vmul.f32 -1.442695, %v1043_v29  ;;  %v1000_v35 = vpop.f32.mrb[31].mxu0  ;;  %v1372_v36 = vpop.f32.mrb[31].mxu1 }
 0x81c   :  { %v1139_v38 = vmul.f32 -1.442695, %v1050_v37 }
 0x81d   :  { %1479 = vpow2.f32 %v1138_v34 }
 0x81e   :  { %1481 = vpow2.f32 %v1139_v38 }
 0x827   :  { %v1480_v39 = vpop.eup %1479 }
 0x828   :  { %v1047_v40 = vadd.f32 1.0, %v1480_v39  ;;  %v1482_v41 = vpop.eup %1481 }
 0x829   :  { %v1054_v42 = vadd.f32 1.0, %v1482_v41 }
 0x82a   :  { %1483 = vrcp.f32 %v1047_v40 }
 0x82b   :  { %1485 = vrcp.f32 %v1054_v42 }
 0x834   :  { %v1484_v45 = vpop.eup %1483 }
 0x835   :  { %v1057_v47 = vmul.f32 %v1484_v45, %v1042_v43  ;;  %v1486_v49 = vpop.eup %1485 }
 0x836   :  { %v1060_v50 = vsub.f32 1.0, %v1486_v49  ;;  %v1062_v53 = vmul.f32 %v1486_v49, %v953_v4 }
 0x837   :  { %v1058_v48 = vadd.f32 %v1137_v46, %v1057_v47 }
 0x839   :  { %1487 = vtanh.f32 %v1058_v48 }
 0x843   :  { %v1488_v51 = vpop.eup %1487 }
 0x844   :  { %v1061_v52 = vmul.f32 %v1488_v51, %v1060_v50 }
 0x846   :  { %v1063_v54 = vadd.f32 %v1062_v53, %v1061_v52 }
 0x848   :  { %v1064_v55 = vpack.c.bf16 %v1063_v54, %v1063_v54 }
 0x84a   :  { %1140 = vst [vmem:[%s2073_s3 + $0x1c] sm:$0xf] %v1064_v55 }

// kernel: spot_model_forward.1
= control target key start
LH: loop header
LB: loop body
LE: loop exit
PB: predicated region body
PF: predicated region fallthrough
CT: control target
= control target key end

     0   :  { %v1495_v1 = vmov 0.0   ;;  %v1496_v2 = vmov 0   ;;  %vm1497_vm0 = vmmov 0   ;;  %v1498_v25 = vmov 0.0|0.0   ;;  %s2070_s1 = inlined_call_operand.vmem [shape: bf16[128,384], index: 1, kind: input, shape index: {}]   ;;  %s2071_s0 = inlined_call_operand.vmem [shape: f32[8,8,384], index: 0, kind: input, shape index: {}]   ;;  %s2072_s2 = inlined_call_operand.vmem [shape: f32[1,128], index: 2, kind: input, shape index: {}]   ;;  %s2073_s3 = inlined_call_operand.vmem [shape: bf16[8,8,128], index: 3, kind: output, shape index: {}]  }
   0x1   :  { %v1522_v0 = vld [vmem:[%s2070_s1 + $0x4] ss:$12 sps:$4 sm:$0xff]   ;;  %1213 = vmatprep.subr.bf16.mxu1 %v1495_v1  ;;  %224 = vmatprep.mubr.bf16.mxu0 %v1496_v2  ;;  %v1529_v3 = vld [vmem:[%s2070_s1] ss:$12 sps:$4 sm:$0xff]   ;;  %v1537_v4 = vld [vmem:[%s2070_s1 + $0x1c] ss:$12 sps:$4 sm:$0xff]  }
   0x2   :  { %1229 = vmatprep.mubr.msk.bf16.mxu1 %vm1497_vm0, %v1495_v1  ;;  %192 = vmatprep.subr.bf16.mxu0 %v1522_v0  ;;  %v1543_v5 = vld [vmem:[%s2070_s1 + $0x18] ss:$12 sps:$4 sm:$0xff]   ;;  %v1549_v6 = vld [vmem:[%s2070_s1 + $0x34] ss:$12 sps:$4 sm:$0xff]   ;;  %v1555_v7 = vld [vmem:[%s2070_s1 + $0x30] ss:$12 sps:$4 sm:$0xff]  }
   0x3   :  { %193 = vmatpush1.bf16.msra.mxu0 %v1529_v3  ;;  %v1561_v8 = vld [vmem:[%s2070_s1 + $0x4c] ss:$12 sps:$4 sm:$0xff]   ;;  %v1566_v9 = vld [vmem:[%s2070_s1 + $0x8] ss:$12 sps:$4 sm:$0xff]   ;;  %v1579_v11 = vld [vmem:[%s2070_s1 + $0x64] ss:$12 sps:$4 sm:$0xff]  }
   0x4   :  { %194 = vmatprep.subr.bf16.mxu0 %v1537_v4  ;;  %v1572_v10 = vld [vmem:[%s2070_s1 + $0x48] ss:$12 sps:$4 sm:$0xff]   ;;  %1214 = vmatpush3.bf16.msra.mxu1 %v1566_v9  ;;  %v1585_v12 = vld [vmem:[%s2070_s1 + $0x20] ss:$12 sps:$4 sm:$0xff]   ;;  %v1597_v14 = vld [vmem:[%s2070_s1 + $0x38] ss:$12 sps:$4 sm:$0xff]  }
   0x5   :  { %1215 = vmatprep.subr.bf16.mxu1 %v1495_v1  ;;  %v1590_v13 = vld [vmem:[%s2070_s1 + $0x60] ss:$12 sps:$4 sm:$0xff]   ;;  %v1603_v15 = vld [vmem:[%s2070_s1 + $0x7c] ss:$12 sps:$4 sm:$0xff]   ;;  %v1610_v16 = vld [vmem:[%s2070_s1 + $0x78] ss:$12 sps:$4 sm:$0xff]  }
   0x6   :  { %v1616_v17 = vld [vmem:[%s2070_s1 + $0x50] ss:$12 sps:$4 sm:$0xff]   ;;  %v1622_v18 = vld [vmem:[%s2070_s1 + $0x94] ss:$12 sps:$4 sm:$0xff]   ;;  %v1641_v21 = vld [vmem:[%s2070_s1 + $0xac] ss:$12 sps:$4 sm:$0xff]  }
   0x7   :  { %195 = vmatpush1.bf16.msra.mxu0 %v1543_v5  ;;  %v1629_v19 = vld [vmem:[%s2070_s1 + $0x90] ss:$12 sps:$4 sm:$0xff]   ;;  %v1635_v20 = vld [vmem:[%s2070_s1 + $0x68] ss:$12 sps:$4 sm:$0xff]   ;;  %v1654_v23 = vld [vmem:[%s2070_s1 + $0x80] ss:$12 sps:$4 sm:$0xff]  }
   0x8   :  { %196 = vmatprep.subr.bf16.mxu0 %v1549_v6  ;;  %1216 = vmatpush3.bf16.msra.mxu1 %v1585_v12  ;;  %v1648_v22 = vld [vmem:[%s2070_s1 + $0xa8] ss:$12 sps:$4 sm:$0xff]   ;;  %v1663_v24 = vld [vmem:[%s2070_s1 + $0x98] ss:$12 sps:$4 sm:$0xff]   ;;  %v1671_v26 = vld [vmem:[%s2070_s1 + $0xb0] ss:$12 sps:$4 sm:$0xff]  }
   0x9   :  { %1217 = vmatprep.subr.bf16.mxu1 %v1495_v1  ;;  %v60_v27 = vld [vmem:[%s2071_s0] sm:$0xff]  ;;  %v61_v30 = vld [vmem:[%s2071_s0 + $0x8] sm:$0xff]  ;;  %v62_v48 = vld [vmem:[%s2071_s0 + $0x10] sm:$0xff] }
   0xa   :  { %v1720_v44 = vld [vmem:[%s2072_s2] ss:$0 sm:$0xff]  ;;  %v1099_v58 = vld [vmem:[%s2071_s0 + $0x18] sm:$0xff] }
   0xb   :  { %197 = vmatpush1.bf16.msra.mxu0 %v1555_v7  ;;  %v1100_v62 = vld [vmem:[%s2071_s0 + $0x20] sm:$0xff] }
   0xc   :  { %198 = vmatprep.subr.bf16.mxu0 %v1561_v8  ;;  %1218 = vmatpush3.bf16.msra.mxu1 %v1597_v14 }
   0xd   :  { %1219 = vmatprep.subr.bf16.mxu1 %v1495_v1 }
   0xf   :  { %199 = vmatpush1.bf16.msra.mxu0 %v1572_v10 }
  0x10   :  { %200 = vmatprep.subr.bf16.mxu0 %v1579_v11  ;;  %1220 = vmatpush3.bf16.msra.mxu1 %v1616_v17 }
  0x11   :  { %1221 = vmatprep.subr.bf16.mxu1 %v1495_v1 }
  0x13   :  { %201 = vmatpush1.bf16.msra.mxu0 %v1590_v13 }
  0x14   :  { %202 = vmatprep.subr.bf16.mxu0 %v1603_v15  ;;  %1222 = vmatpush3.bf16.msra.mxu1 %v1635_v20 }
  0x15   :  { %1223 = vmatprep.subr.bf16.mxu1 %v1495_v1 }
  0x17   :  { %203 = vmatpush1.bf16.msra.mxu0 %v1610_v16 }
  0x18   :  { %204 = vmatprep.subr.bf16.mxu0 %v1622_v18  ;;  %1224 = vmatpush3.bf16.msra.mxu1 %v1654_v23 }
  0x19   :  { %1225 = vmatprep.subr.bf16.mxu1 %v1495_v1 }
  0x1b   :  { %205 = vmatpush1.bf16.msra.mxu0 %v1629_v19 }
  0x1c   :  { %206 = vmatprep.subr.bf16.mxu0 %v1641_v21  ;;  %1226 = vmatpush3.bf16.msra.mxu1 %v1663_v24 }
  0x1d   :  { %1227 = vmatprep.subr.bf16.mxu1 %v1495_v1 }
  0x1f   :  { %207 = vmatpush1.bf16.msra.mxu0 %v1648_v22 }
  0x20   :  { %301 = vmatprep.subr.bf16.mxu0 %v1522_v0  ;;  %1228 = vmatpush3.bf16.msra.mxu1 %v1671_v26 }
  0x21   :  { %1233 = vmatprep.subr.bf16.mxu1 %v1495_v1 }
  0x22   :  { %225 = vmatmul.mubr.bf16.vlgmr.msra.gmra.mrb[0].mxu0 %v1498_v25 }
  0x23   :  { %302 = vmatpush1.bf16.msra.mxu0 %v1529_v3  ;;  %333 = vmatprep.mubr.bf16.mxu0 %v1496_v2 }
  0x24   :  { %303 = vmatprep.subr.bf16.mxu0 %v1537_v4  ;;  %1230 = vmatmul.mubr.bf16.vlgmr.msra.gmra.mrb[0].mxu1 %v1498_v25 }
  0x25   :  { %1234 = vmatpush3.bf16.msra.mxu1 %v1566_v9  ;;  %1249 = vmatprep.mubr.msk.bf16.mxu1 %vm1497_vm0, %v1495_v1 }
  0x26   :  { %1235 = vmatprep.subr.bf16.mxu1 %v1495_v1 }
  0x27   :  { %304 = vmatpush1.bf16.msra.mxu0 %v1543_v5 }
  0x28   :  { %305 = vmatprep.subr.bf16.mxu0 %v1549_v6 }
  0x29   :  { %1236 = vmatpush3.bf16.msra.mxu1 %v1585_v12 }
  0x2a   :  { %1237 = vmatprep.subr.bf16.mxu1 %v1495_v1 }
  0x2b   :  { %306 = vmatpush1.bf16.msra.mxu0 %v1555_v7 }
  0x2c   :  { %307 = vmatprep.subr.bf16.mxu0 %v1561_v8 }
  0x2d   :  { %1238 = vmatpush3.bf16.msra.mxu1 %v1597_v14 }
  0x2e   :  { %1239 = vmatprep.subr.bf16.mxu1 %v1495_v1 }
  0x2f   :  { %308 = vmatpush1.bf16.msra.mxu0 %v1572_v10 }
  0x30   :  { %309 = vmatprep.subr.bf16.mxu0 %v1579_v11 }
  0x31   :  { %1240 = vmatpush3.bf16.msra.mxu1 %v1616_v17 }
  0x32   :  { %1241 = vmatprep.subr.bf16.mxu1 %v1495_v1 }
  0x33   :  { %310 = vmatpush1.bf16.msra.mxu0 %v1590_v13 }
  0x34   :  { %311 = vmatprep.subr.bf16.mxu0 %v1603_v15 }
  0x35   :  { %1242 = vmatpush3.bf16.msra.mxu1 %v1635_v20 }
  0x36   :  { %1243 = vmatprep.subr.bf16.mxu1 %v1495_v1 }
  0x37   :  { %312 = vmatpush1.bf16.msra.mxu0 %v1610_v16 }
  0x38   :  { %313 = vmatprep.subr.bf16.mxu0 %v1622_v18 }
  0x39   :  { %1244 = vmatpush3.bf16.msra.mxu1 %v1654_v23 }
  0x3a   :  { %1245 = vmatprep.subr.bf16.mxu1 %v1495_v1 }
  0x3b   :  { %314 = vmatpush1.bf16.msra.mxu0 %v1629_v19 }
  0x3c   :  { %315 = vmatprep.subr.bf16.mxu0 %v1641_v21 }
  0x3d   :  { %1246 = vmatpush3.bf16.msra.mxu1 %v1663_v24 }
  0x3e   :  { %1247 = vmatprep.subr.bf16.mxu1 %v1495_v1 }
  0x3f   :  { %316 = vmatpush1.bf16.msra.mxu0 %v1648_v22 }
  0x40   :  { %411 = vmatprep.subr.bf16.mxu0 %v1522_v0 }
  0x41   :  { %1248 = vmatpush3.bf16.msra.mxu1 %v1671_v26 }
  0x42   :  { %1253 = vmatprep.subr.bf16.mxu1 %v1495_v1 }
  0xf5   :  { %v226_v28 = vpop.f32.mrb[0].mxu0 }
  0xf6   :  { %v274_v29 = vadd.f32 %v226_v28, %v60_v27  ;;  %v228_v31 = vpop.f32.mrb[1].mxu0 }
  0xf7   :  { %v230_v32 = vpop.f32.mrb[2].mxu0  ;;  %v281_v35 = vadd.f32 %v228_v31, %v61_v30  ;;  %v267_v37 = vpop.f32.mrb[0].mxu1 }
  0xf8   :  { %v1097_v33 = vmul.f32 -1.442695, %v274_v29  ;;  %v231_v34 = vpop.f32.mrb[3].mxu0  ;;  %v1231_v38 = vpop.f32.mrb[1].mxu1  ;;  %v273_v46 = vadd.f32 %v1720_v44, %v267_v37 }
  0xf9   :  { %v1098_v36 = vmul.f32 -1.442695, %v281_v35  ;;  %v270_v39 = vpop.f32.mrb[2].mxu1 }
  0xfa   :  { %1409 = vpow2.f32 %v1097_v33  ;;  %v1232_v40 = vpop.f32.mrb[3].mxu1 }
  0xfb   :  { %1411 = vpow2.f32 %v1098_v36  ;;  %v1101_v40 = vld [vmem:[%s2071_s0 + $0x28] sm:$0xff] }
 0x104   :  { %v1410_v41 = vpop.eup %1409 }
 0x105   :  { %v278_v42 = vadd.f32 1.0, %v1410_v41  ;;  %v1412_v43 = vpop.eup %1411 }
 0x106   :  { %v285_v45 = vadd.f32 1.0, %v1412_v43 }
 0x107   :  { %1413 = vrcp.f32 %v278_v42 }
 0x108   :  { %1415 = vrcp.f32 %v285_v45 }
 0x111   :  { %v1414_v47 = vpop.eup %1413 }
 0x112   :  { %v288_v49 = vmul.f32 %v1414_v47, %v273_v46  ;;  %v1416_v51 = vpop.eup %1415 }
 0x113   :  { %v291_v52 = vsub.f32 1.0, %v1416_v51  ;;  %v293_v55 = vmul.f32 0.0, %v1416_v51  ;;  %v1105_v51 = vld [vmem:[%s2071_s0 + $0x30] sm:$0xff] }
 0x114   :  { %v289_v50 = vadd.f32 %v288_v49, %v62_v48 }
 0x116   :  { %1417 = vtanh.f32 %v289_v50 }
 0x120   :  { %v1418_v53 = vpop.eup %1417 }
 0x121   :  { %v292_v54 = vmul.f32 %v1418_v53, %v291_v52 }
 0x123   :  { %v1726_v56 = vadd.f32 %v293_v55, %v292_v54  ;;  %v1106_v55 = vld [vmem:[%s2071_s0 + $0x38] sm:$0xff] }
 0x125   :  { %v295_v57 = vpack.c.bf16 %v1726_v56, %v1726_v56 }
 0x127   :  { %296 = vst [vmem:[%s2073_s3] sm:$0xf] %v295_v57  ;;  %334 = vmatmul.mubr.bf16.vlgmr.msra.gmra.mrb[4].mxu0 %v295_v57  ;;  %1250 = vmatmul.mubr.bf16.vlgmr.msra.gmra.mrb[4].mxu1 %v295_v57 }
 0x128   :  { %412 = vmatpush1.bf16.msra.mxu0 %v1529_v3  ;;  %1254 = vmatpush3.bf16.msra.mxu1 %v1566_v9 }
 0x129   :  { %413 = vmatprep.subr.bf16.mxu0 %v1537_v4  ;;  %1255 = vmatprep.subr.bf16.mxu1 %v1495_v1 }
 0x12a   :  { %443 = vmatprep.mubr.bf16.mxu0 %v1496_v2  ;;  %1269 = vmatprep.mubr.msk.bf16.mxu1 %vm1497_vm0, %v1495_v1 }
 0x12c   :  { %414 = vmatpush1.bf16.msra.mxu0 %v1543_v5  ;;  %1256 = vmatpush3.bf16.msra.mxu1 %v1585_v12 }
 0x12d   :  { %415 = vmatprep.subr.bf16.mxu0 %v1549_v6  ;;  %1257 = vmatprep.subr.bf16.mxu1 %v1495_v1 }
 0x130   :  { %416 = vmatpush1.bf16.msra.mxu0 %v1555_v7  ;;  %1258 = vmatpush3.bf16.msra.mxu1 %v1597_v14 }
 0x131   :  { %417 = vmatprep.subr.bf16.mxu0 %v1561_v8  ;;  %1259 = vmatprep.subr.bf16.mxu1 %v1495_v1 }
 0x134   :  { %418 = vmatpush1.bf16.msra.mxu0 %v1572_v10  ;;  %1260 = vmatpush3.bf16.msra.mxu1 %v1616_v17 }
 0x135   :  { %419 = vmatprep.subr.bf16.mxu0 %v1579_v11  ;;  %1261 = vmatprep.subr.bf16.mxu1 %v1495_v1 }
 0x138   :  { %420 = vmatpush1.bf16.msra.mxu0 %v1590_v13  ;;  %1262 = vmatpush3.bf16.msra.mxu1 %v1635_v20 }
 0x139   :  { %421 = vmatprep.subr.bf16.mxu0 %v1603_v15  ;;  %1263 = vmatprep.subr.bf16.mxu1 %v1495_v1 }
 0x13c   :  { %422 = vmatpush1.bf16.msra.mxu0 %v1610_v16  ;;  %1264 = vmatpush3.bf16.msra.mxu1 %v1654_v23 }
 0x13d   :  { %423 = vmatprep.subr.bf16.mxu0 %v1622_v18  ;;  %1265 = vmatprep.subr.bf16.mxu1 %v1495_v1 }
 0x140   :  { %424 = vmatpush1.bf16.msra.mxu0 %v1629_v19  ;;  %1266 = vmatpush3.bf16.msra.mxu1 %v1663_v24 }
 0x141   :  { %425 = vmatprep.subr.bf16.mxu0 %v1641_v21  ;;  %1267 = vmatprep.subr.bf16.mxu1 %v1495_v1 }
 0x144   :  { %426 = vmatpush1.bf16.msra.mxu0 %v1648_v22  ;;  %1268 = vmatpush3.bf16.msra.mxu1 %v1671_v26 }
 0x145   :  { %521 = vmatprep.subr.bf16.mxu0 %v1522_v0  ;;  %1273 = vmatprep.subr.bf16.mxu1 %v1495_v1 }
 0x1fa   :  { %v335_v59 = vpop.f32.mrb[4].mxu0  ;;  %v376_v60 = vpop.f32.mrb[4].mxu1 }
 0x1fb   :  { %v383_v61 = vadd.f32 %v1099_v58, %v335_v59  ;;  %v337_v63 = vpop.f32.mrb[5].mxu0  ;;  %v1251_v25 = vpop.f32.mrb[5].mxu1  ;;  %v382_v38 = vadd.f32 %v1720_v44, %v376_v60 }
 0x1fc   :  { %v339_v27 = vpop.f32.mrb[6].mxu0  ;;  %v379_v28 = vpop.f32.mrb[6].mxu1  ;;  %v390_v32 = vadd.f32 %v1100_v62, %v337_v63 }
 0x1fd   :  { %v1102_v29 = vmul.f32 -1.442695, %v383_v61  ;;  %v340_v30 = vpop.f32.mrb[7].mxu0  ;;  %v1252_v31 = vpop.f32.mrb[7].mxu1 }
 0x1fe   :  { %v1103_v33 = vmul.f32 -1.442695, %v390_v32 }
 0x1ff   :  { %1419 = vpow2.f32 %v1102_v29 }
 0x200   :  { %1421 = vpow2.f32 %v1103_v33  ;;  %v1107_v33 = vld [vmem:[%s2071_s0 + $0x40] sm:$0xff] }
 0x209   :  { %v1420_v34 = vpop.eup %1419 }
 0x20a   :  { %v387_v35 = vadd.f32 1.0, %v1420_v34  ;;  %v1422_v36 = vpop.eup %1421 }
 0x20b   :  { %v394_v37 = vadd.f32 1.0, %v1422_v36 }
 0x20c   :  { %1423 = vrcp.f32 %v387_v35 }
 0x20d   :  { %1425 = vrcp.f32 %v394_v37 }
 0x216   :  { %v1424_v39 = vpop.eup %1423 }
 0x217   :  { %v397_v41 = vmul.f32 %v1424_v39, %v382_v38  ;;  %v1426_v43 = vpop.eup %1425 }
 0x218   :  { %v400_v45 = vsub.f32 1.0, %v1426_v43  ;;  %v402_v48 = vmul.f32 %v1426_v43, %v1726_v56  ;;  %v1111_v43 = vld [vmem:[%s2071_s0 + $0x48] sm:$0xff] }
 0x219   :  { %v398_v42 = vadd.f32 %v1101_v40, %v397_v41 }
 0x21b   :  { %1427 = vtanh.f32 %v398_v42 }
 0x225   :  { %v1428_v46 = vpop.eup %1427 }
 0x226   :  { %v401_v47 = vmul.f32 %v1428_v46, %v400_v45 }
 0x228   :  { %v1779_v49 = vadd.f32 %v402_v48, %v401_v47  ;;  %v1112_v48 = vld [vmem:[%s2071_s0 + $0x50] sm:$0xff] }
 0x22a   :  { %v404_v50 = vpack.c.bf16 %v1779_v49, %v1779_v49 }
 0x22c   :  { %1104 = vst [vmem:[%s2073_s3 + $0x4] sm:$0xf] %v404_v50  ;;  %444 = vmatmul.mubr.bf16.vlgmr.msra.gmra.mrb[8].mxu0 %v404_v50  ;;  %1270 = vmatmul.mubr.bf16.vlgmr.msra.gmra.mrb[8].mxu1 %v404_v50 }
 0x22d   :  { %522 = vmatpush1.bf16.msra.mxu0 %v1529_v3  ;;  %1274 = vmatpush3.bf16.msra.mxu1 %v1566_v9 }
 0x22e   :  { %523 = vmatprep.subr.bf16.mxu0 %v1537_v4  ;;  %1275 = vmatprep.subr.bf16.mxu1 %v1495_v1 }
 0x22f   :  { %553 = vmatprep.mubr.bf16.mxu0 %v1496_v2  ;;  %1289 = vmatprep.mubr.msk.bf16.mxu1 %vm1497_vm0, %v1495_v1 }
 0x231   :  { %524 = vmatpush1.bf16.msra.mxu0 %v1543_v5  ;;  %1276 = vmatpush3.bf16.msra.mxu1 %v1585_v12 }
 0x232   :  { %525 = vmatprep.subr.bf16.mxu0 %v1549_v6  ;;  %1277 = vmatprep.subr.bf16.mxu1 %v1495_v1 }
 0x235   :  { %526 = vmatpush1.bf16.msra.mxu0 %v1555_v7  ;;  %1278 = vmatpush3.bf16.msra.mxu1 %v1597_v14 }
 0x236   :  { %527 = vmatprep.subr.bf16.mxu0 %v1561_v8  ;;  %1279 = vmatprep.subr.bf16.mxu1 %v1495_v1 }
 0x239   :  { %528 = vmatpush1.bf16.msra.mxu0 %v1572_v10  ;;  %1280 = vmatpush3.bf16.msra.mxu1 %v1616_v17 }
 0x23a   :  { %529 = vmatprep.subr.bf16.mxu0 %v1579_v11  ;;  %1281 = vmatprep.subr.bf16.mxu1 %v1495_v1 }
 0x23d   :  { %530 = vmatpush1.bf16.msra.mxu0 %v1590_v13  ;;  %1282 = vmatpush3.bf16.msra.mxu1 %v1635_v20 }
 0x23e   :  { %531 = vmatprep.subr.bf16.mxu0 %v1603_v15  ;;  %1283 = vmatprep.subr.bf16.mxu1 %v1495_v1 }
 0x241   :  { %532 = vmatpush1.bf16.msra.mxu0 %v1610_v16  ;;  %1284 = vmatpush3.bf16.msra.mxu1 %v1654_v23 }
 0x242   :  { %533 = vmatprep.subr.bf16.mxu0 %v1622_v18  ;;  %1285 = vmatprep.subr.bf16.mxu1 %v1495_v1 }
 0x245   :  { %534 = vmatpush1.bf16.msra.mxu0 %v1629_v19  ;;  %1286 = vmatpush3.bf16.msra.mxu1 %v1663_v24 }
 0x246   :  { %535 = vmatprep.subr.bf16.mxu0 %v1641_v21  ;;  %1287 = vmatprep.subr.bf16.mxu1 %v1495_v1 }
 0x249   :  { %536 = vmatpush1.bf16.msra.mxu0 %v1648_v22  ;;  %1288 = vmatpush3.bf16.msra.mxu1 %v1671_v26 }
 0x24a   :  { %631 = vmatprep.subr.bf16.mxu0 %v1522_v0  ;;  %1293 = vmatprep.subr.bf16.mxu1 %v1495_v1 }
 0x2ff   :  { %v445_v52 = vpop.f32.mrb[8].mxu0  ;;  %v486_v53 = vpop.f32.mrb[8].mxu1 }
 0x300   :  { %v493_v54 = vadd.f32 %v1105_v51, %v445_v52  ;;  %v447_v56 = vpop.f32.mrb[9].mxu0  ;;  %v1271_v57 = vpop.f32.mrb[9].mxu1  ;;  %v492_v31 = vadd.f32 %v1720_v44, %v486_v53 }
 0x301   :  { %v449_v58 = vpop.f32.mrb[10].mxu0  ;;  %v489_v59 = vpop.f32.mrb[10].mxu1  ;;  %v500_v63 = vadd.f32 %v1106_v55, %v447_v56 }
 0x302   :  { %v1108_v60 = vmul.f32 -1.442695, %v493_v54  ;;  %v450_v61 = vpop.f32.mrb[11].mxu0  ;;  %v1272_v62 = vpop.f32.mrb[11].mxu1 }
 0x303   :  { %v1109_v25 = vmul.f32 -1.442695, %v500_v63 }
 0x304   :  { %1429 = vpow2.f32 %v1108_v60 }
 0x305   :  { %1431 = vpow2.f32 %v1109_v25  ;;  %v1113_v25 = vld [vmem:[%s2071_s0 + $0x58] sm:$0xff] }
 0x30e   :  { %v1430_v27 = vpop.eup %1429 }
 0x30f   :  { %v497_v28 = vadd.f32 1.0, %v1430_v27  ;;  %v1432_v29 = vpop.eup %1431 }
 0x310   :  { %v504_v30 = vadd.f32 1.0, %v1432_v29 }
 0x311   :  { %1433 = vrcp.f32 %v497_v28 }
 0x312   :  { %1435 = vrcp.f32 %v504_v30 }
 0x31b   :  { %v1434_v32 = vpop.eup %1433 }
 0x31c   :  { %v507_v34 = vmul.f32 %v1434_v32, %v492_v31  ;;  %v1436_v36 = vpop.eup %1435 }
 0x31d   :  { %v510_v37 = vsub.f32 1.0, %v1436_v36  ;;  %v512_v40 = vmul.f32 %v1436_v36, %v1779_v49  ;;  %v1117_v36 = vld [vmem:[%s2071_s0 + $0x60] sm:$0xff] }
 0x31e   :  { %v508_v35 = vadd.f32 %v1107_v33, %v507_v34 }
 0x320   :  { %1437 = vtanh.f32 %v508_v35 }
 0x32a   :  { %v1438_v38 = vpop.eup %1437 }
 0x32b   :  { %v511_v39 = vmul.f32 %v1438_v38, %v510_v37 }
 0x32d   :  { %v1832_v41 = vadd.f32 %v512_v40, %v511_v39  ;;  %v1118_v40 = vld [vmem:[%s2071_s0 + $0x68] sm:$0xff] }
 0x32f   :  { %v514_v42 = vpack.c.bf16 %v1832_v41, %v1832_v41 }
 0x331   :  { %1110 = vst [vmem:[%s2073_s3 + $0x8] sm:$0xf] %v514_v42  ;;  %554 = vmatmul.mubr.bf16.vlgmr.msra.gmra.mrb[12].mxu0 %v514_v42  ;;  %1290 = vmatmul.mubr.bf16.vlgmr.msra.gmra.mrb[12].mxu1 %v514_v42 }
 0x332   :  { %632 = vmatpush1.bf16.msra.mxu0 %v1529_v3  ;;  %1294 = vmatpush3.bf16.msra.mxu1 %v1566_v9 }
 0x333   :  { %633 = vmatprep.subr.bf16.mxu0 %v1537_v4  ;;  %1295 = vmatprep.subr.bf16.mxu1 %v1495_v1 }
 0x334   :  { %663 = vmatprep.mubr.bf16.mxu0 %v1496_v2  ;;  %1309 = vmatprep.mubr.msk.bf16.mxu1 %vm1497_vm0, %v1495_v1 }
 0x336   :  { %634 = vmatpush1.bf16.msra.mxu0 %v1543_v5  ;;  %1296 = vmatpush3.bf16.msra.mxu1 %v1585_v12 }
 0x337   :  { %635 = vmatprep.subr.bf16.mxu0 %v1549_v6  ;;  %1297 = vmatprep.subr.bf16.mxu1 %v1495_v1 }
 0x33a   :  { %636 = vmatpush1.bf16.msra.mxu0 %v1555_v7  ;;  %1298 = vmatpush3.bf16.msra.mxu1 %v1597_v14 }
 0x33b   :  { %637 = vmatprep.subr.bf16.mxu0 %v1561_v8  ;;  %1299 = vmatprep.subr.bf16.mxu1 %v1495_v1 }
 0x33e   :  { %638 = vmatpush1.bf16.msra.mxu0 %v1572_v10  ;;  %1300 = vmatpush3.bf16.msra.mxu1 %v1616_v17 }
 0x33f   :  { %639 = vmatprep.subr.bf16.mxu0 %v1579_v11  ;;  %1301 = vmatprep.subr.bf16.mxu1 %v1495_v1 }
 0x342   :  { %640 = vmatpush1.bf16.msra.mxu0 %v1590_v13  ;;  %1302 = vmatpush3.bf16.msra.mxu1 %v1635_v20 }
 0x343   :  { %641 = vmatprep.subr.bf16.mxu0 %v1603_v15  ;;  %1303 = vmatprep.subr.bf16.mxu1 %v1495_v1 }
 0x346   :  { %642 = vmatpush1.bf16.msra.mxu0 %v1610_v16  ;;  %1304 = vmatpush3.bf16.msra.mxu1 %v1654_v23 }
 0x347   :  { %643 = vmatprep.subr.bf16.mxu0 %v1622_v18  ;;  %1305 = vmatprep.subr.bf16.mxu1 %v1495_v1 }
 0x34a   :  { %644 = vmatpush1.bf16.msra.mxu0 %v1629_v19  ;;  %1306 = vmatpush3.bf16.msra.mxu1 %v1663_v24 }
 0x34b   :  { %645 = vmatprep.subr.bf16.mxu0 %v1641_v21  ;;  %1307 = vmatprep.subr.bf16.mxu1 %v1495_v1 }
 0x34e   :  { %646 = vmatpush1.bf16.msra.mxu0 %v1648_v22  ;;  %1308 = vmatpush3.bf16.msra.mxu1 %v1671_v26 }
 0x34f   :  { %741 = vmatprep.subr.bf16.mxu0 %v1522_v0  ;;  %1313 = vmatprep.subr.bf16.mxu1 %v1495_v1 }
 0x404   :  { %v555_v45 = vpop.f32.mrb[12].mxu0  ;;  %v596_v46 = vpop.f32.mrb[12].mxu1 }
 0x405   :  { %v603_v47 = vadd.f32 %v1111_v43, %v555_v45  ;;  %v557_v49 = vpop.f32.mrb[13].mxu0  ;;  %v1291_v50 = vpop.f32.mrb[13].mxu1  ;;  %v602_v62 = vadd.f32 %v1720_v44, %v596_v46 }
 0x406   :  { %v559_v51 = vpop.f32.mrb[14].mxu0  ;;  %v599_v52 = vpop.f32.mrb[14].mxu1  ;;  %v610_v56 = vadd.f32 %v1112_v48, %v557_v49 }
 0x407   :  { %v1114_v53 = vmul.f32 -1.442695, %v603_v47  ;;  %v560_v54 = vpop.f32.mrb[15].mxu0  ;;  %v1292_v55 = vpop.f32.mrb[15].mxu1 }
 0x408   :  { %v1115_v57 = vmul.f32 -1.442695, %v610_v56 }
 0x409   :  { %1439 = vpow2.f32 %v1114_v53 }
 0x40a   :  { %1441 = vpow2.f32 %v1115_v57  ;;  %v1119_v57 = vld [vmem:[%s2071_s0 + $0x70] sm:$0xff] }
 0x413   :  { %v1440_v58 = vpop.eup %1439 }
 0x414   :  { %v607_v59 = vadd.f32 1.0, %v1440_v58  ;;  %v1442_v60 = vpop.eup %1441 }
 0x415   :  { %v614_v61 = vadd.f32 1.0, %v1442_v60 }
 0x416   :  { %1443 = vrcp.f32 %v607_v59 }
 0x417   :  { %1445 = vrcp.f32 %v614_v61 }
 0x420   :  { %v1444_v63 = vpop.eup %1443 }
 0x421   :  { %v617_v27 = vmul.f32 %v1444_v63, %v602_v62  ;;  %v1446_v29 = vpop.eup %1445 }
 0x422   :  { %v620_v30 = vsub.f32 1.0, %v1446_v29  ;;  %v622_v33 = vmul.f32 %v1446_v29, %v1832_v41 }
 0x423   :  { %v618_v28 = vadd.f32 %v1113_v25, %v617_v27 }
 0x425   :  { %1447 = vtanh.f32 %v618_v28 }
 0x42f   :  { %v1448_v31 = vpop.eup %1447 }
 0x430   :  { %v621_v32 = vmul.f32 %v1448_v31, %v620_v30 }
 0x432   :  { %v1885_v34 = vadd.f32 %v622_v33, %v621_v32 }
 0x434   :  { %v624_v35 = vpack.c.bf16 %v1885_v34, %v1885_v34 }
 0x436   :  { %1116 = vst [vmem:[%s2073_s3 + $0xc] sm:$0xf] %v624_v35  ;;  %664 = vmatmul.mubr.bf16.vlgmr.msra.gmra.mrb[16].mxu0 %v624_v35  ;;  %1310 = vmatmul.mubr.bf16.vlgmr.msra.gmra.mrb[16].mxu1 %v624_v35 }
 0x437   :  { %742 = vmatpush1.bf16.msra.mxu0 %v1529_v3  ;;  %1314 = vmatpush3.bf16.msra.mxu1 %v1566_v9 }
 0x438   :  { %743 = vmatprep.subr.bf16.mxu0 %v1537_v4  ;;  %1315 = vmatprep.subr.bf16.mxu1 %v1495_v1 }
 0x439   :  { %773 = vmatprep.mubr.bf16.mxu0 %v1496_v2  ;;  %1329 = vmatprep.mubr.msk.bf16.mxu1 %vm1497_vm0, %v1495_v1 }
 0x43b   :  { %744 = vmatpush1.bf16.msra.mxu0 %v1543_v5  ;;  %1316 = vmatpush3.bf16.msra.mxu1 %v1585_v12 }
 0x43c   :  { %745 = vmatprep.subr.bf16.mxu0 %v1549_v6  ;;  %1317 = vmatprep.subr.bf16.mxu1 %v1495_v1 }
 0x43f   :  { %746 = vmatpush1.bf16.msra.mxu0 %v1555_v7  ;;  %1318 = vmatpush3.bf16.msra.mxu1 %v1597_v14 }
 0x440   :  { %747 = vmatprep.subr.bf16.mxu0 %v1561_v8  ;;  %1319 = vmatprep.subr.bf16.mxu1 %v1495_v1 }
 0x443   :  { %748 = vmatpush1.bf16.msra.mxu0 %v1572_v10  ;;  %1320 = vmatpush3.bf16.msra.mxu1 %v1616_v17 }
 0x444   :  { %749 = vmatprep.subr.bf16.mxu0 %v1579_v11  ;;  %1321 = vmatprep.subr.bf16.mxu1 %v1495_v1 }
 0x447   :  { %750 = vmatpush1.bf16.msra.mxu0 %v1590_v13  ;;  %1322 = vmatpush3.bf16.msra.mxu1 %v1635_v20 }
 0x448   :  { %751 = vmatprep.subr.bf16.mxu0 %v1603_v15  ;;  %1323 = vmatprep.subr.bf16.mxu1 %v1495_v1 }
 0x44b   :  { %752 = vmatpush1.bf16.msra.mxu0 %v1610_v16  ;;  %1324 = vmatpush3.bf16.msra.mxu1 %v1654_v23 }
 0x44c   :  { %753 = vmatprep.subr.bf16.mxu0 %v1622_v18  ;;  %1325 = vmatprep.subr.bf16.mxu1 %v1495_v1 }
 0x44f   :  { %754 = vmatpush1.bf16.msra.mxu0 %v1629_v19  ;;  %1326 = vmatpush3.bf16.msra.mxu1 %v1663_v24 }
 0x450   :  { %755 = vmatprep.subr.bf16.mxu0 %v1641_v21  ;;  %1327 = vmatprep.subr.bf16.mxu1 %v1495_v1 }
 0x453   :  { %756 = vmatpush1.bf16.msra.mxu0 %v1648_v22  ;;  %1328 = vmatpush3.bf16.msra.mxu1 %v1671_v26 }
 0x454   :  { %851 = vmatprep.subr.bf16.mxu0 %v1522_v0  ;;  %1333 = vmatprep.subr.bf16.mxu1 %v1495_v1 }
 0x509   :  { %v665_v37 = vpop.f32.mrb[16].mxu0  ;;  %v706_v38 = vpop.f32.mrb[16].mxu1 }
 0x50a   :  { %v713_v39 = vadd.f32 %v1117_v36, %v665_v37  ;;  %v667_v41 = vpop.f32.mrb[17].mxu0  ;;  %v1311_v42 = vpop.f32.mrb[17].mxu1  ;;  %v712_v55 = vadd.f32 %v1720_v44, %v706_v38 }
 0x50b   :  { %v669_v43 = vpop.f32.mrb[18].mxu0  ;;  %v709_v45 = vpop.f32.mrb[18].mxu1  ;;  %v720_v49 = vadd.f32 %v1118_v40, %v667_v41  ;;  %v1125_v42 = vld [vmem:[%s2071_s0 + $0x88] sm:$0xff] }
 0x50c   :  { %v1120_v46 = vmul.f32 -1.442695, %v713_v39  ;;  %v670_v47 = vpop.f32.mrb[19].mxu0  ;;  %v1312_v48 = vpop.f32.mrb[19].mxu1 }
 0x50d   :  { %v1121_v50 = vmul.f32 -1.442695, %v720_v49 }
 0x50e   :  { %1449 = vpow2.f32 %v1120_v46 }
 0x50f   :  { %1451 = vpow2.f32 %v1121_v50 }
 0x518   :  { %v1450_v51 = vpop.eup %1449 }
 0x519   :  { %v717_v52 = vadd.f32 1.0, %v1450_v51  ;;  %v1452_v53 = vpop.eup %1451 }
 0x51a   :  { %v724_v54 = vadd.f32 1.0, %v1452_v53  ;;  %v1489_v53 = vld [vmem:[%s2070_s1] ss:$12 sps:$4 sm:$0xff]  }
 0x51b   :  { %1453 = vrcp.f32 %v717_v52 }
 0x51c   :  { %1455 = vrcp.f32 %v724_v54  ;;  %v1490_v54 = vld [vmem:[%s2070_s1 + $0x1c] ss:$12 sps:$4 sm:$0xff]  }
 0x525   :  { %v1454_v56 = vpop.eup %1453 }
 0x526   :  { %v727_v58 = vmul.f32 %v1454_v56, %v712_v55  ;;  %v1456_v60 = vpop.eup %1455  ;;  %v1491_v55 = vld [vmem:[%s2070_s1 + $0x18] ss:$12 sps:$4 sm:$0xff]  }
 0x527   :  { %v730_v61 = vsub.f32 1.0, %v1456_v60  ;;  %v732_v25 = vmul.f32 %v1456_v60, %v1885_v34  ;;  %v1494_v56 = vld [vmem:[%s2070_s1 + $0x4c] ss:$12 sps:$4 sm:$0xff]   ;;  %v1131_v60 = vld [vmem:[%s2071_s0 + $0xa0] sm:$0xff] }
 0x528   :  { %v728_v59 = vadd.f32 %v1119_v57, %v727_v58 }
 0x52a   :  { %1457 = vtanh.f32 %v728_v59 }
 0x534   :  { %v1458_v62 = vpop.eup %1457 }
 0x535   :  { %v731_v63 = vmul.f32 %v1458_v62, %v730_v61 }
 0x537   :  { %v1938_v27 = vadd.f32 %v732_v25, %v731_v63 }
 0x539   :  { %v734_v28 = vpack.c.bf16 %v1938_v27, %v1938_v27 }
 0x53b   :  { %1122 = vst [vmem:[%s2073_s3 + $0x10] sm:$0xf] %v734_v28  ;;  %774 = vmatmul.mubr.bf16.vlgmr.msra.gmra.mrb[20].mxu0 %v734_v28  ;;  %1330 = vmatmul.mubr.bf16.vlgmr.msra.gmra.mrb[20].mxu1 %v734_v28 }
 0x53c   :  { %852 = vmatpush1.bf16.msra.mxu0 %v1529_v3  ;;  %1334 = vmatpush3.bf16.msra.mxu1 %v1566_v9  ;;  %v1123_v3 = vld [vmem:[%s2071_s0 + $0x78] sm:$0xff] }
 0x53d   :  { %853 = vmatprep.subr.bf16.mxu0 %v1537_v4  ;;  %1335 = vmatprep.subr.bf16.mxu1 %v1495_v1 }
 0x53e   :  { %883 = vmatprep.mubr.bf16.mxu0 %v1496_v2  ;;  %1349 = vmatprep.mubr.msk.bf16.mxu1 %vm1497_vm0, %v1495_v1 }
 0x540   :  { %854 = vmatpush1.bf16.msra.mxu0 %v1543_v5  ;;  %1336 = vmatpush3.bf16.msra.mxu1 %v1585_v12 }
 0x541   :  { %855 = vmatprep.subr.bf16.mxu0 %v1549_v6  ;;  %1337 = vmatprep.subr.bf16.mxu1 %v1495_v1 }
 0x544   :  { %856 = vmatpush1.bf16.msra.mxu0 %v1555_v7  ;;  %1338 = vmatpush3.bf16.msra.mxu1 %v1597_v14  ;;  %v1124_v7 = vld [vmem:[%s2071_s0 + $0x80] sm:$0xff] }
 0x545   :  { %857 = vmatprep.subr.bf16.mxu0 %v1561_v8  ;;  %1339 = vmatprep.subr.bf16.mxu1 %v1495_v1 }
 0x548   :  { %858 = vmatpush1.bf16.msra.mxu0 %v1572_v10  ;;  %1340 = vmatpush3.bf16.msra.mxu1 %v1616_v17 }
 0x549   :  { %859 = vmatprep.subr.bf16.mxu0 %v1579_v11  ;;  %1341 = vmatprep.subr.bf16.mxu1 %v1495_v1 }
 0x54c   :  { %860 = vmatpush1.bf16.msra.mxu0 %v1590_v13  ;;  %1342 = vmatpush3.bf16.msra.mxu1 %v1635_v20 }
 0x54d   :  { %861 = vmatprep.subr.bf16.mxu0 %v1603_v15  ;;  %1343 = vmatprep.subr.bf16.mxu1 %v1495_v1 }
 0x550   :  { %862 = vmatpush1.bf16.msra.mxu0 %v1610_v16  ;;  %1344 = vmatpush3.bf16.msra.mxu1 %v1654_v23 }
 0x551   :  { %863 = vmatprep.subr.bf16.mxu0 %v1622_v18  ;;  %1345 = vmatprep.subr.bf16.mxu1 %v1495_v1 }
 0x554   :  { %864 = vmatpush1.bf16.msra.mxu0 %v1629_v19  ;;  %1346 = vmatpush3.bf16.msra.mxu1 %v1663_v24 }
 0x555   :  { %865 = vmatprep.subr.bf16.mxu0 %v1641_v21  ;;  %1347 = vmatprep.subr.bf16.mxu1 %v1495_v1 }
 0x558   :  { %866 = vmatpush1.bf16.msra.mxu0 %v1648_v22  ;;  %1348 = vmatpush3.bf16.msra.mxu1 %v1671_v26 }
 0x559   :  { %961 = vmatprep.subr.bf16.mxu0 %v1522_v0  ;;  %1353 = vmatprep.subr.bf16.mxu1 %v1495_v1 }
 0x60e   :  { %v775_v4 = vpop.f32.mrb[20].mxu0  ;;  %v816_v5 = vpop.f32.mrb[20].mxu1 }
 0x60f   :  { %v823_v6 = vadd.f32 %v1123_v3, %v775_v4  ;;  %v777_v8 = vpop.f32.mrb[21].mxu0  ;;  %v1331_v29 = vpop.f32.mrb[21].mxu1  ;;  %v822_v40 = vadd.f32 %v1720_v44, %v816_v5 }
 0x610   :  { %v779_v30 = vpop.f32.mrb[22].mxu0  ;;  %v819_v31 = vpop.f32.mrb[22].mxu1  ;;  %v830_v34 = vadd.f32 %v1124_v7, %v777_v8 }
 0x611   :  { %v1126_v32 = vmul.f32 -1.442695, %v823_v6  ;;  %v780_v33 = vpop.f32.mrb[23].mxu0  ;;  %v1332_v0 = vpop.f32.mrb[23].mxu1  ;;  %v1135_v6 = vld [vmem:[%s2071_s0 + $0xa8] sm:$0xff]  ;;  %v1136_v30 = vld [vmem:[%s2071_s0 + $0xb0] sm:$0xff] }
 0x612   :  { %v1127_v35 = vmul.f32 -1.442695, %v830_v34 }
 0x613   :  { %1459 = vpow2.f32 %v1126_v32 }
 0x614   :  { %1461 = vpow2.f32 %v1127_v35 }
 0x61d   :  { %v1460_v36 = vpop.eup %1459 }
 0x61e   :  { %v827_v37 = vadd.f32 1.0, %v1460_v36  ;;  %v1462_v38 = vpop.eup %1461 }
 0x61f   :  { %v834_v39 = vadd.f32 1.0, %v1462_v38 }
 0x620   :  { %1463 = vrcp.f32 %v827_v37 }
 0x621   :  { %1465 = vrcp.f32 %v834_v39 }
 0x62a   :  { %v1464_v41 = vpop.eup %1463 }
 0x62b   :  { %v837_v43 = vmul.f32 %v1464_v41, %v822_v40  ;;  %v1466_v46 = vpop.eup %1465 }
 0x62c   :  { %v840_v47 = vsub.f32 1.0, %v1466_v46  ;;  %v842_v50 = vmul.f32 %v1466_v46, %v1938_v27  ;;  %v1137_v46 = vld [vmem:[%s2071_s0 + $0xb8] sm:$0xff] }
 0x62d   :  { %v838_v45 = vadd.f32 %v1125_v42, %v837_v43 }
 0x62f   :  { %1467 = vtanh.f32 %v838_v45 }
 0x639   :  { %v1468_v48 = vpop.eup %1467 }
 0x63a   :  { %v841_v49 = vmul.f32 %v1468_v48, %v840_v47 }
 0x63c   :  { %v1991_v51 = vadd.f32 %v842_v50, %v841_v49 }
 0x63e   :  { %v844_v52 = vpack.c.bf16 %v1991_v51, %v1991_v51 }
 0x640   :  { %1128 = vst [vmem:[%s2073_s3 + $0x14] sm:$0xf] %v844_v52  ;;  %884 = vmatmul.mubr.bf16.vlgmr.msra.gmra.mrb[24].mxu0 %v844_v52  ;;  %1350 = vmatmul.mubr.bf16.vlgmr.msra.gmra.mrb[24].mxu1 %v844_v52 }
 0x641   :  { %962 = vmatpush1.bf16.msra.mxu0 %v1489_v53  ;;  %1354 = vmatpush3.bf16.msra.mxu1 %v1566_v9  ;;  %v1492_v9 = vld [vmem:[%s2070_s1 + $0x34] ss:$12 sps:$4 sm:$0xff]  }
 0x642   :  { %963 = vmatprep.subr.bf16.mxu0 %v1490_v54  ;;  %1355 = vmatprep.subr.bf16.mxu1 %v1495_v1 }
 0x643   :  { %993 = vmatprep.mubr.bf16.mxu0 %v1496_v2  ;;  %1369 = vmatprep.mubr.msk.bf16.mxu1 %vm1497_vm0, %v1495_v1  ;;  %v1493_v2 = vld [vmem:[%s2070_s1 + $0x30] ss:$12 sps:$4 sm:$0xff]  }
 0x645   :  { %964 = vmatpush1.bf16.msra.mxu0 %v1491_v55  ;;  %1356 = vmatpush3.bf16.msra.mxu1 %v1585_v12 }
 0x646   :  { %965 = vmatprep.subr.bf16.mxu0 %v1492_v9  ;;  %1357 = vmatprep.subr.bf16.mxu1 %v1495_v1 }
 0x649   :  { %966 = vmatpush1.bf16.msra.mxu0 %v1493_v2  ;;  %1358 = vmatpush3.bf16.msra.mxu1 %v1597_v14  ;;  %v1130_v14 = vld [vmem:[%s2071_s0 + $0x98] sm:$0xff] }
 0x64a   :  { %967 = vmatprep.subr.bf16.mxu0 %v1494_v56  ;;  %1359 = vmatprep.subr.bf16.mxu1 %v1495_v1 }
 0x64d   :  { %968 = vmatpush1.bf16.msra.mxu0 %v1572_v10  ;;  %1360 = vmatpush3.bf16.msra.mxu1 %v1616_v17  ;;  %v1129_v10 = vld [vmem:[%s2071_s0 + $0x90] sm:$0xff] }
 0x64e   :  { %969 = vmatprep.subr.bf16.mxu0 %v1579_v11  ;;  %1361 = vmatprep.subr.bf16.mxu1 %v1495_v1 }
 0x651   :  { %970 = vmatpush1.bf16.msra.mxu0 %v1590_v13  ;;  %1362 = vmatpush3.bf16.msra.mxu1 %v1635_v20 }
 0x652   :  { %971 = vmatprep.subr.bf16.mxu0 %v1603_v15  ;;  %1363 = vmatprep.subr.bf16.mxu1 %v1495_v1 }
 0x655   :  { %972 = vmatpush1.bf16.msra.mxu0 %v1610_v16  ;;  %1364 = vmatpush3.bf16.msra.mxu1 %v1654_v23 }
 0x656   :  { %973 = vmatprep.subr.bf16.mxu0 %v1622_v18  ;;  %1365 = vmatprep.subr.bf16.mxu1 %v1495_v1 }
 0x659   :  { %974 = vmatpush1.bf16.msra.mxu0 %v1629_v19  ;;  %1366 = vmatpush3.bf16.msra.mxu1 %v1663_v24 }
 0x65a   :  { %975 = vmatprep.subr.bf16.mxu0 %v1641_v21  ;;  %1367 = vmatprep.subr.bf16.mxu1 %v1495_v1 }
 0x65d   :  { %976 = vmatpush1.bf16.msra.mxu0 %v1648_v22  ;;  %1368 = vmatpush3.bf16.msra.mxu1 %v1671_v26 }
 0x713   :  { %v885_v11 = vpop.f32.mrb[24].mxu0  ;;  %v926_v12 = vpop.f32.mrb[24].mxu1 }
 0x714   :  { %v933_v13 = vadd.f32 %v1129_v10, %v885_v11  ;;  %v887_v15 = vpop.f32.mrb[25].mxu0  ;;  %v1351_v16 = vpop.f32.mrb[25].mxu1  ;;  %v932_v58 = vadd.f32 %v1720_v44, %v926_v12 }
 0x715   :  { %v889_v17 = vpop.f32.mrb[26].mxu0  ;;  %v929_v18 = vpop.f32.mrb[26].mxu1  ;;  %v940_v21 = vadd.f32 %v1130_v14, %v887_v15 }
 0x716   :  { %v1132_v1 = vmul.f32 -1.442695, %v933_v13  ;;  %v890_v19 = vpop.f32.mrb[27].mxu0  ;;  %v1352_v20 = vpop.f32.mrb[27].mxu1 }
 0x717   :  { %v1133_v22 = vmul.f32 -1.442695, %v940_v21 }
 0x718   :  { %1469 = vpow2.f32 %v1132_v1 }
 0x719   :  { %1471 = vpow2.f32 %v1133_v22 }
 0x722   :  { %v1470_v23 = vpop.eup %1469 }
 0x723   :  { %v937_v24 = vadd.f32 1.0, %v1470_v23  ;;  %v1472_v26 = vpop.eup %1471 }
 0x724   :  { %v944_v57 = vadd.f32 1.0, %v1472_v26 }
 0x725   :  { %1473 = vrcp.f32 %v937_v24 }
 0x726   :  { %1475 = vrcp.f32 %v944_v57 }
 0x72f   :  { %v1474_v59 = vpop.eup %1473 }
 0x730   :  { %v947_v61 = vmul.f32 %v1474_v59, %v932_v58  ;;  %v1476_v63 = vpop.eup %1475 }
 0x731   :  { %v950_v25 = vsub.f32 1.0, %v1476_v63  ;;  %v952_v3 = vmul.f32 %v1476_v63, %v1991_v51 }
 0x732   :  { %v948_v62 = vadd.f32 %v1131_v60, %v947_v61 }
 0x734   :  { %1477 = vtanh.f32 %v948_v62 }
 0x73e   :  { %v1478_v27 = vpop.eup %1477 }
 0x73f   :  { %v951_v28 = vmul.f32 %v1478_v27, %v950_v25 }
 0x741   :  { %v953_v4 = vadd.f32 %v952_v3, %v951_v28 }
 0x743   :  { %v954_v5 = vpack.c.bf16 %v953_v4, %v953_v4 }
 0x745   :  { %1134 = vst [vmem:[%s2073_s3 + $0x18] sm:$0xf] %v954_v5  ;;  %994 = vmatmul.mubr.bf16.vlgmr.msra.gmra.mrb[28].mxu0 %v954_v5  ;;  %1370 = vmatmul.mubr.bf16.vlgmr.msra.gmra.mrb[28].mxu1 %v954_v5 }
 0x818   :  { %v995_v7 = vpop.f32.mrb[28].mxu0  ;;  %v1036_v8 = vpop.f32.mrb[28].mxu1 }
 0x819   :  { %v1043_v29 = vadd.f32 %v1135_v6, %v995_v7  ;;  %v997_v31 = vpop.f32.mrb[29].mxu0  ;;  %v1371_v32 = vpop.f32.mrb[29].mxu1  ;;  %v1042_v43 = vadd.f32 %v1720_v44, %v1036_v8 }
 0x81a   :  { %v999_v33 = vpop.f32.mrb[30].mxu0  ;;  %v1039_v0 = vpop.f32.mrb[30].mxu1  ;;  %v1050_v37 = vadd.f32 %v1136_v30, %v997_v31 }
 0x81b   :  { %v1138_v34 = vmul.f32 -1.442695, %v1043_v29  ;;  %v1000_v35 = vpop.f32.mrb[31].mxu0  ;;  %v1372_v36 = vpop.f32.mrb[31].mxu1 }
 0x81c   :  { %v1139_v38 = vmul.f32 -1.442695, %v1050_v37 }
 0x81d   :  { %1479 = vpow2.f32 %v1138_v34 }
 0x81e   :  { %1481 = vpow2.f32 %v1139_v38 }
 0x827   :  { %v1480_v39 = vpop.eup %1479 }
 0x828   :  { %v1047_v40 = vadd.f32 1.0, %v1480_v39  ;;  %v1482_v41 = vpop.eup %1481 }
 0x829   :  { %v1054_v42 = vadd.f32 1.0, %v1482_v41 }
 0x82a   :  { %1483 = vrcp.f32 %v1047_v40 }
 0x82b   :  { %1485 = vrcp.f32 %v1054_v42 }
 0x834   :  { %v1484_v45 = vpop.eup %1483 }
 0x835   :  { %v1057_v47 = vmul.f32 %v1484_v45, %v1042_v43  ;;  %v1486_v49 = vpop.eup %1485 }
 0x836   :  { %v1060_v50 = vsub.f32 1.0, %v1486_v49  ;;  %v1062_v53 = vmul.f32 %v1486_v49, %v953_v4 }
 0x837   :  { %v1058_v48 = vadd.f32 %v1137_v46, %v1057_v47 }
 0x839   :  { %1487 = vtanh.f32 %v1058_v48 }
 0x843   :  { %v1488_v51 = vpop.eup %1487 }
 0x844   :  { %v1061_v52 = vmul.f32 %v1488_v51, %v1060_v50 }
 0x846   :  { %v1063_v54 = vadd.f32 %v1062_v53, %v1061_v52 }
 0x848   :  { %v1064_v55 = vpack.c.bf16 %v1063_v54, %v1063_v54 }
 0x84a   :  { %1140 = vst [vmem:[%s2073_s3 + $0x1c] sm:$0xf] %v1064_v55 }

</bundles_post_ra>
